<compile_context>
chip_gen: v6e
topology: v6e:2x2x1
jax: 0.10.0
libtpu: 0.0.40
codegen_flags: <defaults>
</compile_context>

<pallas_src>
import functools

import jax
import jax.numpy as jnp
from jax.experimental import pallas as pl
from jax.experimental.pallas import tpu as pltpu


def _round_up(x, m):
    return ((x + m - 1) // m) * m


# ---------------------------------------------------------------------------
# Kernel bodies
# ---------------------------------------------------------------------------
def _proj_kernel_resident_v(z_ref, v_ref, o_ref):
    # z_ref: (tm, dim_p)   v_ref: (dim_p, dim_p) resident   o_ref: (tm, dim_p)
    o_ref[...] = jnp.dot(
        z_ref[...], v_ref[...], preferred_element_type=jnp.float32
    ).astype(o_ref.dtype)


def _proj_kernel_ktiled(z_ref, v_ref, o_ref, acc_ref):
    # z_ref: (tm, tk)   v_ref: (tk, dim_p)   o_ref: (tm, dim_p)   acc: (tm, dim_p) f32
    @pl.when(pl.program_id(1) == 0)
    def _():
        acc_ref[...] = jnp.zeros_like(acc_ref)

    acc_ref[...] += jnp.dot(
        z_ref[...], v_ref[...], preferred_element_type=jnp.float32
    )

    @pl.when(pl.program_id(1) == pl.num_programs(1) - 1)
    def _():
        o_ref[...] = acc_ref[...].astype(o_ref.dtype)


# ---------------------------------------------------------------------------
# Wrapper
# ---------------------------------------------------------------------------
@functools.partial(jax.jit, static_argnames=("tm", "tk"))
def orthogonal_projector_forward(Z, *, tm=512, tk=512):
    """Pallas implementation of OrthogonalProjector.forward.

    Z: (N, dim) float32, N >= dim (so torch.svd's V is (dim, dim)).
    Returns (N, dim) = Z @ V @ diag(D).
    """
    N, dim = Z.shape
    if N < dim:
        raise ValueError(
            f"OrthogonalProjector requires N >= dim (got N={N}, dim={dim}); "
            "otherwise V from the thin SVD is not (dim, dim)."
        )

    # TODO(synk): SVD is an iterative LAPACK-style factorization with no clean
    # Pallas equivalent; it stays in plain JAX (XLA). The projection matmul is
    # the Pallas kernel below.
    _, S, Vh = jnp.linalg.svd(Z.astype(jnp.float32), full_matrices=False)
    # Fold diag(D) into V once (dim^2 work) so the kernel is a pure matmul.
    V_scaled = (Vh.T * S[None, :]).astype(jnp.float32)          # (dim, dim)

    # ---- lane-dense / tile-aligned padded shapes --------------------------
    dim_p = max(_round_up(dim, 128), 128)       # lane-dense last dim (>=128)
    tm_eff = max(128, min(_round_up(tm, 128), _round_up(N, 128)))
    n_p = _round_up(N, tm_eff)

    Z_p = Z.astype(jnp.float32)
    if (n_p, dim_p) != (N, dim):
        Z_p = jnp.zeros((n_p, dim_p), jnp.float32).at[:N, :dim].set(Z_p)
    V_p = V_scaled
    if dim_p != dim:
        V_p = jnp.zeros((dim_p, dim_p), jnp.float32).at[:dim, :dim].set(V_scaled)

    grid_m = n_p // tm_eff
    itemsize = 4  # f32

    use_ktiled = dim_p >= 2048  # full V no longer comfortably VMEM-resident

    if not use_ktiled:
        # ---- simple path: V resident in VMEM, stream Z row tiles ----------
        vmem_budget = (
            2 * 2 * tm_eff * dim_p * itemsize        # double-buffered Z + out tiles
            + 2 * dim_p * dim_p * itemsize           # V (budget double buffers)
            + (2 << 20)                              # headroom
        )
        vmem_budget = min(vmem_budget, 60 << 20)     # stay inside v7x's 64 MiB

        cost = pl.CostEstimate(
            flops=2 * n_p * dim_p * dim_p,
            transcendentals=0,
            bytes_accessed=(2 * n_p * dim_p + dim_p * dim_p) * itemsize,
        )

        out_p = pl.pallas_call(
            _proj_kernel_resident_v,
            out_shape=jax.ShapeDtypeStruct((n_p, dim_p), Z.dtype),
            grid_spec=pltpu.PrefetchScalarGridSpec(
                num_scalar_prefetch=0,
                grid=(grid_m,),
                in_specs=[
                    pl.BlockSpec((tm_eff, dim_p), lambda i: (i, 0)),   # Z row tile
                    pl.BlockSpec((dim_p, dim_p), lambda i: (0, 0)),    # V (resident)
                ],
                out_specs=pl.BlockSpec((tm_eff, dim_p), lambda i: (i, 0)),
            ),
            compiler_params=pltpu.CompilerParams(
                dimension_semantics=("parallel",),
                vmem_limit_bytes=int(vmem_budget),
            ),
            cost_estimate=cost,
        )(Z_p, V_p)
    else:
        # ---- large-dim path: K-tiled reduction, stream V in (tk, dim_p) ---
        tm_big = max(128, min(tm_eff, 256))          # smaller M tile for VMEM
        n_p = _round_up(N, tm_big)
        if n_p != Z_p.shape[0]:
            Z_p = jnp.zeros((n_p, dim_p), jnp.float32).at[:N, :dim].set(
                Z.astype(jnp.float32))
        grid_m = n_p // tm_big
        tk_eff = max(128, min(_round_up(tk, 128), dim_p))
        grid_k = dim_p // tk_eff

        vmem_budget = (
            2 * tm_big * tk_eff * itemsize           # Z tiles (double-buffered)
            + 2 * tk_eff * dim_p * itemsize          # V slabs (double-buffered)
            + 2 * tm_big * dim_p * itemsize          # out tiles
            + tm_big * dim_p * itemsize              # accumulator scratch
            + (2 << 20)
        )
        vmem_budget = min(vmem_budget, 60 << 20)

        cost = pl.CostEstimate(
            flops=2 * n_p * dim_p * dim_p,
            transcendentals=0,
            bytes_accessed=(2 * n_p * dim_p + dim_p * dim_p) * itemsize,
        )

        out_p = pl.pallas_call(
            _proj_kernel_ktiled,
            out_shape=jax.ShapeDtypeStruct((n_p, dim_p), Z.dtype),
            grid_spec=pltpu.PrefetchScalarGridSpec(
                num_scalar_prefetch=0,
                grid=(grid_m, grid_k),
                in_specs=[
                    pl.BlockSpec((tm_big, tk_eff), lambda i, k: (i, k)),   # Z
                    pl.BlockSpec((tk_eff, dim_p), lambda i, k: (k, 0)),    # V slab
                ],
                out_specs=pl.BlockSpec((tm_big, dim_p), lambda i, k: (i, 0)),
                scratch_shapes=[pltpu.VMEM((tm_big, dim_p), jnp.float32)],
            ),
            compiler_params=pltpu.CompilerParams(
                dimension_semantics=("parallel", "arbitrary"),
                vmem_limit_bytes=int(vmem_budget),
            ),
            cost_estimate=cost,
        )(Z_p, V_p)

    return out_p[:N, :dim]


if __name__ == "__main__":
    key = jax.random.PRNGKey(0)
    N, dim = 128, 32

    # Deterministic "module parameter" init (nn.Linear(dim, dim, bias=False)).
    # forward() overwrites this weight before using it, so it does not affect
    # the output; created only to mirror __init__.
    k_w, k_z = jax.random.split(key)
    bound = 1.0 / jnp.sqrt(dim)
    _linear_weight = jax.random.uniform(
        k_w, (dim, dim), jnp.float32, minval=-bound, maxval=bound
    )

    Z = jax.random.normal(k_z, (N, dim), dtype=jnp.float32)

    out = orthogonal_projector_forward(Z)
    out = jax.block_until_ready(out)

    # Reference in plain JAX: Z @ V @ diag(D) (same SVD, so sign ambiguity cancels).
    _, S_ref, Vh_ref = jnp.linalg.svd(Z, full_matrices=False)
    ref = Z @ (Vh_ref.T * S_ref[None, :])

    assert out.shape == (N, dim)
    assert jnp.allclose(out, ref, atol=1e-3, rtol=1e-3), "mismatch vs reference"
    print("KERNEL_OK")
</pallas_src>

<mosaic_0001>
module attributes {stable_mosaic.version = 11 : i64} {
  func.func @_proj_kernel_resident_v(%arg0: i32, %arg1: memref<128x128xf32, #tpu.memory_space<vmem>>, %arg2: memref<128x128xf32, #tpu.memory_space<vmem>>, %arg3: memref<128x128xf32, #tpu.memory_space<vmem>>) attributes {dimension_semantics = [#tpu.dimension_semantics<parallel>], iteration_bounds = array<i64: 1>, scalar_prefetch = 0 : i64, scratch_operands = 0 : i64, tpu.core_type = #tpu.core_type<tc>, window_params = [{transform_indices = @transform_0, window_bounds = array<i64: 128, 128>}, {pipeline_mode = #tpu.pipeline_mode<synchronous>, transform_indices = @transform_1, window_bounds = array<i64: 128, 128>}, {transform_indices = @transform_2, window_bounds = array<i64: 128, 128>}]} {
    %c0 = arith.constant 0 : index
    %c0_0 = arith.constant 0 : index
    %0 = vector.load %arg1[%c0, %c0_0] : memref<128x128xf32, #tpu.memory_space<vmem>>, vector<128x128xf32>
    %c0_1 = arith.constant 0 : index
    %c0_2 = arith.constant 0 : index
    %1 = vector.load %arg2[%c0_1, %c0_2] : memref<128x128xf32, #tpu.memory_space<vmem>>, vector<128x128xf32>
    %cst = arith.constant dense<0.000000e+00> : vector<128x128xf32>
    %2 = tpu.matmul %0, %1, %cst {dimension_numbers = #tpu.dot_dimension_numbers<[1], [0], [0], [1], [0, 0, 1, 1], [], []>} : vector<128x128xf32>, vector<128x128xf32>, vector<128x128xf32> -> vector<128x128xf32>
    %c0_3 = arith.constant 0 : index
    %c0_4 = arith.constant 0 : index
    %3 = vector.load %arg3[%c0_3, %c0_4] : memref<128x128xf32, #tpu.memory_space<vmem>>, vector<128x128xf32>
    tpu.vector_store %arg3[%c0_3, %c0_4], %2 {strides = array<i32>} : memref<128x128xf32, #tpu.memory_space<vmem>>, vector<128x128xf32>,
    return
  }
  func.func @transform_0(%arg0: i32) -> (i32, i32) {
    %c0_i32 = arith.constant 0 : i32
    %c0_i32_0 = arith.constant 0 : i32
    return %arg0, %c0_i32 : i32, i32
  }
  func.func @transform_1(%arg0: i32) -> (i32, i32) {
    %c0_i32 = arith.constant 0 : i32
    %c0_i32_0 = arith.constant 0 : i32
    %c0_i32_1 = arith.constant 0 : i32
    return %c0_i32, %c0_i32_0 : i32, i32
  }
  func.func @transform_2(%arg0: i32) -> (i32, i32) {
    %c0_i32 = arith.constant 0 : i32
    %c0_i32_0 = arith.constant 0 : i32
    return %arg0, %c0_i32 : i32, i32
  }
}

</mosaic_0001>

<bundles_post_ra>
// kernel: custom-call.31
= control target key start
LH: loop header
LB: loop body
LE: loop exit
PB: predicated region body
PF: predicated region fallthrough
CT: control target
= control target key end

     0   :  { %4 = vsyncpa [#allocation4], 0  ;;  %v1434_v5 = vmov 0.0   ;;  %s1500_s13 = smov 0   ;;  %s2177_s0 = inlined_call_operand.vmem [shape: f32[128,32], index: 0, kind: input, shape index: {}]   ;;  %s2178_s1 = inlined_call_operand.vmem [shape: f32[128,32], index: 1, kind: output, shape index: {0}]   ;;  %s2179_s2 = inlined_call_operand.hbm [shape: f32[32], index: 2, kind: output, shape index: {1}]  }
   0x1   :  { %v63_v0 = vld [vmem:[%s2177_s0] sm:$0xff]  ;;  %v65_v1 = vld [vmem:[%s2177_s0 + $0x8] sm:$0xff]  ;;  %v67_v2 = vld [vmem:[%s2177_s0 + $0x10] sm:$0xff]  ;;  %160 = vst [vmem:[#allocation2] sm:$0x1] %v1434_v5 }
   0x2   :  { %v69_v3 = vld [vmem:[%s2177_s0 + $0x18] sm:$0xff]  ;;  %v71_v4 = vld [vmem:[%s2177_s0 + $0x20] sm:$0xff]  ;;  %99 = vst [vmem:[#allocation1] sm:$0xff] %v63_v0  ;;  %103 = vst [vmem:[#allocation1 + $0x8] sm:$0xff] %v65_v1 }
   0x3   :  { %v73_v6 = vld [vmem:[%s2177_s0 + $0x28] sm:$0xff]  ;;  %v75_v7 = vld [vmem:[%s2177_s0 + $0x30] sm:$0xff]  ;;  %v77_v8 = vld [vmem:[%s2177_s0 + $0x38] sm:$0xff]  ;;  %107 = vst [vmem:[#allocation1 + $0x10] sm:$0xff] %v67_v2 }
   0x4   :  { %111 = vst [vmem:[#allocation1 + $0x18] sm:$0xff] %v69_v3  ;;  %115 = vst [vmem:[#allocation1 + $0x20] sm:$0xff] %v71_v4  ;;  %v79_v9 = vld [vmem:[%s2177_s0 + $0x40] sm:$0xff]  ;;  %v81_v10 = vld [vmem:[%s2177_s0 + $0x48] sm:$0xff] }
   0x5   :  { %v83_v11 = vld [vmem:[%s2177_s0 + $0x50] sm:$0xff]  ;;  %119 = vst [vmem:[#allocation1 + $0x28] sm:$0xff] %v73_v6  ;;  %123 = vst [vmem:[#allocation1 + $0x30] sm:$0xff] %v75_v7  ;;  %v85_v12 = vld [vmem:[%s2177_s0 + $0x58] sm:$0xff] }
   0x6   :  { %127 = vst [vmem:[#allocation1 + $0x38] sm:$0xff] %v77_v8  ;;  %v87_v13 = vld [vmem:[%s2177_s0 + $0x60] sm:$0xff]  ;;  %v89_v14 = vld [vmem:[%s2177_s0 + $0x68] sm:$0xff]  ;;  %131 = vst [vmem:[#allocation1 + $0x40] sm:$0xff] %v79_v9 }
   0x7   :  { %135 = vst [vmem:[#allocation1 + $0x48] sm:$0xff] %v81_v10  ;;  %139 = vst [vmem:[#allocation1 + $0x50] sm:$0xff] %v83_v11  ;;  %v91_v15 = vld [vmem:[%s2177_s0 + $0x70] sm:$0xff]  ;;  %v93_v16 = vld [vmem:[%s2177_s0 + $0x78] sm:$0xff] }
   0x8   :  { %143 = vst [vmem:[#allocation1 + $0x58] sm:$0xff] %v85_v12  ;;  %147 = vst [vmem:[#allocation1 + $0x60] sm:$0xff] %v87_v13 }
   0x9   :  { %151 = vst [vmem:[#allocation1 + $0x68] sm:$0xff] %v89_v14  ;;  %155 = vst [vmem:[#allocation1 + $0x70] sm:$0xff] %v91_v15 }
   0xa   :  { %159 = vst [vmem:[#allocation1 + $0x78] sm:$0xff] %v93_v16 }
   0xb LB: > { %v168_v17 = vlaneseq  ;;  %v167_v18 = vld [vmem:[#allocation1] sm:$0xff]  ;;  %v1509_v20 = vstv %s1432_s13  ;;  %v176_v21 = vld [vmem:[#allocation1 + $0x8] sm:$0xff]  ;;  %v186_v23 = vld [vmem:[#allocation1 + $0x10] sm:$0xff]  ;;  %s345_s0 = scalar_lea.vmem [#allocation1], %s1432_s13  ;;  %s1571_s14 = smov [#allocation1]  ;;  %s1432_s13 = sphi %s1500_s13, %s166_s13  }
   0xc   : > { %v196_v25 = vld [vmem:[#allocation1 + $0x18] sm:$0xff]  ;;  %v206_v32 = vld [vmem:[#allocation1 + $0x20] sm:$0xff]  ;;  %v216_v38 = vld [vmem:[#allocation1 + $0x28] sm:$0xff]  ;;  %s673_s15 = scalar_lea.vmem [#allocation5], %s1432_s13  ;;  %s1730_s16 = smov [#allocation1] }
   0xd   : > { %v1506_v19 = vshrl.u32 %v168_v17, 7  ;;  %v226_v43 = vld [vmem:[#allocation1 + $0x30] sm:$0xff]  ;;  %v236_v48 = vld [vmem:[#allocation1 + $0x38] sm:$0xff]  ;;  %v246_v53 = vld [vmem:[#allocation1 + $0x40] sm:$0xff]  ;;  %s1737_s17 = smov [#allocation5] }
   0xe   : > { %v256_v58 = vld [vmem:[#allocation1 + $0x48] sm:$0xff]  ;;  %v266_v63 = vld [vmem:[#allocation1 + $0x50] sm:$0xff] }
   0xf   : > { %vm172_vm0 = vcmp.gt.s32.totalorder %v1506_v19, %v1509_v20  ;;  %v179_v22 = vadd.s32 8, %v1506_v19  ;;  %v189_v24 = vadd.s32 16, %v1506_v19  ;;  %v199_v26 = vadd.s32 24, %v1506_v19  ;;  %v276_v4 = vld [vmem:[#allocation1 + $0x58] sm:$0xff]  ;;  %v286_v9 = vld [vmem:[#allocation1 + $0x60] sm:$0xff] }
  0x10   : > { %v173_v27 = vsel %vm172_vm0, %v167_v18, 0.0  ;;  %v209_v28 = vadd.s32 32, %v1506_v19  ;;  %v219_v29 = vadd.s32 40, %v1506_v19  ;;  %v229_v30 = vadd.s32 48, %v1506_v19  ;;  %v296_v14 = vld [vmem:[#allocation1 + $0x68] sm:$0xff] }
  0x11   : > { %v174_v31 = vmul.f32 %v173_v27, %v173_v27  ;;  %vm181_vm1 = vcmp.gt.s32.totalorder %v179_v22, %v1509_v20  ;;  %vm191_vm2 = vcmp.gt.s32.totalorder %v189_v24, %v1509_v20  ;;  %vm201_vm3 = vcmp.gt.s32.totalorder %v199_v26, %v1509_v20  ;;  %v306_v22 = vld [vmem:[#allocation1 + $0x70] sm:$0xff]  ;;  %v316_v26 = vld [vmem:[#allocation1 + $0x78] sm:$0xff] }
  0x12   : > { %v182_v33 = vsel %vm181_vm1, %v176_v21, 0.0  ;;  %v192_v34 = vsel %vm191_vm2, %v186_v23, 0.0  ;;  %v202_v35 = vsel %vm201_vm3, %v196_v25, 0.0  ;;  %vm211_vm4 = vcmp.gt.s32.totalorder %v209_v28, %v1509_v20 }
  0x13   : > { %v183_v36 = vmul.f32 %v182_v33, %v182_v33  ;;  %v193_v37 = vmul.f32 %v192_v34, %v192_v34  ;;  %v212_v39 = vsel %vm211_vm4, %v206_v32, 0.0  ;;  %vm221_vm5 = vcmp.gt.s32.totalorder %v219_v29, %v1509_v20 }
  0x14   : > { %v239_v40 = vadd.s32 56, %v1506_v19  ;;  %v203_v42 = vmul.f32 %v202_v35, %v202_v35  ;;  %vm231_vm6 = vcmp.gt.s32.totalorder %v229_v30, %v1509_v20  ;;  %v249_v44 = vadd.s32 64, %v1506_v19 }
  0x15   : > { %v184_v41 = vadd.f32 %v183_v36, %v174_v31  ;;  %v222_v45 = vsel %vm221_vm5, %v216_v38, 0.0  ;;  %v213_v47 = vmul.f32 %v212_v39, %v212_v39  ;;  %v259_v49 = vadd.s32 72, %v1506_v19 }
  0x16   : > { %vm241_vm7 = vcmp.gt.s32.totalorder %v239_v40, %v1509_v20  ;;  %v232_v50 = vsel %vm231_vm6, %v226_v43, 0.0  ;;  %v223_v52 = vmul.f32 %v222_v45, %v222_v45  ;;  %vm251_vm8 = vcmp.gt.s32.totalorder %v249_v44, %v1509_v20  ;;  %v1547_v43 = vld [vmem:[%s345_s0] ss:$0 sm:$0xff] }
  0x17   : > { %v194_v46 = vadd.f32 %v193_v37, %v184_v41  ;;  %v269_v54 = vadd.s32 80, %v1506_v19  ;;  %v242_v55 = vsel %vm241_vm7, %v236_v48, 0.0  ;;  %v233_v57 = vmul.f32 %v232_v50, %v232_v50 }
  0x18   : > { %vm261_vm9 = vcmp.gt.s32.totalorder %v259_v49, %v1509_v20  ;;  %v279_v59 = vadd.s32 88, %v1506_v19  ;;  %v252_v60 = vsel %vm251_vm8, %v246_v53, 0.0  ;;  %v243_v62 = vmul.f32 %v242_v55, %v242_v55 }
  0x19   : > { %v204_v51 = vadd.f32 %v203_v42, %v194_v46  ;;  %vm271_vm10 = vcmp.gt.s32.totalorder %v269_v54, %v1509_v20  ;;  %v289_v0 = vadd.s32 96, %v1506_v19  ;;  %v262_v1 = vsel %vm261_vm9, %v256_v58, 0.0 }
  0x1a   : > { %v253_v3 = vmul.f32 %v252_v60, %v252_v60  ;;  %vm281_vm11 = vcmp.gt.s32.totalorder %v279_v59, %v1509_v20  ;;  %v299_v5 = vadd.s32 104, %v1506_v19  ;;  %v272_v6 = vsel %vm271_vm10, %v266_v63, 0.0 }
  0x1b   : > { %v214_v56 = vadd.f32 %v213_v47, %v204_v51  ;;  %v263_v8 = vmul.f32 %v262_v1, %v262_v1  ;;  %vm291_vm12 = vcmp.gt.s32.totalorder %v289_v0, %v1509_v20  ;;  %v309_v10 = vadd.s32 112, %v1506_v19 }
  0x1c   : > { %v282_v11 = vsel %vm281_vm11, %v276_v4, 0.0  ;;  %v273_v13 = vmul.f32 %v272_v6, %v272_v6  ;;  %vm301_vm13 = vcmp.gt.s32.totalorder %v299_v5, %v1509_v20  ;;  %v319_v15 = vadd.s32 120, %v1506_v19 }
  0x1d   : > { %v224_v61 = vadd.f32 %v223_v52, %v214_v56  ;;  %v292_v16 = vsel %vm291_vm12, %v286_v9, 0.0  ;;  %v283_v21 = vmul.f32 %v282_v11, %v282_v11  ;;  %vm311_vm14 = vcmp.gt.s32.totalorder %v309_v10, %v1509_v20 }
  0x1e   : > { %v302_v23 = vsel %vm301_vm13, %v296_v14, 0.0  ;;  %v293_v25 = vmul.f32 %v292_v16, %v292_v16  ;;  %vm321_vm15 = vcmp.gt.s32.totalorder %v319_v15, %v1509_v20  ;;  %v312_v27 = vsel %vm311_vm14, %v306_v22, 0.0  ;;  %v1294_v15 = vld [vmem:[%s1571_s14 + $0x10] sm:$0xff]  ;;  %v385_v16 = vld [vmem:[%s1571_s14] sm:$0xff]  ;;  %v1297_v22 = vld [vmem:[%s1571_s14 + $0x28] sm:$0xff] }
  0x1f   : > { %v234_v2 = vadd.f32 %v233_v57, %v224_v61  ;;  %v303_v29 = vmul.f32 %v302_v23, %v302_v23  ;;  %v324_v30 = vsel %vm321_vm15, %v316_v26, 0.0  ;;  %v313_v32 = vmul.f32 %v312_v27, %v312_v27  ;;  %v1296_v23 = vld [vmem:[%s1571_s14 + $0x20] sm:$0xff] }
  0x20   : > { %v325_v34 = vmul.f32 %v324_v30, %v324_v30  ;;  %v347_v44 = vand.u32 2147483647, %v1547_v43  ;;  %vm372_vm5 = vcmp.lt.f32.partialorder %v1547_v43, 0.0  ;;  %v1569_v19 = vmov %v1506_v19 }
  0x21   : > { %v244_v7 = vadd.f32 %v243_v62, %v234_v2  ;;  %v421_v9 = vadd.s32 16, %v1569_v19  ;;  %v439_v10 = vadd.s32 24, %v1569_v19  ;;  %v403_v11 = vadd.s32 8, %v1569_v19 }
  0x22   : > { %v348_v49 = vmax.f32 %v347_v44, 0.0  ;;  %v1579_v14 = vand.u32 127, %v168_v17  ;;  %vm388_vm7 = vcmp.gt.s32.totalorder %v1569_v19, %v1509_v20  ;;  %v511_v17 = vadd.s32 56, %v1569_v19 }
  0x23   : > { %v254_v12 = vadd.f32 %v253_v3, %v244_v7  ;;  %vm423_vm6 = vcmp.gt.s32.totalorder %v421_v9, %v1509_v20  ;;  %vm441_vm8 = vcmp.gt.s32.totalorder %v439_v10, %v1509_v20  ;;  %vm405_vm9 = vcmp.gt.s32.totalorder %v403_v11, %v1509_v20 }
  0x24   : > { %v389_v26 = vsel %vm388_vm7, %v385_v16, 0.0  ;;  %vm1598_vm12 = vcmp.eq.s32.totalorder %v1579_v14, %v1509_v20  ;;  %vm513_vm13 = vcmp.gt.s32.totalorder %v511_v17, %v1509_v20  ;;  %v655_v9 = vadd.s32 120, %v1569_v19 }
  0x25   : > { %v264_v18 = vadd.f32 %v263_v8, %v254_v12  ;;  %v475_v12 = vadd.s32 40, %v1569_v19 }
  0x26   : > { %vm658_vm7 = vcmp.lt.s32.totalorder %v655_v9, 128 }
  0x27   : > { %v274_v24 = vadd.f32 %v273_v13, %v264_v18  ;;  %v457_v13 = vadd.s32 32, %v1569_v19  ;;  %v1295_v18 = vld [vmem:[%s1571_s14 + $0x18] sm:$0xff]  ;;  %vm477_vm10 = vcmp.gt.s32.totalorder %v475_v12, %v1509_v20 }
  0x28   : > { %v442_v27 = vsel %vm441_vm8, %v1295_v18, 0.0  ;;  %v478_v30 = vsel %vm477_vm10, %v1297_v22, 0.0  ;;  %v1305_v18 = vld [vmem:[%s1571_s14 + $0x68] sm:$0xff]  ;;  %v637_v22 = vadd.s32 112, %v1569_v19 }
  0x29   : > { %v284_v28 = vadd.f32 %v283_v21, %v274_v24  ;;  %v1293_v21 = vld [vmem:[%s1571_s14 + $0x8] sm:$0xff]  ;;  %vm459_vm11 = vcmp.gt.s32.totalorder %v457_v13, %v1509_v20  ;;  %v493_v24 = vadd.s32 48, %v1569_v19 }
  0x2b   : > { %v294_v31 = vadd.f32 %v293_v25, %v284_v28  ;;  %v424_v25 = vsel %vm423_vm6, %v1294_v15, 0.0  ;;  %v406_v28 = vsel %vm405_vm9, %v1293_v21, 0.0  ;;  %vm495_vm14 = vcmp.gt.s32.totalorder %v493_v24, %v1509_v20  ;;  %v1304_v21 = vld [vmem:[%s1571_s14 + $0x60] sm:$0xff] }
  0x2c   : > { %vm657_vm6 = vcmp.gt.s32.totalorder %v655_v9, %v1509_v20  ;;  %vm639_vm9 = vcmp.gt.s32.totalorder %v637_v22, %v1509_v20  ;;  %v1311_v22 = vld [vmem:[%s1730_s16 + $0x10] sm:$0xff] }
  0x2d   : > { %v304_v33 = vadd.f32 %v303_v29, %v294_v31  ;;  %v460_v31 = vsel %vm459_vm11, %v1296_v23, 0.0  ;;  %vm1683_vm8 = vmand %vm657_vm6, %vm658_vm7  ;;  %vm1824_vm6 = vcmp.gt.s32.totalorder %v1579_v14, %v1509_v20 }
  0x2f   : > { %v314_v35 = vadd.f32 %v313_v32, %v304_v33  ;;  %v547_v33 = vadd.s32 72, %v1569_v19 }
  0x31   : > { %v326_v36 = vadd.f32 %v325_v34, %v314_v35  ;;  %v529_v34 = vadd.s32 64, %v1569_v19  ;;  %vm549_vm15 = vcmp.gt.s32.totalorder %v547_v33, %v1509_v20 }
  0x33   : > { %v327_v37 = vrot.slane %v326_v36, 4 }
  0x35   : > { %v328_v38 = vadd.f32 %v327_v37, %v326_v36 }
  0x37   : > { %v329_v39 = vrot.slane %v328_v38, 2 }
  0x39   : > { %v330_v40 = vadd.f32 %v329_v39, %v328_v38  ;;  %v1299_v39 = vld [vmem:[%s1571_s14 + $0x38] sm:$0xff] }
  0x3b   : > { %v331_v41 = vrot.slane %v330_v40, 1 }
  0x3d   : > { %v1543_v42 = vadd.f32 %v331_v41, %v330_v40  ;;  %v1298_v40 = vld [vmem:[%s1571_s14 + $0x30] sm:$0xff] }
  0x3f   : > { %1394 = vrsqrt.f32 %v1543_v42  ;;  %vm335_vm0 = vcmp.eq.f32.partialorder %v1543_v42, inf  ;;  %v338_v46 = vand.u32 2147483648, %v1543_v42  ;;  %vm337_vm1 = vcmp.eq.f32.partialorder %v1543_v42, 0.0 }
  0x4c   : > { %v1395_v45 = vpop.eup %1394 }
  0x4d   : > { %v334_v47 = vmul.f32 %v1395_v45, %v1543_v42 }
  0x4f   : > { %v336_v48 = vsel %vm335_vm0, %v1543_v42, %v334_v47  ;;  %vm531_vm0 = vcmp.gt.s32.totalorder %v529_v34, %v1509_v20  ;;  %v1306_v34 = vld [vmem:[%s1571_s14 + $0x70] sm:$0xff] }
  0x50   : > { %v339_v50 = vsel %vm337_vm1, %v338_v46, %v336_v48 }
  0x51   : > { %v349_v51 = vand.u32 2147483647, %v339_v50 }
  0x53   : > { %v350_v52 = vmax.f32 %v348_v49, %v349_v51 }
  0x55   : > { %1396 = vrcp.f32 %v350_v52  ;;  %vm362_vm4 = vcmp.eq.f32.partialorder %v350_v52, 0.0 }
  0x62   : > { %v1397_v53 = vpop.eup %1396 }
  0x63   : > { %v352_v54 = vmul.f32 %v1397_v53, %v347_v44  ;;  %v355_v55 = vmul.f32 0.0, %v1397_v53  ;;  %v359_v56 = vmul.f32 %v1397_v53, %v349_v51  ;;  %v514_v51 = vsel %vm513_vm13, %v1299_v39, 0.0  ;;  %v1301_v53 = vld [vmem:[%s1571_s14 + $0x48] sm:$0xff] }
  0x65   : > { %v353_v57 = vmul.f32 %v352_v54, %v352_v54  ;;  %v356_v58 = vmul.f32 %v355_v55, %v355_v55  ;;  %v360_v59 = vmul.f32 %v359_v56, %v359_v56  ;;  %v1300_v54 = vld [vmem:[%s1571_s14 + $0x40] sm:$0xff]  ;;  %v583_v55 = vadd.s32 88, %v1569_v19 }
  0x66   : > { %v565_v56 = vadd.s32 80, %v1569_v19 }
  0x67   : > { %v357_v60 = vadd.f32 %v356_v58, %v353_v57 }
  0x69   : > { %v361_v61 = vadd.f32 %v360_v59, %v357_v60 }
  0x6b   : > { %1398 = vrsqrt.f32 %v361_v61  ;;  %vm365_vm2 = vcmp.eq.f32.partialorder %v361_v61, inf  ;;  %v368_v63 = vand.u32 2147483648, %v361_v61  ;;  %vm367_vm3 = vcmp.eq.f32.partialorder %v361_v61, 0.0 }
  0x78   : > { %v1399_v62 = vpop.eup %1398 }
  0x79   : > { %v364_v0 = vmul.f32 %v1399_v62, %v361_v61 }
  0x7b   : > { %v366_v1 = vsel %vm365_vm2, %v361_v61, %v364_v0  ;;  %v532_v0 = vsel %vm531_vm0, %v1300_v54, 0.0  ;;  %vm585_vm2 = vcmp.gt.s32.totalorder %v583_v55, %v1509_v20 }
  0x7c   : > { %v369_v2 = vsel %vm367_vm3, %v368_v63, %v366_v1  ;;  %v550_v63 = vsel %vm549_vm15, %v1301_v53, 0.0  ;;  %v1303_v1 = vld [vmem:[%s1571_s14 + $0x58] sm:$0xff]  ;;  %vm567_vm3 = vcmp.gt.s32.totalorder %v565_v56, %v1509_v20 }
  0x7d   : > { %v370_v3 = vmul.f32 %v369_v2, %v350_v52  ;;  %v496_v52 = vsel %vm495_vm14, %v1298_v40, 0.0  ;;  %v1302_v2 = vld [vmem:[%s1571_s14 + $0x50] sm:$0xff]  ;;  %v586_v15 = vsel %vm585_vm2, %v1303_v1, 0.0 }
  0x7e   : > { %v568_v16 = vsel %vm567_vm3, %v1302_v2, 0.0 }
  0x7f   : > { %v371_v4 = vsel %vm362_vm4, 0.0, %v370_v3  ;;  %v619_v3 = vadd.s32 104, %v1569_v19 }
  0x80   : > { %v373_v5 = vxor.u32 2147483648, %v371_v4 }
  0x81   : > { %vm621_vm4 = vcmp.gt.s32.totalorder %v619_v3, %v1509_v20 }
  0x82   : > { %v1558_v6 = vsel %vm372_vm5, %v371_v4, %v373_v5  ;;  %v601_v4 = vadd.s32 96, %v1569_v19  ;;  %v693_v19 = vmov %v1506_v19 }
  0x83   : > { %v1564_v7 = vsel %vm337_vm1, %v1547_v43, %v1558_v6 }
  0x84   : > { %v380_v8 = vsub.f32 %v1547_v43, %v1564_v7  ;;  %vm603_vm5 = vcmp.gt.s32.totalorder %v601_v4, %v1509_v20 }
  0x86   : > { %1400 = vrcp.f32 %v380_v8 }
  0x87   : > { %1402 = vrcp.f32 %v1558_v6 }
  0x93   : > { %v1602_v32 = vpop.eup %1400 }
  0x94   : > { %v426_v35 = vmul.f32 %v1602_v32, %v424_v25  ;;  %v391_v36 = vmul.f32 %v1602_v32, %v389_v26  ;;  %v444_v37 = vmul.f32 %v1602_v32, %v442_v27  ;;  %v408_v38 = vmul.f32 %v1602_v32, %v406_v28 }
  0x95   : > { %v480_v41 = vmul.f32 %v1602_v32, %v478_v30  ;;  %v462_v44 = vmul.f32 %v1602_v32, %v460_v31  ;;  %v516_v61 = vmul.f32 %v1602_v32, %v514_v51  ;;  %v498_v62 = vmul.f32 %v1602_v32, %v496_v52  ;;  %v1307_v31 = vld [vmem:[%s1571_s14 + $0x78] sm:$0xff] }
  0x96   : > { %v427_v45 = vsel %vm337_vm1, 0.0, %v426_v35  ;;  %v392_v46 = vsel %vm337_vm1, 0.0, %v391_v36  ;;  %v445_v47 = vsel %vm337_vm1, 0.0, %v444_v37  ;;  %v409_v48 = vsel %vm337_vm1, 0.0, %v408_v38 }
  0x97   : > { %v432_v49 = vsel %vm1598_vm12, %v427_v45, 0.0  ;;  %v397_v50 = vsel %vm1598_vm12, %v392_v46, 0.0  ;;  %v450_v57 = vsel %vm1598_vm12, %v445_v47, 0.0  ;;  %v414_v58 = vsel %vm1598_vm12, %v409_v48, 0.0  ;;  %v1403_v48 = vpop.eup %1402 }
  0x98   : > { %433 = vadd.xlane.f32.xlu1 %v432_v49  ;;  %398 = vadd.xlane.f32.xlu0 %v397_v50  ;;  %v481_v59 = vsel %vm337_vm1, 0.0, %v480_v41  ;;  %v463_v60 = vsel %vm337_vm1, 0.0, %v462_v44  ;;  %v517_v10 = vsel %vm337_vm1, 0.0, %v516_v61  ;;  %v499_v11 = vsel %vm337_vm1, 0.0, %v498_v62 }
  0x99   : > { %v486_v5 = vsel %vm1598_vm12, %v481_v59, 0.0  ;;  %v468_v8 = vsel %vm1598_vm12, %v463_v60, 0.0  ;;  %v552_v12 = vmul.f32 %v1602_v32, %v550_v63  ;;  %v534_v13 = vmul.f32 %v1602_v32, %v532_v0 }
  0x9a   : > { %v522_v23 = vsel %vm1598_vm12, %v517_v10, 0.0  ;;  %v504_v17 = vsel %vm1598_vm12, %v499_v11, 0.0  ;;  %v588_v26 = vmul.f32 %v1602_v32, %v586_v15  ;;  %v570_v27 = vmul.f32 %v1602_v32, %v568_v16 }
  0x9b   : > { %v553_v24 = vsel %vm337_vm1, 0.0, %v552_v12  ;;  %v535_v25 = vsel %vm337_vm1, 0.0, %v534_v13  ;;  %v622_v28 = vsel %vm621_vm4, %v1305_v18, 0.0  ;;  %v604_v30 = vsel %vm603_vm5, %v1304_v21, 0.0  ;;  %v686_v13 = vld [vmem:[#allocation2] ss:$0 sm:$0xff] }
  0x9c   : > { %451 = vadd.xlane.f32.xlu1 %v450_v57  ;;  %415 = vadd.xlane.f32.xlu0 %v414_v58  ;;  %v558_v35 = vsel %vm1598_vm12, %v553_v24, 0.0  ;;  %v540_v36 = vsel %vm1598_vm12, %v535_v25, 0.0  ;;  %v589_v37 = vsel %vm337_vm1, 0.0, %v588_v26  ;;  %v571_v38 = vsel %vm337_vm1, 0.0, %v570_v27  ;;  %v696_v18 = vld [vmem:[%s1730_s16] sm:$0xff]  ;;  %v1309_v21 = vld [vmem:[%s1730_s16 + $0x8] sm:$0xff] }
  0x9d   : > { %v624_v39 = vmul.f32 %v1602_v32, %v622_v28  ;;  %v606_v40 = vmul.f32 %v1602_v32, %v604_v30  ;;  %v660_v41 = vsel %vm1683_vm8, %v1307_v31, 0.0  ;;  %v640_v44 = vsel %vm639_vm9, %v1306_v34, 0.0  ;;  %v1313_v27 = vld [vmem:[%s1730_s16 + $0x18] sm:$0xff]  ;;  %v1315_v34 = vld [vmem:[%s1730_s16 + $0x20] sm:$0xff] }
  0x9e   : > { %v594_v45 = vsel %vm1598_vm12, %v589_v37, 0.0  ;;  %v576_v46 = vsel %vm1598_vm12, %v571_v38, 0.0  ;;  %v375_v47 = vsub.f32 %v1558_v6, %v1547_v43  ;;  %v662_v51 = vmul.f32 %v1602_v32, %v660_v41  ;;  %v1317_v37 = vld [vmem:[%s1730_s16 + $0x28] sm:$0xff] }
  0x9f   : > { %v625_v49 = vsel %vm337_vm1, 0.0, %v624_v39  ;;  %v607_v50 = vsel %vm337_vm1, 0.0, %v606_v40  ;;  %v642_v52 = vmul.f32 %v1602_v32, %v640_v44  ;;  %v1435_v12 = vmov 1.0   ;;  %v1319_v44 = vld [vmem:[%s1730_s16 + $0x30] sm:$0xff] }
  0xa0   : > { %487 = vadd.xlane.f32.xlu1 %v486_v5  ;;  %469 = vadd.xlane.f32.xlu0 %v468_v8  ;;  %v630_v53 = vsel %vm1598_vm12, %v625_v49, 0.0  ;;  %v612_v54 = vsel %vm1598_vm12, %v607_v50, 0.0  ;;  %v663_v43 = vsel %vm337_vm1, 0.0, %v662_v51  ;;  %v377_v55 = vmul.f32 %v1403_v48, %v375_v47  ;;  %v1321_v48 = vld [vmem:[%s1730_s16 + $0x38] sm:$0xff] }
  0xa1   : > { %v643_v6 = vsel %vm337_vm1, 0.0, %v642_v52  ;;  %v668_v32 = vsel %vm1598_vm12, %v663_v43, 0.0  ;;  %v1323_v52 = vld [vmem:[%s1730_s16 + $0x40] sm:$0xff] }
  0xa2   : > { %v648_v56 = vsel %vm1598_vm12, %v643_v6, 0.0  ;;  %v379_v57 = vsel %vm337_vm1, 0.0, %v377_v55  ;;  %v1325_v6 = vld [vmem:[%s1730_s16 + $0x48] sm:$0xff] }
  0xa3   : > { %v679_v58 = vsel %vm1598_vm12, %v379_v57, 0.0  ;;  %v1327_v57 = vld [vmem:[%s1730_s16 + $0x50] sm:$0xff] }
  0xa4   : > { %523 = vadd.xlane.f32.xlu1 %v522_v23  ;;  %505 = vadd.xlane.f32.xlu0 %v504_v17 }
  0xa8   : > { %559 = vadd.xlane.f32.xlu1 %v558_v35  ;;  %541 = vadd.xlane.f32.xlu0 %v540_v36 }
  0xac   : > { %595 = vadd.xlane.f32.xlu1 %v594_v45  ;;  %577 = vadd.xlane.f32.xlu0 %v576_v46 }
  0xb0   : > { %631 = vadd.xlane.f32.xlu1 %v630_v53  ;;  %613 = vadd.xlane.f32.xlu0 %v612_v54 }
  0xb4   : > { %669 = vadd.xlane.f32.xlu1 %v668_v32  ;;  %649 = vadd.xlane.f32.xlu0 %v648_v56 }
  0xb8   : > { %680 = vadd.xlane.f32.xlu0 %v679_v58 }
 0x121   : > { %v434_v59 = vpop.xlane.xlu1 %433  ;;  %v399_v60 = vpop.xlane.xlu0 %398 }
 0x122   : > { %436 = vst [vmem:[#allocation5 + $0x10] sm:$0xff] %v434_v59  ;;  %400 = vst [vmem:[#allocation5] sm:$0xff] %v399_v60 }
 0x125   : > { %v452_v61 = vpop.xlane.xlu1 %451  ;;  %v416_v62 = vpop.xlane.xlu0 %415 }
 0x126   : > { %454 = vst [vmem:[#allocation5 + $0x18] sm:$0xff] %v452_v61  ;;  %418 = vst [vmem:[#allocation5 + $0x8] sm:$0xff] %v416_v62  ;;  %v1329_v61 = vld [vmem:[%s1730_s16 + $0x58] sm:$0xff] }
 0x129   : > { %v488_v63 = vpop.xlane.xlu1 %487  ;;  %v470_v0 = vpop.xlane.xlu0 %469 }
 0x12a   : > { %490 = vst [vmem:[#allocation5 + $0x28] sm:$0xff] %v488_v63  ;;  %472 = vst [vmem:[#allocation5 + $0x20] sm:$0xff] %v470_v0 }
 0x12d   : > { %v524_v42 = vpop.xlane.xlu1 %523  ;;  %v506_v1 = vpop.xlane.xlu0 %505 }
 0x12e   : > { %526 = vst [vmem:[#allocation5 + $0x38] sm:$0xff] %v524_v42  ;;  %508 = vst [vmem:[#allocation5 + $0x30] sm:$0xff] %v506_v1  ;;  %v1331_v42 = vld [vmem:[%s1730_s16 + $0x60] sm:$0xff] }
 0x131   : > { %v560_v2 = vpop.xlane.xlu1 %559  ;;  %v542_v3 = vpop.xlane.xlu0 %541 }
 0x132   : > { %562 = vst [vmem:[#allocation5 + $0x48] sm:$0xff] %v560_v2  ;;  %544 = vst [vmem:[#allocation5 + $0x40] sm:$0xff] %v542_v3 }
 0x135   : > { %v596_v4 = vpop.xlane.xlu1 %595  ;;  %v578_v5 = vpop.xlane.xlu0 %577 }
 0x136   : > { %598 = vst [vmem:[#allocation5 + $0x58] sm:$0xff] %v596_v4  ;;  %580 = vst [vmem:[#allocation5 + $0x50] sm:$0xff] %v578_v5  ;;  %v1333_v4 = vld [vmem:[%s1730_s16 + $0x68] sm:$0xff] }
 0x139   : > { %v632_v8 = vpop.xlane.xlu1 %631  ;;  %v614_v9 = vpop.xlane.xlu0 %613 }
 0x13a   : > { %634 = vst [vmem:[#allocation5 + $0x68] sm:$0xff] %v632_v8  ;;  %616 = vst [vmem:[#allocation5 + $0x60] sm:$0xff] %v614_v9  ;;  %v796_v9 = vadd.s32 120, %v693_v19  ;;  %v815_v19 = vmov %v1506_v19 }
 0x13b   : > { %vm832_vm10 = vcmp.ge.s32.totalorder %v815_v19, %v1509_v20  ;;  %v1840_v14 = vadd.s32 120, %v815_v19 }
 0x13c   : > { %vm802_vm1 = vcmp.lt.s32.totalorder %v796_v9, 128  ;;  %vm1782_vm15 = vmand %vm1598_vm12, %vm832_vm10 }
 0x13d   : > { %v670_v10 = vpop.xlane.xlu1 %669  ;;  %v650_v11 = vpop.xlane.xlu0 %649 }
 0x13e   : > { %672 = vst [vmem:[#allocation5 + $0x78] sm:$0xff] %v670_v10  ;;  %652 = vst [vmem:[#allocation5 + $0x70] sm:$0xff] %v650_v11  ;;  %v1337_v11 = vld [vmem:[%s1730_s16 + $0x78] sm:$0xff] }
 0x13f   : > { %674 = vst [vmem:[%s673_s15] sm:$0x1] %v1435_v12 }
 0x141   : > { %v1732_v15 = vpop.xlane.xlu0 %680 }
 0x142   : > { %v687_v16 = vsel %vm1598_vm12, %v1732_v15, %v686_v13  ;;  %v1335_v13 = vld [vmem:[%s1730_s16 + $0x70] sm:$0xff]  ;;  %s1778_s16 = smov %s1730_s16 }
 0x143   : > { %688 = vst [vmem:[#allocation2] sm:$0x1] %v687_v16  ;;  %s1151_s18 = scalar_lea.vmem %s1778_s16, %s1432_s13  ;;  %s166_s13 = sadd.s32 1, %s1432_s13  }
 0x144   : > { %p163_p0 = scmp.ge.s32.totalorder %s166_s13, 32  }
 0x145   :  { %s1436_s23 = smov (%p163_p0), [#allocation3]  }
 0x146   : > { %v695_v23 = vld [vmem:[%s1737_s17] sm:$0xff]  ;;  %v1308_v17 = vld [vmem:[%s1737_s17 + $0x8] sm:$0xff]  ;;  %v1310_v24 = vld [vmem:[%s1737_s17 + $0x10] sm:$0xff]  ;;  %s1266_s24 = sshll.u32 (%p163_p0), %s1436_s23, 4  ;;  %s1267_s24 = int_to_ptr.vmem [resolvable:$true] %s1266_s24 }
 0x147   : > { %v697_v25 = vmul.f32 %v696_v18, %v695_v23  ;;  %v703_v26 = vmul.f32 %v1309_v21, %v1308_v17  ;;  %v1312_v28 = vld [vmem:[%s1737_s17 + $0x18] sm:$0xff]  ;;  %v710_v31 = vmul.f32 %v1311_v22, %v1310_v24  ;;  %v1314_v33 = vld [vmem:[%s1737_s17 + $0x20] sm:$0xff]  ;;  %v1316_v40 = vld [vmem:[%s1737_s17 + $0x28] sm:$0xff]  ;;  %s1404_s9 = scalar_lea.vmem (%p163_p0), %s1267_s24, 16  ;;  %s1408_s10 = scalar_lea.vmem (%p163_p0), %s1267_s24, 32 }
 0x148   : > { %v717_v35 = vmul.f32 %v1313_v27, %v1312_v28  ;;  %v724_v39 = vmul.f32 %v1315_v34, %v1314_v33  ;;  %v1318_v41 = vld [vmem:[%s1737_s17 + $0x30] sm:$0xff]  ;;  %v731_v46 = vmul.f32 %v1317_v37, %v1316_v40  ;;  %v1320_v47 = vld [vmem:[%s1737_s17 + $0x38] sm:$0xff]  ;;  %v1322_v51 = vld [vmem:[%s1737_s17 + $0x40] sm:$0xff]  ;;  %v836_v27 = vadd.s32 8, %v815_v19  ;;  %p1405_p1 = scmp.ne.s32.totalorder (%p163_p0), %s1267_s24, %s1404_s9  ;;  %p1409_p2 = scmp.lt.s32.totalorder (%p163_p0), %s1267_s24, %s1267_s24 }
 0x149   : > { %v704_v30 = vadd.f32 %v703_v26, %v697_v25  ;;  %v738_v50 = vmul.f32 %v1319_v44, %v1318_v41  ;;  %v745_v54 = vmul.f32 %v1321_v48, %v1320_v47  ;;  %v1324_v43 = vld [vmem:[%s1737_s17 + $0x48] sm:$0xff]  ;;  %v752_v32 = vmul.f32 %v1323_v52, %v1322_v51  ;;  %v1326_v56 = vld [vmem:[%s1737_s17 + $0x50] sm:$0xff]  ;;  %v1328_v60 = vld [vmem:[%s1737_s17 + $0x58] sm:$0xff]  ;;  %p1410_p3 = scmp.lt.s32.totalorder (%p163_p0), %s1408_s10, %s1404_s9 }
 0x14a   : > { %v759_v59 = vmul.f32 %v1325_v6, %v1324_v43  ;;  %v766_v63 = vmul.f32 %v1327_v57, %v1326_v56  ;;  %v1330_v0 = vld [vmem:[%s1737_s17 + $0x60] sm:$0xff]  ;;  %v773_v2 = vmul.f32 %v1329_v61, %v1328_v60  ;;  %v1332_v3 = vld [vmem:[%s1737_s17 + $0x68] sm:$0xff]  ;;  %v1336_v10 = vld [vmem:[%s1737_s17 + $0x78] sm:$0xff]  ;;  %v899_v34 = vadd.s32 32, %v815_v19 }
 0x14b   : > { %v711_v36 = vadd.f32 %v710_v31, %v704_v30  ;;  %v780_v8 = vmul.f32 %v1331_v42, %v1330_v0  ;;  %v1334_v12 = vld [vmem:[%s1737_s17 + $0x70] sm:$0xff]  ;;  %v787_v18 = vmul.f32 %v1333_v4, %v1332_v3  ;;  %v801_v21 = vmul.f32 %v1337_v11, %v1336_v10  ;;  %s1795_s17 = smov %s1737_s17  ;;  %v1339_v6 = vld [vmem:[%s1778_s16 + $0x8] sm:$0xff]  ;;  %v1372_v44 = vld [vmem:[%s1778_s16 + $0x60] sm:$0xff]  ;;  %p1411_p4 = por (%p163_p0), %p1410_p3, %p1409_p2 }
 0x14c   : > { %v794_v23 = vmul.f32 %v1335_v13, %v1334_v12  ;;  %v857_v30 = vadd.s32 16, %v815_v19  ;;  %v878_v31 = vadd.s32 24, %v815_v19  ;;  %vm853_vm11 = vcmp.ge.s32.totalorder %v836_v27, %v1509_v20  ;;  %v1843_v57 = vld [vmem:[%s1795_s17] sm:$0xff]  ;;  %v1852_v60 = vld [vmem:[%s1778_s16 + $0x28] sm:$0xff]  ;;  %v1341_v0 = vld [vmem:[%s1795_s17 + $0x10] sm:$0xff] }
 0x14d   : > { %v718_v38 = vadd.f32 %v717_v35, %v711_v36  ;;  %v803_v24 = vsel %vm802_vm1, %v801_v21, 0.0  ;;  %v920_v35 = vadd.s32 40, %v815_v19  ;;  %v941_v37 = vadd.s32 48, %v815_v19  ;;  %vm1788_vm0 = vmand %vm1598_vm12, %vm853_vm11  ;;  %v1344_v42 = vld [vmem:[%s1795_s17 + $0x18] sm:$0xff]  ;;  %p1412_p5 = pnand (%p163_p0), %p1411_p4, %p1405_p1 }
 0x14e   : > { %vm874_vm13 = vcmp.ge.s32.totalorder %v857_v30, %v1509_v20  ;;  %vm895_vm14 = vcmp.ge.s32.totalorder %v878_v31, %v1509_v20  ;;  %vm916_vm2 = vcmp.ge.s32.totalorder %v899_v34, %v1509_v20  ;;  %v1803_v47 = vadd.s32 80, %v815_v19  ;;  %v1894_v3 = vld [vmem:[%s1795_s17 + $0x38] sm:$0xff] }
 0x14f   : > { %v725_v45 = vadd.f32 %v724_v39, %v718_v38  ;;  %v962_v38 = vadd.s32 56, %v815_v19  ;;  %v983_v39 = vadd.s32 64, %v815_v19  ;;  %vm937_vm3 = vcmp.ge.s32.totalorder %v920_v35, %v1509_v20  ;;  %vm1799_vm4 = vmand %vm1598_vm12, %vm874_vm13 }
 0x150   : > { %v1805_v48 = vadd.s32 88, %v815_v19  ;;  %vm1815_vm5 = vmand %vm1598_vm12, %vm895_vm14  ;;  %vm958_vm8 = vcmp.ge.s32.totalorder %v941_v37, %v1509_v20  ;;  %vm1042_vm13 = vcmp.ge.s32.totalorder %v1803_v47, %v1509_v20  ;;  %v1363_v37 = vld [vmem:[%s1778_s16 + $0x48] sm:$0xff] }
 0x151   : > { %v732_v49 = vadd.f32 %v731_v46, %v725_v45  ;;  %v1004_v45 = vadd.s32 72, %v815_v19  ;;  %vm1835_vm7 = vmand %vm1598_vm12, %vm916_vm2  ;;  %vm979_vm1 = vcmp.ge.s32.totalorder %v962_v38, %v1509_v20  ;;  %vm1000_vm10 = vcmp.ge.s32.totalorder %v983_v39, %v1509_v20  ;;  %v1366_v38 = vld [vmem:[%s1778_s16 + $0x50] sm:$0xff]  ;;  %v1375_v46 = vld [vmem:[%s1778_s16 + $0x68] sm:$0xff] }
 0x152   : > { %vm1858_vm9 = vmand %vm1598_vm12, %vm937_vm3  ;;  %vm1063_vm14 = vcmp.ge.s32.totalorder %v1805_v48, %v1509_v20 }
 0x153   : > { %v739_v53 = vadd.f32 %v738_v50, %v732_v49  ;;  %v1807_v49 = vadd.s32 96, %v815_v19  ;;  %v1809_v50 = vadd.s32 104, %v815_v19  ;;  %vm1908_vm3 = vmand %vm1598_vm12, %vm958_vm8 }
 0x154   : > { %vm1926_vm8 = vmand %vm1598_vm12, %vm979_vm1  ;;  %vm2204_vm1 = vcmp.ge.s32.totalorder %v1004_v45, %v1509_v20 }
 0x155   : > { %v746_v55 = vadd.f32 %v745_v54, %v739_v53  ;;  %v1819_v53 = vadd.s32 112, %v815_v19  ;;  %v822_v54 = vld [vmem:[%s1778_s16] sm:$0xff]  ;;  %v1863_v19 = vld [vmem:[%s1778_s16 + $0x30] sm:$0xff]  ;;  %vm1934_vm11 = vmand %vm1598_vm12, %vm1000_vm10 }
 0x156   : > { %vm1946_vm2 = vmand %vm1598_vm12, %vm2204_vm1 }
 0x157   : > { %v753_v58 = vadd.f32 %v752_v32, %v746_v55  ;;  %v1342_v55 = vld [vmem:[%s1778_s16 + $0x10] sm:$0xff]  ;;  %v1345_v32 = vld [vmem:[%s1778_s16 + $0x18] sm:$0xff]  ;;  %vm1966_vm10 = vmand %vm1598_vm12, %vm1042_vm13 }
 0x159   : > { %v760_v62 = vadd.f32 %v759_v59, %v753_v58  ;;  %v1846_v58 = vld [vmem:[%s1795_s17 + $0x8] sm:$0xff]  ;;  %v1849_v59 = vld [vmem:[%s1778_s16 + $0x20] sm:$0xff] }
 0x15b   : > { %v767_v1 = vadd.f32 %v766_v63, %v760_v62  ;;  %v1866_v62 = vld [vmem:[%s1778_s16 + $0x38] sm:$0xff] }
 0x15d   : > { %v774_v5 = vadd.f32 %v773_v2, %v767_v1  ;;  %v1877_v1 = vld [vmem:[%s1795_s17 + $0x20] sm:$0xff]  ;;  %v1888_v2 = vld [vmem:[%s1795_s17 + $0x28] sm:$0xff] }
 0x15f   : > { %v781_v16 = vadd.f32 %v780_v8, %v774_v5 }
 0x161   : > { %v788_v22 = vadd.f32 %v787_v18, %v781_v16 }
 0x163   : > { %v795_v17 = vadd.f32 %v794_v23, %v788_v22 }
 0x165   : > { %v804_v25 = vadd.f32 %v803_v24, %v795_v17 }
 0x167   : > { %v805_v26 = vrot.slane %v804_v25, 4 }
 0x169   : > { %v806_v28 = vadd.f32 %v805_v26, %v804_v25 }
 0x16b   : > { %v807_v33 = vrot.slane %v806_v28, 2 }
 0x16d   : > { %v808_v36 = vadd.f32 %v807_v33, %v806_v28 }
 0x16f   : > { %v809_v40 = vrot.slane %v808_v36, 1 }
 0x171   : > { %v810_v51 = vadd.f32 %v809_v40, %v808_v36  ;;  %v1360_v36 = vld [vmem:[%s1778_s16 + $0x40] sm:$0xff]  ;;  %v1369_v40 = vld [vmem:[%s1778_s16 + $0x58] sm:$0xff] }
 0x173   : > { %v1872_v63 = vmul.f32 %v810_v51, %v1732_v15  ;;  %v1891_v15 = vld [vmem:[%s1795_s17 + $0x30] sm:$0xff] }
 0x175   : > { %v821_v4 = vmul.f32 %v1843_v57, %v1872_v63  ;;  %v841_v5 = vmul.f32 %v1846_v58, %v1872_v63  ;;  %v862_v8 = vmul.f32 %v1341_v0, %v1872_v63  ;;  %v883_v9 = vmul.f32 %v1344_v42, %v1872_v63 }
 0x176   : > { %v904_v11 = vmul.f32 %v1877_v1, %v1872_v63  ;;  %v925_v12 = vmul.f32 %v1888_v2, %v1872_v63  ;;  %v946_v13 = vmul.f32 %v1891_v15, %v1872_v63  ;;  %v967_v16 = vmul.f32 %v1894_v3, %v1872_v63 }
 0x177   : > { %v825_v21 = vsub.f32 %v822_v54, %v821_v4  ;;  %v846_v22 = vsub.f32 %v1339_v6, %v841_v5  ;;  %v867_v23 = vsub.f32 %v1342_v55, %v862_v8  ;;  %v888_v17 = vsub.f32 %v1345_v32, %v883_v9  ;;  %v1368_v4 = vld [vmem:[%s1795_s17 + $0x58] sm:$0xff]  ;;  %v1371_v5 = vld [vmem:[%s1795_s17 + $0x60] sm:$0xff]  ;;  %v1377_v9 = vld [vmem:[%s1795_s17 + $0x70] sm:$0xff] }
 0x178   : > { %v909_v25 = vsub.f32 %v1849_v59, %v904_v11  ;;  %v930_v26 = vsub.f32 %v1852_v60, %v925_v12  ;;  %v951_v27 = vsub.f32 %v1863_v19, %v946_v13  ;;  %v972_v28 = vsub.f32 %v1866_v62, %v967_v16  ;;  %v1380_v11 = vld [vmem:[%s1795_s17 + $0x78] sm:$0xff] }
 0x179   : > { %v826_v31 = vsel %vm1824_vm6, %v825_v21, %v822_v54  ;;  %v847_v33 = vsel %vm1824_vm6, %v846_v22, %v1339_v6  ;;  %v868_v34 = vsel %vm1824_vm6, %v867_v23, %v1342_v55  ;;  %v889_v35 = vsel %vm1824_vm6, %v888_v17, %v1345_v32  ;;  %v1359_v6 = vld [vmem:[%s1795_s17 + $0x40] sm:$0xff]  ;;  %v1362_v55 = vld [vmem:[%s1795_s17 + $0x48] sm:$0xff]  ;;  %v1378_v32 = vld [vmem:[%s1778_s16 + $0x70] sm:$0xff] }
 0x17a   : > { %v834_v45 = vsel %vm1782_vm15, %v1843_v57, %v826_v31  ;;  %v855_v51 = vsel %vm1788_vm0, %v1846_v58, %v847_v33  ;;  %v876_v47 = vsel %vm1799_vm4, %v1341_v0, %v868_v34  ;;  %v897_v54 = vsel %vm1815_vm5, %v1344_v42, %v889_v35  ;;  %vm1988_vm15 = vmand %vm1598_vm12, %vm1063_vm14  ;;  %v1381_v57 = vld [vmem:[%s1778_s16 + $0x78] sm:$0xff]  ;;  %v1365_v42 = vld [vmem:[%s1795_s17 + $0x50] sm:$0xff] }
 0x17b   : > { %835 = vst [vmem:[%s1778_s16] sm:$0xff] %v834_v45  ;;  %1340 = vst [vmem:[%s1778_s16 + $0x8] sm:$0xff] %v855_v51  ;;  %v910_v48 = vsel %vm1824_vm6, %v909_v25, %v1849_v59  ;;  %v931_v52 = vsel %vm1824_vm6, %v930_v26, %v1852_v60  ;;  %v952_v58 = vsel %vm1824_vm6, %v951_v27, %v1863_v19  ;;  %v1163_v51 = vld [vmem:[#allocation2] sm:$0x1] (%p163_p0) }
 0x17c   : > { %1343 = vst [vmem:[%s1778_s16 + $0x10] sm:$0xff] %v876_v47  ;;  %1346 = vst [vmem:[%s1778_s16 + $0x18] sm:$0xff] %v897_v54  ;;  %v973_v0 = vsel %vm1824_vm6, %v972_v28, %v1866_v62  ;;  %v918_v59 = vsel %vm1835_vm7, %v1877_v1, %v910_v48  ;;  %v939_v60 = vsel %vm1858_vm9, %v1888_v2, %v931_v52  ;;  %v1374_v62 = vld [vmem:[%s1795_s17 + $0x68] sm:$0xff] }
 0x17d   : > { %v960_v8 = vsel %vm1908_vm3, %v1891_v15, %v952_v58  ;;  %v981_v19 = vsel %vm1926_vm8, %v1894_v3, %v973_v0  ;;  %1349 = vst [vmem:[%s1778_s16 + $0x20] sm:$0xff] %v918_v59  ;;  %1352 = vst [vmem:[%s1778_s16 + $0x28] sm:$0xff] %v939_v60  ;;  %v988_v56 = vmul.f32 %v1359_v6, %v1872_v63 }
 0x17e   : > { %1355 = vst [vmem:[%s1778_s16 + $0x30] sm:$0xff] %v960_v8  ;;  %1358 = vst [vmem:[%s1778_s16 + $0x38] sm:$0xff] %v981_v19  ;;  %v1009_v61 = vmul.f32 %v1362_v55, %v1872_v63  ;;  %v1030_v1 = vmul.f32 %v1365_v42, %v1872_v63  ;;  %v1051_v2 = vmul.f32 %v1368_v4, %v1872_v63 }
 0x17f   : > { %vm2211_vm0 = vcmp.ge.s32.totalorder %v1807_v49, %v1509_v20  ;;  %v1072_v3 = vmul.f32 %v1371_v5, %v1872_v63  ;;  %v1093_v10 = vmul.f32 %v1374_v62, %v1872_v63  ;;  %v1114_v12 = vmul.f32 %v1377_v9, %v1872_v63  ;;  %1166 = vst [vmem:[#allocation3] sm:$0x1] (%p163_p0), %v1163_v51 }
 0x180   : > { %vm2043_vm4 = vmand %vm1598_vm12, %vm2211_vm0  ;;  %v1135_v13 = vmul.f32 %v1380_v11, %v1872_v63  ;;  %vm2214_vm5 = vcmp.ge.s32.totalorder %v1809_v50, %v1509_v20  ;;  %v993_v16 = vsub.f32 %v1360_v36, %v988_v56  ;;  %v1014_v18 = vsub.f32 %v1363_v37, %v1009_v61 }
 0x181   : > { %vm2056_vm7 = vmand %vm1598_vm12, %vm2214_vm5  ;;  %v1035_v21 = vsub.f32 %v1366_v38, %v1030_v1  ;;  %v1056_v22 = vsub.f32 %v1369_v40, %v1051_v2  ;;  %vm2217_vm9 = vcmp.ge.s32.totalorder %v1819_v53, %v1509_v20  ;;  %v1077_v50 = vsub.f32 %v1372_v44, %v1072_v3 }
 0x182   : > { %vm2065_vm13 = vmand %vm1598_vm12, %vm2217_vm9  ;;  %v1098_v23 = vsub.f32 %v1375_v46, %v1093_v10  ;;  %v1119_v17 = vsub.f32 %v1378_v32, %v1114_v12  ;;  %v1140_v25 = vsub.f32 %v1381_v57, %v1135_v13  ;;  %vm2220_vm14 = vcmp.ge.s32.totalorder %v1840_v14, %v1509_v20 }
 0x183   : > { %vm2074_vm3 = vmand %vm1598_vm12, %vm2220_vm14  ;;  %v994_v26 = vsel %vm1824_vm6, %v993_v16, %v1360_v36  ;;  %v1015_v27 = vsel %vm1824_vm6, %v1014_v18, %v1363_v37  ;;  %v1036_v28 = vsel %vm1824_vm6, %v1035_v21, %v1366_v38  ;;  %v1057_v31 = vsel %vm1824_vm6, %v1056_v22, %v1369_v40 }
 0x184   : > { %v1002_v20 = vsel %vm1934_vm11, %v1359_v6, %v994_v26  ;;  %v1023_v14 = vsel %vm1946_vm2, %v1362_v55, %v1015_v27  ;;  %v1044_v33 = vsel %vm1966_vm10, %v1365_v42, %v1036_v28  ;;  %v1065_v34 = vsel %vm1988_vm15, %v1368_v4, %v1057_v31 }
 0x185   : > { %1361 = vst [vmem:[%s1778_s16 + $0x40] sm:$0xff] %v1002_v20  ;;  %1364 = vst [vmem:[%s1778_s16 + $0x48] sm:$0xff] %v1023_v14  ;;  %v1078_v24 = vsel %vm1824_vm6, %v1077_v50, %v1372_v44  ;;  %v1099_v30 = vsel %vm1824_vm6, %v1098_v23, %v1375_v46  ;;  %v1120_v35 = vsel %vm1824_vm6, %v1119_v17, %v1378_v32 }
 0x186   : > { %1367 = vst [vmem:[%s1778_s16 + $0x50] sm:$0xff] %v1044_v33  ;;  %1370 = vst [vmem:[%s1778_s16 + $0x58] sm:$0xff] %v1065_v34  ;;  %v1141_v36 = vsel %vm1824_vm6, %v1140_v25, %v1381_v57  ;;  %v1086_v37 = vsel %vm2043_vm4, %v1371_v5, %v1078_v24  ;;  %v1107_v38 = vsel %vm2056_vm7, %v1374_v62, %v1099_v30 }
 0x187   : > { %v1128_v39 = vsel %vm2065_vm13, %v1377_v9, %v1120_v35  ;;  %v1149_v40 = vsel %vm2074_vm3, %v1380_v11, %v1141_v36  ;;  %1373 = vst [vmem:[%s1778_s16 + $0x60] sm:$0xff] %v1086_v37  ;;  %1376 = vst [vmem:[%s1778_s16 + $0x68] sm:$0xff] %v1107_v38 }
 0x188   : > { %1379 = vst [vmem:[%s1778_s16 + $0x70] sm:$0xff] %v1128_v39  ;;  %1382 = vst [vmem:[%s1778_s16 + $0x78] sm:$0xff] %v1149_v40 }
 0x18d   :  { %165 = sbr.rel (!%p163_p0) target bundleno = 11 (0xb), region = 240 }
 0x18f   : > { %v1152_v45 = vld [vmem:[%s1151_s18] ss:$0 sm:$0xff] }
 0x190   : > { %v1157_v43 = vsel %vm1598_vm12, %v1564_v7, %v1152_v45 }
 0x191   : > { %1158 = vst [vmem:[%s1151_s18] sm:$0x1] %v1157_v43 }
 0x198   :  { %v1225_v47 = vld [vmem:[#allocation1] sm:$0xff]  ;;  %v1227_v54 = vld [vmem:[#allocation1 + $0x8] sm:$0xff]  ;;  %v1229_v7 = vld [vmem:[#allocation1 + $0x10] sm:$0xff] }
 0x199   :  { %1226 = vst [vmem:[%s2178_s1] sm:$0xff] %v1225_v47  ;;  %1228 = vst [vmem:[%s2178_s1 + $0x8] sm:$0xff] %v1227_v54  ;;  %v1231_v29 = vld [vmem:[#allocation1 + $0x18] sm:$0xff]  ;;  %v1233_v6 = vld [vmem:[#allocation1 + $0x20] sm:$0xff] }
 0x19a   :  { %1230 = vst [vmem:[%s2178_s1 + $0x10] sm:$0xff] %v1229_v7  ;;  %1232 = vst [vmem:[%s2178_s1 + $0x18] sm:$0xff] %v1231_v29  ;;  %v1235_v55 = vld [vmem:[#allocation1 + $0x28] sm:$0xff]  ;;  %v1237_v41 = vld [vmem:[#allocation1 + $0x30] sm:$0xff] }
 0x19b   :  { %1234 = vst [vmem:[%s2178_s1 + $0x20] sm:$0xff] %v1233_v6  ;;  %v1239_v44 = vld [vmem:[#allocation1 + $0x38] sm:$0xff]  ;;  %1236 = vst [vmem:[%s2178_s1 + $0x28] sm:$0xff] %v1235_v55  ;;  %v1241_v46 = vld [vmem:[#allocation1 + $0x40] sm:$0xff] }
 0x19c   :  { %1238 = vst [vmem:[%s2178_s1 + $0x30] sm:$0xff] %v1237_v41  ;;  %1240 = vst [vmem:[%s2178_s1 + $0x38] sm:$0xff] %v1239_v44  ;;  %v1243_v32 = vld [vmem:[#allocation1 + $0x48] sm:$0xff]  ;;  %v1245_v57 = vld [vmem:[#allocation1 + $0x50] sm:$0xff] }
 0x19d   :  { %1415 = shalt.err (!%p1412_p5)
}
 0x19e   :  { %1269 = dma.vmem_to_hbm [thread:$0]  %s1267_s24, 16, %s2179_s2, [#allocation4]   ;;  %1242 = vst [vmem:[%s2178_s1 + $0x40] sm:$0xff] %v1241_v46  ;;  %1244 = vst [vmem:[%s2178_s1 + $0x48] sm:$0xff] %v1243_v32  ;;  %v1247_v48 = vld [vmem:[#allocation1 + $0x58] sm:$0xff]  ;;  %v1249_v52 = vld [vmem:[#allocation1 + $0x60] sm:$0xff] }
 0x19f   :  { %1246 = vst [vmem:[%s2178_s1 + $0x50] sm:$0xff] %v1245_v57  ;;  %v1251_v58 = vld [vmem:[#allocation1 + $0x68] sm:$0xff]  ;;  %1248 = vst [vmem:[%s2178_s1 + $0x58] sm:$0xff] %v1247_v48  ;;  %v1253_v0 = vld [vmem:[#allocation1 + $0x70] sm:$0xff] }
 0x1a0   :  { %1250 = vst [vmem:[%s2178_s1 + $0x60] sm:$0xff] %v1249_v52  ;;  %1252 = vst [vmem:[%s2178_s1 + $0x68] sm:$0xff] %v1251_v58  ;;  %v1255_v42 = vld [vmem:[#allocation1 + $0x78] sm:$0xff] }
 0x1a1   :  { %1254 = vst [vmem:[%s2178_s1 + $0x70] sm:$0xff] %v1253_v0  ;;  %1256 = vst [vmem:[%s2178_s1 + $0x78] sm:$0xff] %v1255_v42 }
 0x1a2   :  { %1428 = dma.done.wait [#allocation4], 16  }
 0x1a3   :  { %1429 = vsyncadd [#allocation4], 4294967280 }
 0x1a4   :  { %1273 = vsyncpa [#allocation4], 1 }

// kernel: custom-call.70
= control target key start
LH: loop header
LB: loop body
LE: loop exit
PB: predicated region body
PF: predicated region fallthrough
CT: control target
= control target key end

     0   :  { %v845_v6 = vmov 0.0   ;;  %s886_s25 = smov 0   ;;  %s1209_s0 = inlined_call_operand.vmem [shape: f32[64,32], index: 0, kind: input, shape index: {}]   ;;  %s1210_s1 = inlined_call_operand.vmem [shape: f32[64,32], index: 1, kind: output, shape index: {0}]   ;;  %s1211_s2 = inlined_call_operand.vmem [shape: f32[32], index: 2, kind: output, shape index: {1}]  }
   0x1   :  { %v46_v0 = vld [vmem:[%s1209_s0] sm:$0xff]  ;;  %v48_v1 = vld [vmem:[%s1209_s0 + $0x8] sm:$0xff]  ;;  %v50_v2 = vld [vmem:[%s1209_s0 + $0x10] sm:$0xff]  ;;  %95 = vst [vmem:[#allocation2] sm:$0x1] %v845_v6 }
   0x2   :  { %v52_v3 = vld [vmem:[%s1209_s0 + $0x18] sm:$0xff]  ;;  %v54_v4 = vld [vmem:[%s1209_s0 + $0x20] sm:$0xff]  ;;  %v56_v5 = vld [vmem:[%s1209_s0 + $0x28] sm:$0xff]  ;;  %66 = vst [vmem:[#allocation1] sm:$0xff] %v46_v0 }
   0x3   :  { %70 = vst [vmem:[#allocation1 + $0x8] sm:$0xff] %v48_v1  ;;  %74 = vst [vmem:[#allocation1 + $0x10] sm:$0xff] %v50_v2  ;;  %v58_v7 = vld [vmem:[%s1209_s0 + $0x30] sm:$0xff]  ;;  %v60_v8 = vld [vmem:[%s1209_s0 + $0x38] sm:$0xff] }
   0x4   :  { %78 = vst [vmem:[#allocation1 + $0x18] sm:$0xff] %v52_v3  ;;  %82 = vst [vmem:[#allocation1 + $0x20] sm:$0xff] %v54_v4 }
   0x5   :  { %86 = vst [vmem:[#allocation1 + $0x28] sm:$0xff] %v56_v5  ;;  %90 = vst [vmem:[#allocation1 + $0x30] sm:$0xff] %v58_v7 }
   0x6   :  { %94 = vst [vmem:[#allocation1 + $0x38] sm:$0xff] %v60_v8 }
   0x7 LB: > { %v103_v9 = vlaneseq  ;;  %v895_v12 = vstv %s843_s25  ;;  %s200_s0 = scalar_lea.vmem [#allocation1], %s843_s25  ;;  %s939_s26 = smov [#allocation1]  ;;  %s843_s25 = sphi %s886_s25, %s101_s25  }
   0x8   : > { %s384_s27 = scalar_lea.vmem [#allocation4], %s843_s25  ;;  %s1019_s28 = smov [#allocation1] }
   0x9   : > { %v102_v10 = vld [vmem:[#allocation1] sm:$0xff]  ;;  %v892_v11 = vshrl.u32 %v103_v9, 7  ;;  %s1021_s29 = smov [#allocation4] }
   0xa   : > { %v111_v13 = vld [vmem:[#allocation1 + $0x8] sm:$0xff]  ;;  %v121_v15 = vld [vmem:[#allocation1 + $0x10] sm:$0xff] }
   0xb   : > { %vm107_vm0 = vcmp.gt.s32.totalorder %v892_v11, %v895_v12  ;;  %v114_v14 = vadd.s32 8, %v892_v11  ;;  %v124_v16 = vadd.s32 16, %v892_v11  ;;  %v131_v17 = vld [vmem:[#allocation1 + $0x18] sm:$0xff]  ;;  %v134_v18 = vadd.s32 24, %v892_v11  ;;  %v141_v24 = vld [vmem:[#allocation1 + $0x20] sm:$0xff] }
   0xc   : > { %v108_v19 = vsel %vm107_vm0, %v102_v10, 0.0  ;;  %v144_v20 = vadd.s32 32, %v892_v11  ;;  %v154_v21 = vadd.s32 40, %v892_v11  ;;  %v164_v22 = vadd.s32 48, %v892_v11  ;;  %v151_v30 = vld [vmem:[#allocation1 + $0x28] sm:$0xff]  ;;  %v161_v35 = vld [vmem:[#allocation1 + $0x30] sm:$0xff] }
   0xd   : > { %v109_v23 = vmul.f32 %v108_v19, %v108_v19  ;;  %vm116_vm1 = vcmp.gt.s32.totalorder %v114_v14, %v895_v12  ;;  %vm126_vm2 = vcmp.gt.s32.totalorder %v124_v16, %v895_v12  ;;  %vm136_vm3 = vcmp.gt.s32.totalorder %v134_v18, %v895_v12  ;;  %v171_v39 = vld [vmem:[#allocation1 + $0x38] sm:$0xff]  ;;  %v917_v56 = vld [vmem:[%s200_s0] ss:$0 sm:$0xff] }
   0xe   : > { %v117_v25 = vsel %vm116_vm1, %v111_v13, 0.0  ;;  %v127_v26 = vsel %vm126_vm2, %v121_v15, 0.0  ;;  %v137_v27 = vsel %vm136_vm3, %v131_v17, 0.0  ;;  %vm146_vm4 = vcmp.gt.s32.totalorder %v144_v20, %v895_v12 }
   0xf   : > { %v118_v28 = vmul.f32 %v117_v25, %v117_v25  ;;  %v128_v29 = vmul.f32 %v127_v26, %v127_v26  ;;  %v147_v31 = vsel %vm146_vm4, %v141_v24, 0.0  ;;  %vm156_vm5 = vcmp.gt.s32.totalorder %v154_v21, %v895_v12 }
  0x10   : > { %v174_v32 = vadd.s32 56, %v892_v11  ;;  %v138_v34 = vmul.f32 %v137_v27, %v137_v27  ;;  %vm166_vm6 = vcmp.gt.s32.totalorder %v164_v22, %v895_v12  ;;  %v157_v36 = vsel %vm156_vm5, %v151_v30, 0.0  ;;  %v776_v30 = vld [vmem:[%s939_s26 + $0x10] sm:$0xff] }
  0x11   : > { %v119_v33 = vadd.f32 %v118_v28, %v109_v23  ;;  %v148_v38 = vmul.f32 %v147_v31, %v147_v31  ;;  %v167_v40 = vsel %vm166_vm6, %v161_v35, 0.0  ;;  %v158_v42 = vmul.f32 %v157_v36, %v157_v36  ;;  %v240_v31 = vld [vmem:[%s939_s26] sm:$0xff]  ;;  %v779_v36 = vld [vmem:[%s939_s26 + $0x28] sm:$0xff] }
  0x12   : > { %vm176_vm7 = vcmp.gt.s32.totalorder %v174_v32, %v895_v12  ;;  %v168_v45 = vmul.f32 %v167_v40, %v167_v40  ;;  %v202_v57 = vand.u32 2147483647, %v917_v56  ;;  %vm227_vm13 = vcmp.lt.f32.partialorder %v917_v56, 0.0 }
  0x13   : > { %v129_v37 = vadd.f32 %v128_v29, %v119_v33  ;;  %v179_v43 = vsel %vm176_vm7, %v171_v39, 0.0  ;;  %v239_v11 = vmov %v892_v11  ;;  %v777_v33 = vld [vmem:[%s939_s26 + $0x18] sm:$0xff]  ;;  %v951_v35 = vand.u32 127, %v103_v9 }
  0x14   : > { %v180_v47 = vmul.f32 %v179_v43, %v179_v43  ;;  %v203_v62 = vmax.f32 %v202_v57, 0.0  ;;  %v276_v25 = vadd.s32 16, %v239_v11  ;;  %v294_v26 = vadd.s32 24, %v239_v11 }
  0x15   : > { %v139_v41 = vadd.f32 %v138_v34, %v129_v37  ;;  %v258_v27 = vadd.s32 8, %v239_v11  ;;  %v330_v28 = vadd.s32 40, %v239_v11  ;;  %v312_v29 = vadd.s32 32, %v239_v11  ;;  %v775_v34 = vld [vmem:[%s939_s26 + $0x8] sm:$0xff]  ;;  %v778_v37 = vld [vmem:[%s939_s26 + $0x20] sm:$0xff] }
  0x16   : > { %vm278_vm14 = vcmp.gt.s32.totalorder %v276_v25, %v895_v12  ;;  %vm243_vm15 = vcmp.gt.s32.totalorder %v239_v11, %v895_v12  ;;  %v366_v32 = vadd.s32 56, %v239_v11  ;;  %vm296_vm0 = vcmp.gt.s32.totalorder %v294_v26, %v895_v12 }
  0x17   : > { %v149_v44 = vadd.f32 %v148_v38, %v139_v41  ;;  %vm260_vm1 = vcmp.gt.s32.totalorder %v258_v27, %v895_v12  ;;  %vm332_vm2 = vcmp.gt.s32.totalorder %v330_v28, %v895_v12  ;;  %vm314_vm3 = vcmp.gt.s32.totalorder %v312_v29, %v895_v12  ;;  %v397_v29 = vld [vmem:[#allocation2] ss:$0 sm:$0xff] }
  0x18   : > { %v348_v38 = vadd.s32 48, %v239_v11  ;;  %v279_v39 = vsel %vm278_vm14, %v776_v30, 0.0  ;;  %v244_v40 = vsel %vm243_vm15, %v240_v31, 0.0  ;;  %v297_v41 = vsel %vm296_vm0, %v777_v33, 0.0  ;;  %v783_v33 = vld [vmem:[%s1019_s28 + $0x8] sm:$0xff] }
  0x19   : > { %v159_v46 = vadd.f32 %v158_v42, %v149_v44  ;;  %v261_v42 = vsel %vm260_vm1, %v775_v34, 0.0  ;;  %vm368_vm4 = vcmp.gt.s32.totalorder %v366_v32, %v895_v12  ;;  %vm369_vm5 = vcmp.lt.s32.totalorder %v366_v32, 64  ;;  %v407_v32 = vld [vmem:[%s1019_s28] sm:$0xff] }
  0x1a   : > { %v333_v43 = vsel %vm332_vm2, %v779_v36, 0.0  ;;  %v315_v44 = vsel %vm314_vm3, %v778_v37, 0.0  ;;  %vm960_vm6 = vcmp.eq.s32.totalorder %v951_v35, %v895_v12  ;;  %vm350_vm7 = vcmp.gt.s32.totalorder %v348_v38, %v895_v12 }
  0x1b   : > { %v169_v48 = vadd.f32 %v168_v45, %v159_v46  ;;  %v846_v28 = vmov 1.0   ;;  %v404_v11 = vmov %v892_v11  ;;  %vm1092_vm3 = vcmp.gt.s32.totalorder %v951_v35, %v895_v12 }
  0x1d   : > { %v181_v49 = vadd.f32 %v180_v47, %v169_v48 }
  0x1f   : > { %v182_v50 = vrot.slane %v181_v49, 4 }
  0x21   : > { %v183_v51 = vadd.f32 %v182_v50, %v181_v49  ;;  %v781_v50 = vld [vmem:[%s939_s26 + $0x38] sm:$0xff] }
  0x23   : > { %v184_v52 = vrot.slane %v183_v51, 2 }
  0x25   : > { %v185_v53 = vadd.f32 %v184_v52, %v183_v51  ;;  %v780_v52 = vld [vmem:[%s939_s26 + $0x30] sm:$0xff] }
  0x27   : > { %v186_v54 = vrot.slane %v185_v53, 1 }
  0x29   : > { %v913_v55 = vadd.f32 %v186_v54, %v185_v53 }
  0x2b   : > { %827 = vrsqrt.f32 %v913_v55  ;;  %vm190_vm8 = vcmp.eq.f32.partialorder %v913_v55, inf  ;;  %v193_v59 = vand.u32 2147483648, %v913_v55  ;;  %vm192_vm9 = vcmp.eq.f32.partialorder %v913_v55, 0.0 }
  0x38   : > { %v828_v58 = vpop.eup %827 }
  0x39   : > { %v189_v60 = vmul.f32 %v828_v58, %v913_v55 }
  0x3b   : > { %v191_v61 = vsel %vm190_vm8, %v913_v55, %v189_v60  ;;  %vm966_vm8 = vmand %vm368_vm4, %vm369_vm5 }
  0x3c   : > { %v194_v63 = vsel %vm192_vm9, %v193_v59, %v191_v61 }
  0x3d   : > { %v204_v0 = vand.u32 2147483647, %v194_v63  ;;  %v371_v63 = vsel %vm966_vm8, %v781_v50, 0.0  ;;  %v791_v50 = vld [vmem:[%s1019_s28 + $0x28] sm:$0xff] }
  0x3f   : > { %v205_v1 = vmax.f32 %v203_v62, %v204_v0 }
  0x41   : > { %829 = vrcp.f32 %v205_v1  ;;  %vm217_vm12 = vcmp.eq.f32.partialorder %v205_v1, 0.0 }
  0x4e   : > { %v830_v2 = vpop.eup %829 }
  0x4f   : > { %v207_v3 = vmul.f32 %v830_v2, %v202_v57  ;;  %v210_v4 = vmul.f32 0.0, %v830_v2  ;;  %v214_v5 = vmul.f32 %v830_v2, %v204_v0  ;;  %v351_v0 = vsel %vm350_vm7, %v780_v52, 0.0 }
  0x51   : > { %v208_v6 = vmul.f32 %v207_v3, %v207_v3  ;;  %v211_v7 = vmul.f32 %v210_v4, %v210_v4  ;;  %v215_v8 = vmul.f32 %v214_v5, %v214_v5 }
  0x53   : > { %v212_v10 = vadd.f32 %v211_v7, %v208_v6 }
  0x55   : > { %v216_v13 = vadd.f32 %v215_v8, %v212_v10 }
  0x57   : > { %831 = vrsqrt.f32 %v216_v13  ;;  %vm220_vm10 = vcmp.eq.f32.partialorder %v216_v13, inf  ;;  %v223_v15 = vand.u32 2147483648, %v216_v13  ;;  %vm222_vm11 = vcmp.eq.f32.partialorder %v216_v13, 0.0 }
  0x64   : > { %v832_v14 = vpop.eup %831 }
  0x65   : > { %v219_v16 = vmul.f32 %v832_v14, %v216_v13 }
  0x67   : > { %v221_v17 = vsel %vm220_vm10, %v216_v13, %v219_v16 }
  0x68   : > { %v224_v18 = vsel %vm222_vm11, %v223_v15, %v221_v17 }
  0x69   : > { %v225_v19 = vmul.f32 %v224_v18, %v205_v1 }
  0x6b   : > { %v226_v20 = vsel %vm217_vm12, 0.0, %v225_v19 }
  0x6c   : > { %v228_v21 = vxor.u32 2147483648, %v226_v20 }
  0x6e   : > { %v928_v22 = vsel %vm227_vm13, %v226_v20, %v228_v21 }
  0x6f   : > { %v934_v23 = vsel %vm192_vm9, %v917_v56, %v928_v22  ;;  %v230_v3 = vsub.f32 %v928_v22, %v917_v56 }
  0x70   : > { %v235_v24 = vsub.f32 %v917_v56, %v934_v23 }
  0x72   : > { %833 = vrcp.f32 %v235_v24 }
  0x73   : > { %835 = vrcp.f32 %v928_v22 }
  0x7f   : > { %v834_v9 = vpop.eup %833 }
  0x80   : > { %v281_v46 = vmul.f32 %v834_v9, %v279_v39  ;;  %v246_v47 = vmul.f32 %v834_v9, %v244_v40  ;;  %v299_v48 = vmul.f32 %v834_v9, %v297_v41  ;;  %v263_v49 = vmul.f32 %v834_v9, %v261_v42  ;;  %v836_v8 = vpop.eup %835  ;;  %v785_v39 = vld [vmem:[%s1019_s28 + $0x10] sm:$0xff]  ;;  %v787_v42 = vld [vmem:[%s1019_s28 + $0x18] sm:$0xff] }
  0x81   : > { %v335_v53 = vmul.f32 %v834_v9, %v333_v43  ;;  %v317_v54 = vmul.f32 %v834_v9, %v315_v44  ;;  %v373_v6 = vmul.f32 %v834_v9, %v371_v63  ;;  %v353_v7 = vmul.f32 %v834_v9, %v351_v0 }
  0x82   : > { %v282_v57 = vsel %vm192_vm9, 0.0, %v281_v46  ;;  %v247_v58 = vsel %vm192_vm9, 0.0, %v246_v47  ;;  %v300_v59 = vsel %vm192_vm9, 0.0, %v299_v48  ;;  %v264_v60 = vsel %vm192_vm9, 0.0, %v263_v49  ;;  %v789_v46 = vld [vmem:[%s1019_s28 + $0x20] sm:$0xff] }
  0x83   : > { %v287_v61 = vsel %vm960_vm6, %v282_v57, 0.0  ;;  %v252_v62 = vsel %vm960_vm6, %v247_v58, 0.0  ;;  %v305_v1 = vsel %vm960_vm6, %v300_v59, 0.0  ;;  %v269_v2 = vsel %vm960_vm6, %v264_v60, 0.0  ;;  %v795_v57 = vld [vmem:[%s1019_s28 + $0x38] sm:$0xff]  ;;  %v793_v59 = vld [vmem:[%s1019_s28 + $0x30] sm:$0xff]  ;;  %s1044_s28 = smov %s1019_s28 }
  0x84   : > { %288 = vadd.xlane.f32.xlu1 %v287_v61  ;;  %253 = vadd.xlane.f32.xlu0 %v252_v62  ;;  %v336_v4 = vsel %vm192_vm9, 0.0, %v335_v53  ;;  %v318_v5 = vsel %vm192_vm9, 0.0, %v317_v54  ;;  %v374_v56 = vsel %vm192_vm9, 0.0, %v373_v6  ;;  %v354_v14 = vsel %vm192_vm9, 0.0, %v353_v7  ;;  %s638_s30 = scalar_lea.vmem %s1044_s28, %s843_s25  ;;  %s101_s25 = sadd.s32 1, %s843_s25  }
  0x85   : > { %v341_v10 = vsel %vm960_vm6, %v336_v4, 0.0  ;;  %v323_v13 = vsel %vm960_vm6, %v318_v5, 0.0  ;;  %v232_v15 = vmul.f32 %v836_v8, %v230_v3  ;;  %v379_v16 = vsel %vm960_vm6, %v374_v56, 0.0  ;;  %p98_p0 = scmp.ge.s32.totalorder %s101_s25, 32  }
  0x86   : > { %v359_v17 = vsel %vm960_vm6, %v354_v14, 0.0  ;;  %v451_v53 = vadd.s32 56, %v404_v11  ;;  %v470_v11 = vmov %v892_v11 }
  0x87   : > { %v234_v18 = vsel %vm192_vm9, 0.0, %v232_v15  ;;  %v491_v6 = vadd.s32 8, %v470_v11  ;;  %v512_v8 = vadd.s32 16, %v470_v11  ;;  %vm487_vm10 = vcmp.ge.s32.totalorder %v470_v11, %v895_v12 }
  0x88   : > { %306 = vadd.xlane.f32.xlu1 %v305_v1  ;;  %270 = vadd.xlane.f32.xlu0 %v269_v2  ;;  %v390_v19 = vsel %vm960_vm6, %v234_v18, 0.0  ;;  %vm457_vm9 = vcmp.lt.s32.totalorder %v451_v53, 64  ;;  %v554_v14 = vadd.s32 32, %v470_v11  ;;  %vm1052_vm13 = vmand %vm960_vm6, %vm487_vm10  ;;  %v617_v18 = vadd.s32 56, %v470_v11 }
  0x89   : > { %vm508_vm11 = vcmp.ge.s32.totalorder %v491_v6, %v895_v12  ;;  %vm529_vm12 = vcmp.ge.s32.totalorder %v512_v8, %v895_v12 }
  0x8a   : > { %vm1059_vm15 = vmand %vm960_vm6, %vm508_vm11  ;;  %vm571_vm2 = vcmp.ge.s32.totalorder %v554_v14, %v895_v12  ;;  %vm634_vm7 = vcmp.ge.s32.totalorder %v617_v18, %v895_v12 }
  0x8b   : > { %vm1068_vm0 = vmand %vm960_vm6, %vm529_vm12 }
  0x8c   : > { %342 = vadd.xlane.f32.xlu1 %v341_v10  ;;  %324 = vadd.xlane.f32.xlu0 %v323_v13  ;;  %v533_v10 = vadd.s32 24, %v470_v11  ;;  %vm1106_vm8 = vmand %vm960_vm6, %vm571_vm2 }
  0x8d   : > { %vm1130_vm11 = vmand %vm960_vm6, %vm634_vm7 }
  0x8e   : > { %vm550_vm14 = vcmp.ge.s32.totalorder %v533_v10, %v895_v12 }
  0x8f   : > { %vm1077_vm1 = vmand %vm960_vm6, %vm550_vm14 }
  0x90   : > { %380 = vadd.xlane.f32.xlu1 %v379_v16  ;;  %360 = vadd.xlane.f32.xlu0 %v359_v17  ;;  %v575_v16 = vadd.s32 40, %v470_v11  ;;  %v596_v17 = vadd.s32 48, %v470_v11  ;;  %v803_v11 = vld [vmem:[%s1044_s28 + $0x18] sm:$0xff] }
  0x92   : > { %vm592_vm4 = vcmp.ge.s32.totalorder %v575_v16, %v895_v12  ;;  %vm613_vm5 = vcmp.ge.s32.totalorder %v596_v17, %v895_v12 }
  0x93   : > { %vm1122_vm10 = vmand %vm960_vm6, %vm613_vm5 }
  0x94   : > { %391 = vadd.xlane.f32.xlu0 %v390_v19 }
 0x10d   : > { %v289_v20 = vpop.xlane.xlu1 %288  ;;  %v254_v21 = vpop.xlane.xlu0 %253 }
 0x10e   : > { %291 = vst [vmem:[#allocation4 + $0x10] sm:$0xff] %v289_v20  ;;  %255 = vst [vmem:[#allocation4] sm:$0xff] %v254_v21  ;;  %v477_v21 = vld [vmem:[%s1044_s28] sm:$0xff] }
 0x111   : > { %v307_v22 = vpop.xlane.xlu1 %306  ;;  %v271_v24 = vpop.xlane.xlu0 %270 }
 0x112   : > { %309 = vst [vmem:[#allocation4 + $0x18] sm:$0xff] %v307_v22  ;;  %273 = vst [vmem:[#allocation4 + $0x8] sm:$0xff] %v271_v24  ;;  %v797_v22 = vld [vmem:[%s1044_s28 + $0x8] sm:$0xff]  ;;  %v800_v24 = vld [vmem:[%s1044_s28 + $0x10] sm:$0xff] }
 0x115   : > { %v343_v25 = vpop.xlane.xlu1 %342  ;;  %v325_v26 = vpop.xlane.xlu0 %324 }
 0x116   : > { %345 = vst [vmem:[#allocation4 + $0x28] sm:$0xff] %v343_v25  ;;  %327 = vst [vmem:[#allocation4 + $0x20] sm:$0xff] %v325_v26 }
 0x119   : > { %v381_v55 = vpop.xlane.xlu1 %380  ;;  %v361_v27 = vpop.xlane.xlu0 %360 }
 0x11a   : > { %383 = vst [vmem:[#allocation4 + $0x38] sm:$0xff] %v381_v55  ;;  %363 = vst [vmem:[#allocation4 + $0x30] sm:$0xff] %v361_v27 }
 0x11b   : > { %385 = vst [vmem:[%s384_s27] sm:$0x1] %v846_v28  ;;  %v806_v28 = vld [vmem:[%s1044_s28 + $0x20] sm:$0xff] }
 0x11d   : > { %v1014_v30 = vpop.xlane.xlu0 %391 }
 0x11e   : > { %v398_v31 = vsel %vm960_vm6, %v1014_v30, %v397_v29  ;;  %v809_v29 = vld [vmem:[%s1044_s28 + $0x28] sm:$0xff] }
 0x11f   : > { %399 = vst [vmem:[#allocation2] sm:$0x1] %v398_v31  ;;  %v812_v31 = vld [vmem:[%s1044_s28 + $0x30] sm:$0xff] }
 0x122   : > { %v406_v34 = vld [vmem:[%s1021_s29] sm:$0xff]  ;;  %v782_v37 = vld [vmem:[%s1021_s29 + $0x8] sm:$0xff]  ;;  %v784_v38 = vld [vmem:[%s1021_s29 + $0x10] sm:$0xff] }
 0x123   : > { %v408_v36 = vmul.f32 %v407_v32, %v406_v34  ;;  %v414_v40 = vmul.f32 %v783_v33, %v782_v37  ;;  %v786_v41 = vld [vmem:[%s1021_s29 + $0x18] sm:$0xff]  ;;  %v421_v44 = vmul.f32 %v785_v39, %v784_v38  ;;  %v788_v9 = vld [vmem:[%s1021_s29 + $0x20] sm:$0xff]  ;;  %v790_v49 = vld [vmem:[%s1021_s29 + $0x28] sm:$0xff] }
 0x124   : > { %v428_v48 = vmul.f32 %v787_v42, %v786_v41  ;;  %v435_v52 = vmul.f32 %v789_v46, %v788_v9  ;;  %v794_v54 = vld [vmem:[%s1021_s29 + $0x38] sm:$0xff]  ;;  %v792_v58 = vld [vmem:[%s1021_s29 + $0x30] sm:$0xff]  ;;  %v442_v61 = vmul.f32 %v791_v50, %v790_v49  ;;  %s1048_s29 = smov %s1021_s29 }
 0x125   : > { %v415_v43 = vadd.f32 %v414_v40, %v408_v36  ;;  %v456_v62 = vmul.f32 %v795_v57, %v794_v54  ;;  %v449_v0 = vmul.f32 %v793_v59, %v792_v58  ;;  %v475_v26 = vld [vmem:[%s1048_s29] sm:$0xff]  ;;  %v796_v55 = vld [vmem:[%s1048_s29 + $0x8] sm:$0xff]  ;;  %v815_v32 = vld [vmem:[%s1044_s28 + $0x38] sm:$0xff] }
 0x126   : > { %v799_v34 = vld [vmem:[%s1048_s29 + $0x10] sm:$0xff]  ;;  %v802_v36 = vld [vmem:[%s1048_s29 + $0x18] sm:$0xff]  ;;  %v805_v37 = vld [vmem:[%s1048_s29 + $0x20] sm:$0xff] }
 0x127   : > { %v422_v47 = vadd.f32 %v421_v44, %v415_v43  ;;  %v458_v2 = vsel %vm457_vm9, %v456_v62, 0.0  ;;  %v808_v39 = vld [vmem:[%s1048_s29 + $0x28] sm:$0xff]  ;;  %v811_v40 = vld [vmem:[%s1048_s29 + $0x30] sm:$0xff]  ;;  %v814_v41 = vld [vmem:[%s1048_s29 + $0x38] sm:$0xff] }
 0x128   : > { %vm1114_vm9 = vmand %vm960_vm6, %vm592_vm4  ;;  %v650_v17 = vld [vmem:[#allocation2] sm:$0x1] (%p98_p0) }
 0x129   : > { %v429_v51 = vadd.f32 %v428_v48, %v422_v47  ;;  %653 = vst [vmem:[#allocation3] sm:$0x1] (%p98_p0), %v650_v17 }
 0x12b   : > { %v436_v60 = vadd.f32 %v435_v52, %v429_v51 }
 0x12d   : > { %v443_v63 = vadd.f32 %v442_v61, %v436_v60 }
 0x12f   : > { %v450_v1 = vadd.f32 %v449_v0, %v443_v63 }
 0x130   :  { %v733_v25 = vld [vmem:[#allocation3] sm:$0x1] (%p98_p0) }
 0x131   : > { %v459_v3 = vadd.f32 %v458_v2, %v450_v1  ;;  %734 = vst [vmem:[%s1211_s2] sm:$0x1] (%p98_p0), %v733_v25 }
 0x133   : > { %v460_v4 = vrot.slane %v459_v3, 4 }
 0x135   : > { %v461_v5 = vadd.f32 %v460_v4, %v459_v3 }
 0x137   : > { %v462_v7 = vrot.slane %v461_v5, 2 }
 0x139   : > { %v463_v13 = vadd.f32 %v462_v7, %v461_v5 }
 0x13b   : > { %v464_v56 = vrot.slane %v463_v13, 1 }
 0x13d   : > { %v465_v19 = vadd.f32 %v464_v56, %v463_v13 }
 0x13f   : > { %v471_v33 = vmul.f32 %v465_v19, %v1014_v30 }
 0x141   : > { %v476_v42 = vmul.f32 %v475_v26, %v471_v33  ;;  %v496_v30 = vmul.f32 %v796_v55, %v471_v33  ;;  %v517_v43 = vmul.f32 %v799_v34, %v471_v33  ;;  %v538_v44 = vmul.f32 %v802_v36, %v471_v33 }
 0x142   : > { %v559_v9 = vmul.f32 %v805_v37, %v471_v33  ;;  %v580_v46 = vmul.f32 %v808_v39, %v471_v33  ;;  %v601_v47 = vmul.f32 %v811_v40, %v471_v33  ;;  %v622_v48 = vmul.f32 %v814_v41, %v471_v33 }
 0x143   : > { %v480_v50 = vsub.f32 %v477_v21, %v476_v42  ;;  %v501_v51 = vsub.f32 %v797_v22, %v496_v30  ;;  %v522_v52 = vsub.f32 %v800_v24, %v517_v43  ;;  %v543_v53 = vsub.f32 %v803_v11, %v538_v44 }
 0x144   : > { %v564_v57 = vsub.f32 %v806_v28, %v559_v9  ;;  %v585_v58 = vsub.f32 %v809_v29, %v580_v46  ;;  %v606_v59 = vsub.f32 %v812_v31, %v601_v47  ;;  %v627_v60 = vsub.f32 %v815_v32, %v622_v48 }
 0x145   : > { %v481_v62 = vsel %vm1092_vm3, %v480_v50, %v477_v21  ;;  %v502_v63 = vsel %vm1092_vm3, %v501_v51, %v797_v22  ;;  %v523_v0 = vsel %vm1092_vm3, %v522_v52, %v800_v24  ;;  %v544_v1 = vsel %vm1092_vm3, %v543_v53, %v803_v11 }
 0x146   : > { %v489_v12 = vsel %vm1052_vm13, %v475_v26, %v481_v62  ;;  %v510_v2 = vsel %vm1059_vm15, %v796_v55, %v502_v63  ;;  %v531_v3 = vsel %vm1068_vm0, %v799_v34, %v523_v0  ;;  %v552_v4 = vsel %vm1077_vm1, %v802_v36, %v544_v1 }
 0x147   : > { %490 = vst [vmem:[%s1044_s28] sm:$0xff] %v489_v12  ;;  %798 = vst [vmem:[%s1044_s28 + $0x8] sm:$0xff] %v510_v2  ;;  %v565_v5 = vsel %vm1092_vm3, %v564_v57, %v806_v28  ;;  %v586_v6 = vsel %vm1092_vm3, %v585_v58, %v809_v29  ;;  %v607_v7 = vsel %vm1092_vm3, %v606_v59, %v812_v31 }
 0x148   : > { %801 = vst [vmem:[%s1044_s28 + $0x10] sm:$0xff] %v531_v3  ;;  %804 = vst [vmem:[%s1044_s28 + $0x18] sm:$0xff] %v552_v4  ;;  %v628_v8 = vsel %vm1092_vm3, %v627_v60, %v815_v32  ;;  %v573_v10 = vsel %vm1106_vm8, %v805_v37, %v565_v5  ;;  %v594_v13 = vsel %vm1114_vm9, %v808_v39, %v586_v6 }
 0x149   : > { %v615_v56 = vsel %vm1122_vm10, %v811_v40, %v607_v7  ;;  %v636_v14 = vsel %vm1130_vm11, %v814_v41, %v628_v8  ;;  %807 = vst [vmem:[%s1044_s28 + $0x20] sm:$0xff] %v573_v10  ;;  %810 = vst [vmem:[%s1044_s28 + $0x28] sm:$0xff] %v594_v13 }
 0x14a   : > { %813 = vst [vmem:[%s1044_s28 + $0x30] sm:$0xff] %v615_v56  ;;  %816 = vst [vmem:[%s1044_s28 + $0x38] sm:$0xff] %v636_v14 }
 0x14f   :  { %100 = sbr.rel (!%p98_p0) target bundleno = 7 (0x7), region = 202 }
 0x151   : > { %v639_v15 = vld [vmem:[%s638_s30] ss:$0 sm:$0xff] }
 0x152   : > { %v644_v16 = vsel %vm960_vm6, %v934_v23, %v639_v15 }
 0x153   : > { %645 = vst [vmem:[%s638_s30] sm:$0x1] %v644_v16 }
 0x15a   :  { %v696_v18 = vld [vmem:[#allocation1] sm:$0xff]  ;;  %v698_v19 = vld [vmem:[#allocation1 + $0x8] sm:$0xff]  ;;  %v700_v23 = vld [vmem:[#allocation1 + $0x10] sm:$0xff] }
 0x15b   :  { %697 = vst [vmem:[%s1210_s1] sm:$0xff] %v696_v18  ;;  %699 = vst [vmem:[%s1210_s1 + $0x8] sm:$0xff] %v698_v19  ;;  %v702_v45 = vld [vmem:[#allocation1 + $0x18] sm:$0xff]  ;;  %v704_v20 = vld [vmem:[#allocation1 + $0x20] sm:$0xff] }
 0x15c   :  { %701 = vst [vmem:[%s1210_s1 + $0x10] sm:$0xff] %v700_v23  ;;  %703 = vst [vmem:[%s1210_s1 + $0x18] sm:$0xff] %v702_v45  ;;  %v706_v21 = vld [vmem:[#allocation1 + $0x28] sm:$0xff]  ;;  %v708_v22 = vld [vmem:[#allocation1 + $0x30] sm:$0xff] }
 0x15d   :  { %705 = vst [vmem:[%s1210_s1 + $0x20] sm:$0xff] %v704_v20  ;;  %v710_v24 = vld [vmem:[#allocation1 + $0x38] sm:$0xff]  ;;  %707 = vst [vmem:[%s1210_s1 + $0x28] sm:$0xff] %v706_v21 }
 0x15e   :  { %709 = vst [vmem:[%s1210_s1 + $0x30] sm:$0xff] %v708_v22  ;;  %711 = vst [vmem:[%s1210_s1 + $0x38] sm:$0xff] %v710_v24 }

// kernel: custom-call.71
= control target key start
LH: loop header
LB: loop body
LE: loop exit
PB: predicated region body
PF: predicated region fallthrough
CT: control target
= control target key end

     0   :  { %s1102_s0 = inlined_call_operand.vmem [shape: f32[32,32], index: 0, kind: input, shape index: {}]   ;;  %s1103_s1 = inlined_call_operand.vmem [shape: f32[32,32], index: 1, kind: output, shape index: {}]  }
   0x1   :  { %s15_s8 = scalar_lea.vmem %s1102_s0, 24 }
   0x2   :  { %p721_p0 = scmp.gt.s32.totalorder %s1102_s0, %s15_s8 }
   0x3   :  { %s923_s11 = smov (!%p721_p0), [#allocation0]   ;;  %s927_s14 = smov (!%p721_p0), %s1102_s0  }
   0x4   :  { %722 = sbr.rel (%p721_p0) target bundleno = 17 (0x11), region = 108 }
   0x9 LB: > { %v49_v0 = vld [vmem:[%s929_s14] sm:$0xff]  ;;  %s51_s14 = scalar_lea.vmem %s929_s14, 8   ;;  %s929_s14 = sphi %s927_s14, %s51_s14   ;;  %s925_s11 = sphi %s923_s11, %s52_s11  }
   0xa   : > { %50 = vst [vmem:[%s925_s11] sm:$0xff] %v49_v0  ;;  %s52_s11 = scalar_lea.vmem %s925_s11, 8   ;;  %p46_p1 = scmp.gt.s32.totalorder %s51_s14, %s15_s8 }
   0xc   :  { %48 = sbr.rel (!%p46_p1) target bundleno = 9 (0x9), region = 114 }
  0x11 PF:  { %v65_v1 = vlaneseq  ;;  %v99_v2 = vld [vmem:[#allocation0 + $0x1] ss:$0 sm:$0xff]  ;;  %vm100_vm0 = vcmask 261120   ;;  %v110_v10 = vld [vmem:[#allocation0 + $0x2] ss:$0 sm:$0xff]  ;;  %v939_v41 = vmov 0.0   ;;  %s931_s16 = smov %s1103_s1  }
  0x12   :  { %v71_v5 = vld [vmem:[#allocation0] sm:$0xff]  ;;  %v101_v6 = vsel %vm100_vm0, %v99_v2, 0.0  ;;  %v112_v11 = vsel %vm100_vm0, %v110_v10, 0.0  ;;  %v176_v37 = vld [vmem:[#allocation0 + $0x8] ss:$0 sm:$0xff]  ;;  %s935_s17 = smov [#allocation1]  }
  0x13   :  { %v959_v3 = vand.u32 127, %v65_v1  ;;  %v961_v4 = vshrl.u32 %v65_v1, 7  ;;  %v121_v15 = vld [vmem:[#allocation0 + $0x3] ss:$0 sm:$0xff]  ;;  %v132_v20 = vld [vmem:[#allocation0 + $0x4] ss:$0 sm:$0xff] }
  0x14   :  { %v123_v16 = vsel %vm100_vm0, %v121_v15, 0.0  ;;  %v134_v21 = vsel %vm100_vm0, %v132_v20, 0.0  ;;  %v143_v25 = vld [vmem:[#allocation0 + $0x5] ss:$0 sm:$0xff]  ;;  %v154_v30 = vld [vmem:[#allocation0 + $0x6] ss:$0 sm:$0xff] }
  0x15   :  { %vm70_vm1 = vcmp.eq.s32.totalorder %v959_v3, %v961_v4  ;;  %vm74_vm2 = vcmp.eq.s32.totalorder %v959_v3, 0  ;;  %vm104_vm3 = vcmp.eq.s32.totalorder %v959_v3, 1  ;;  %vm115_vm4 = vcmp.eq.s32.totalorder %v959_v3, 2  ;;  %v165_v36 = vld [vmem:[#allocation0 + $0x7] ss:$0 sm:$0xff] }
  0x16   :  { %v75_v7 = vsel %vm74_vm2, %v71_v5, 1.0  ;;  %vm126_vm5 = vcmp.eq.s32.totalorder %v959_v3, 3  ;;  %vm137_vm6 = vcmp.eq.s32.totalorder %v959_v3, 4  ;;  %v145_v26 = vsel %vm100_vm0, %v143_v25, 0.0  ;;  %v191_v47 = vld [vmem:[#allocation0 + $0x9] ss:$0 sm:$0xff] }
  0x17   :  { %v76_v8 = vsel %vm70_vm1, %v75_v7, 0.0  ;;  %vm148_vm7 = vcmp.eq.s32.totalorder %v959_v3, 5  ;;  %v156_v31 = vsel %vm100_vm0, %v154_v30, 0.0  ;;  %v81_v35 = vadd.s32 8, %v961_v4  ;;  %v206_v55 = vld [vmem:[#allocation0 + $0xa] ss:$0 sm:$0xff] }
  0x18   :  { %v105_v9 = vmul.f32 %v101_v6, %v76_v8  ;;  %vm159_vm8 = vcmp.eq.s32.totalorder %v959_v3, 6  ;;  %v167_v38 = vsel %vm100_vm0, %v165_v36, 0.0  ;;  %v178_v43 = vsel %vm100_vm0, %v176_v37, 0.0  ;;  %v221_v63 = vld [vmem:[#allocation0 + $0xb] ss:$0 sm:$0xff] }
  0x19   :  { %vm82_vm9 = vcmp.eq.s32.totalorder %v959_v3, %v81_v35  ;;  %vm170_vm10 = vcmp.eq.s32.totalorder %v959_v3, 7  ;;  %vm181_vm11 = vcmp.eq.s32.totalorder %v959_v3, 8  ;;  %v193_v50 = vsel %vm100_vm0, %v191_v47, 0.0  ;;  %v266_v25 = vld [vmem:[#allocation0 + $0xe] ss:$0 sm:$0xff] }
  0x1a   :  { %106 = vadd.xlane.f32.xlu0 %v105_v9  ;;  %v83_v42 = vsel %vm82_vm9, 1.0, %v939_v41  ;;  %vm196_vm12 = vcmp.eq.s32.totalorder %v959_v3, 9  ;;  %v208_v58 = vsel %vm100_vm0, %v206_v55, 0.0  ;;  %vm211_vm13 = vcmp.eq.s32.totalorder %v959_v3, 10  ;;  %v236_v9 = vld [vmem:[#allocation0 + $0xc] ss:$0 sm:$0xff] }
  0x1b   :  { %v186_v45 = vmul.f32 %v178_v43, %v83_v42  ;;  %v223_v2 = vsel %vm100_vm0, %v221_v63, 0.0  ;;  %vm226_vm14 = vcmp.eq.s32.totalorder %v959_v3, 11  ;;  %vm241_vm15 = vcmp.eq.s32.totalorder %v959_v3, 12 }
  0x1c   :  { %vm256_vm1 = vcmp.eq.s32.totalorder %v959_v3, 13  ;;  %vm271_vm2 = vcmp.eq.s32.totalorder %v959_v3, 14  ;;  %vm377_vm9 = vcmp.eq.s32.totalorder %v959_v3, 20 }
  0xa3   :  { %v107_v12 = vpop.xlane.xlu0 %106 }
  0xa4   :  { %v108_v13 = vsel %vm104_vm3, %v107_v12, %v76_v8  ;;  %v238_v12 = vsel %vm100_vm0, %v236_v9, 0.0  ;;  %vm286_vm3 = vcmp.eq.s32.totalorder %v959_v3, 15 }
  0xa5   :  { %v116_v14 = vmul.f32 %v112_v11, %v108_v13 }
  0xa7   :  { %117 = vadd.xlane.f32.xlu0 %v116_v14 }
 0x130   :  { %v118_v17 = vpop.xlane.xlu0 %117 }
 0x131   :  { %v119_v18 = vsel %vm115_vm4, %v118_v17, %v108_v13  ;;  %v251_v17 = vld [vmem:[#allocation0 + $0xd] ss:$0 sm:$0xff] }
 0x132   :  { %v127_v19 = vmul.f32 %v123_v16, %v119_v18  ;;  %v253_v20 = vsel %vm100_vm0, %v251_v17, 0.0 }
 0x134   :  { %128 = vadd.xlane.f32.xlu1 %v127_v19 }
 0x1bd   :  { %v129_v22 = vpop.xlane.xlu1 %128 }
 0x1be   :  { %v130_v23 = vsel %vm126_vm5, %v129_v22, %v119_v18  ;;  %vm301_vm5 = vcmp.eq.s32.totalorder %v959_v3, 16 }
 0x1bf   :  { %v138_v24 = vmul.f32 %v134_v21, %v130_v23 }
 0x1c1   :  { %139 = vadd.xlane.f32.xlu1 %v138_v24 }
 0x24a   :  { %v140_v27 = vpop.xlane.xlu1 %139 }
 0x24b   :  { %v141_v28 = vsel %vm137_vm6, %v140_v27, %v130_v23  ;;  %vm320_vm6 = vcmp.eq.s32.totalorder %v959_v3, 17 }
 0x24c   :  { %v149_v29 = vmul.f32 %v145_v26, %v141_v28 }
 0x24e   :  { %150 = vadd.xlane.f32.xlu0 %v149_v29 }
 0x2d7   :  { %v151_v32 = vpop.xlane.xlu0 %150 }
 0x2d8   :  { %v152_v33 = vsel %vm148_vm7, %v151_v32, %v141_v28  ;;  %v268_v28 = vsel %vm100_vm0, %v266_v25, 0.0  ;;  %vm339_vm7 = vcmp.eq.s32.totalorder %v959_v3, 18 }
 0x2d9   :  { %v160_v34 = vmul.f32 %v156_v31, %v152_v33 }
 0x2db   :  { %161 = vadd.xlane.f32.xlu1 %v160_v34 }
 0x364   :  { %v162_v39 = vpop.xlane.xlu1 %161 }
 0x365   :  { %v163_v40 = vsel %vm159_vm8, %v162_v39, %v152_v33  ;;  %v281_v33 = vld [vmem:[#allocation0 + $0xf] ss:$0 sm:$0xff]  ;;  %vm358_vm8 = vcmp.eq.s32.totalorder %v959_v3, 19 }
 0x366   :  { %v171_v44 = vmul.f32 %v167_v38, %v163_v40  ;;  %v283_v36 = vsel %vm100_vm0, %v281_v33, 0.0 }
 0x368   :  { %172 = vadd.xlane.f32.xlu0 %v171_v44 }
 0x36c   :  { %187 = vadd.xlane.f32.xlu0 %v186_v45 }
 0x3f1   :  { %v173_v46 = vpop.xlane.xlu0 %172 }
 0x3f2   :  { %v174_v48 = vsel %vm170_vm10, %v173_v46, %v163_v40  ;;  %vm396_vm10 = vcmp.eq.s32.totalorder %v959_v3, 21 }
 0x3f3   :  { %v182_v49 = vmul.f32 %v178_v43, %v174_v48 }
 0x3f5   :  { %183 = vadd.xlane.f32.xlu1 %v182_v49  ;;  %v188_v51 = vpop.xlane.xlu0 %187  ;;  %v88_v49 = vadd.s32 16, %v961_v4 }
 0x3f6   :  { %v189_v52 = vsel %vm181_vm11, %v188_v51, %v83_v42  ;;  %v296_v42 = vld [vmem:[#allocation0 + $0x10] ss:$0 sm:$0xff] }
 0x3f7   :  { %v201_v53 = vmul.f32 %v193_v50, %v189_v52  ;;  %v298_v45 = vsel %vm100_vm0, %v296_v42, 0.0  ;;  %vm89_vm4 = vcmp.eq.s32.totalorder %v959_v3, %v88_v49 }
 0x3f9   :  { %202 = vadd.xlane.f32.xlu0 %v201_v53 }
 0x47e   :  { %v184_v54 = vpop.xlane.xlu1 %183 }
 0x47f   :  { %v185_v56 = vsel %vm181_vm11, %v184_v54, %v174_v48  ;;  %vm415_vm11 = vcmp.eq.s32.totalorder %v959_v3, 22 }
 0x480   :  { %v197_v57 = vmul.f32 %v193_v50, %v185_v56 }
 0x482   :  { %198 = vadd.xlane.f32.xlu1 %v197_v57  ;;  %v203_v59 = vpop.xlane.xlu0 %202 }
 0x483   :  { %v204_v60 = vsel %vm196_vm12, %v203_v59, %v189_v52  ;;  %v90_v52 = vsel %vm89_vm4, 1.0, %v939_v41  ;;  %vm568_vm4 = vcmp.eq.s32.totalorder %v959_v3, 29 }
 0x484   :  { %v216_v61 = vmul.f32 %v208_v58, %v204_v60  ;;  %v310_v55 = vmul.f32 %v298_v45, %v90_v52 }
 0x486   :  { %217 = vadd.xlane.f32.xlu0 %v216_v61 }
 0x50b   :  { %v199_v62 = vpop.xlane.xlu1 %198 }
 0x50c   :  { %v200_v0 = vsel %vm196_vm12, %v199_v62, %v185_v56  ;;  %v315_v56 = vld [vmem:[#allocation0 + $0x11] ss:$0 sm:$0xff]  ;;  %vm434_vm12 = vcmp.eq.s32.totalorder %v959_v3, 23 }
 0x50d   :  { %v212_v1 = vmul.f32 %v208_v58, %v200_v0  ;;  %v317_v58 = vsel %vm100_vm0, %v315_v56, 0.0 }
 0x50f   :  { %213 = vadd.xlane.f32.xlu1 %v212_v1  ;;  %v218_v5 = vpop.xlane.xlu0 %217 }
 0x510   :  { %v219_v6 = vsel %vm211_vm13, %v218_v5, %v204_v60 }
 0x511   :  { %v231_v7 = vmul.f32 %v223_v2, %v219_v6 }
 0x513   :  { %232 = vadd.xlane.f32.xlu0 %v231_v7 }
 0x598   :  { %v214_v8 = vpop.xlane.xlu1 %213 }
 0x599   :  { %v215_v10 = vsel %vm211_vm13, %v214_v8, %v200_v0  ;;  %v334_v0 = vld [vmem:[#allocation0 + $0x12] ss:$0 sm:$0xff] }
 0x59a   :  { %v227_v11 = vmul.f32 %v223_v2, %v215_v10  ;;  %v336_v5 = vsel %vm100_vm0, %v334_v0, 0.0 }
 0x59c   :  { %228 = vadd.xlane.f32.xlu1 %v227_v11  ;;  %v233_v13 = vpop.xlane.xlu0 %232 }
 0x59d   :  { %v234_v14 = vsel %vm226_vm14, %v233_v13, %v219_v6  ;;  %v353_v13 = vld [vmem:[#allocation0 + $0x13] ss:$0 sm:$0xff] }
 0x59e   :  { %v246_v15 = vmul.f32 %v238_v12, %v234_v14 }
 0x5a0   :  { %247 = vadd.xlane.f32.xlu0 %v246_v15 }
 0x625   :  { %v229_v16 = vpop.xlane.xlu1 %228 }
 0x626   :  { %v230_v18 = vsel %vm226_vm14, %v229_v16, %v215_v10  ;;  %v355_v16 = vsel %vm100_vm0, %v353_v13, 0.0  ;;  %vm453_vm14 = vcmp.eq.s32.totalorder %v959_v3, 24 }
 0x627   :  { %v242_v19 = vmul.f32 %v238_v12, %v230_v18 }
 0x629   :  { %243 = vadd.xlane.f32.xlu1 %v242_v19  ;;  %v248_v21 = vpop.xlane.xlu0 %247 }
 0x62a   :  { %v249_v22 = vsel %vm241_vm15, %v248_v21, %v234_v14 }
 0x62b   :  { %v261_v23 = vmul.f32 %v253_v20, %v249_v22 }
 0x62d   :  { %262 = vadd.xlane.f32.xlu0 %v261_v23 }
 0x6b2   :  { %v244_v24 = vpop.xlane.xlu1 %243 }
 0x6b3   :  { %v245_v26 = vsel %vm241_vm15, %v244_v24, %v230_v18  ;;  %v372_v24 = vld [vmem:[#allocation0 + $0x14] ss:$0 sm:$0xff]  ;;  %vm476_vm15 = vcmp.eq.s32.totalorder %v959_v3, 25 }
 0x6b4   :  { %v257_v27 = vmul.f32 %v253_v20, %v245_v26 }
 0x6b6   :  { %258 = vadd.xlane.f32.xlu1 %v257_v27  ;;  %v263_v29 = vpop.xlane.xlu0 %262  ;;  %v374_v27 = vsel %vm100_vm0, %v372_v24, 0.0 }
 0x6b7   :  { %v264_v30 = vsel %vm256_vm1, %v263_v29, %v249_v22 }
 0x6b8   :  { %v276_v31 = vmul.f32 %v268_v28, %v264_v30 }
 0x6ba   :  { %277 = vadd.xlane.f32.xlu0 %v276_v31 }
 0x73f   :  { %v259_v32 = vpop.xlane.xlu1 %258 }
 0x740   :  { %v260_v34 = vsel %vm256_vm1, %v259_v32, %v245_v26  ;;  %vm499_vm1 = vcmp.eq.s32.totalorder %v959_v3, 26 }
 0x741   :  { %v272_v35 = vmul.f32 %v268_v28, %v260_v34 }
 0x743   :  { %273 = vadd.xlane.f32.xlu1 %v272_v35  ;;  %v278_v37 = vpop.xlane.xlu0 %277  ;;  %v391_v35 = vld [vmem:[#allocation0 + $0x15] ss:$0 sm:$0xff] }
 0x744   :  { %v279_v38 = vsel %vm271_vm2, %v278_v37, %v264_v30 }
 0x745   :  { %v291_v39 = vmul.f32 %v283_v36, %v279_v38 }
 0x747   :  { %292 = vadd.xlane.f32.xlu0 %v291_v39 }
 0x7cc   :  { %v274_v40 = vpop.xlane.xlu1 %273 }
 0x7cd   :  { %v275_v43 = vsel %vm271_vm2, %v274_v40, %v260_v34  ;;  %vm522_vm2 = vcmp.eq.s32.totalorder %v959_v3, 27 }
 0x7ce   :  { %v287_v44 = vmul.f32 %v283_v36, %v275_v43 }
 0x7d0   :  { %288 = vadd.xlane.f32.xlu1 %v287_v44  ;;  %v293_v46 = vpop.xlane.xlu0 %292 }
 0x7d1   :  { %v294_v47 = vsel %vm286_vm3, %v293_v46, %v279_v38  ;;  %v393_v38 = vsel %vm100_vm0, %v391_v35, 0.0 }
 0x7d2   :  { %v306_v48 = vmul.f32 %v298_v45, %v294_v47 }
 0x7d4   :  { %307 = vadd.xlane.f32.xlu0 %v306_v48 }
 0x859   :  { %v289_v50 = vpop.xlane.xlu1 %288 }
 0x85a   :  { %v290_v51 = vsel %vm286_vm3, %v289_v50, %v275_v43  ;;  %vm545_vm3 = vcmp.eq.s32.totalorder %v959_v3, 28 }
 0x85b   :  { %v302_v53 = vmul.f32 %v298_v45, %v290_v51 }
 0x85d   :  { %303 = vadd.xlane.f32.xlu1 %v302_v53  ;;  %v308_v54 = vpop.xlane.xlu0 %307 }
 0x85e   :  { %v309_v57 = vsel %vm301_vm5, %v308_v54, %v294_v47  ;;  %v410_v47 = vld [vmem:[#allocation0 + $0x16] ss:$0 sm:$0xff] }
 0x85f   :  { %v325_v59 = vmul.f32 %v317_v58, %v309_v57  ;;  %v412_v50 = vsel %vm100_vm0, %v410_v47, 0.0 }
 0x861   :  { %311 = vadd.xlane.f32.xlu1 %v310_v55 }
 0x865   :  { %326 = vadd.xlane.f32.xlu1 %v325_v59 }
 0x8e6   :  { %v304_v60 = vpop.xlane.xlu1 %303 }
 0x8e7   :  { %v305_v61 = vsel %vm301_vm5, %v304_v60, %v290_v51 }
 0x8e8   :  { %v321_v62 = vmul.f32 %v317_v58, %v305_v61 }
 0x8ea   :  { %v312_v63 = vpop.xlane.xlu1 %311  ;;  %322 = vadd.xlane.f32.xlu0 %v321_v62 }
 0x8eb   :  { %v313_v1 = vsel %vm301_vm5, %v312_v63, %v90_v52  ;;  %vm591_vm5 = vcmp.eq.s32.totalorder %v959_v3, 30 }
 0x8ec   :  { %v329_v2 = vmul.f32 %v317_v58, %v313_v1  ;;  %v429_v58 = vld [vmem:[#allocation0 + $0x17] ss:$0 sm:$0xff] }
 0x8ee   :  { %330 = vadd.xlane.f32.xlu0 %v329_v2  ;;  %v327_v6 = vpop.xlane.xlu1 %326 }
 0x8ef   :  { %v328_v7 = vsel %vm320_vm6, %v327_v6, %v309_v57  ;;  %v95_v6 = vadd.s32 24, %v961_v4 }
 0x8f0   :  { %v344_v8 = vmul.f32 %v336_v5, %v328_v7 }
 0x8f1   :  { %vm96_vm13 = vcmp.eq.s32.totalorder %v959_v3, %v95_v6 }
 0x8f2   :  { %345 = vadd.xlane.f32.xlu0 %v344_v8  ;;  %v448_v8 = vld [vmem:[#allocation0 + $0x18] ss:$0 sm:$0xff] }
 0x973   :  { %v323_v9 = vpop.xlane.xlu0 %322 }
 0x974   :  { %v324_v10 = vsel %vm320_vm6, %v323_v9, %v305_v61  ;;  %v431_v61 = vsel %vm100_vm0, %v429_v58, 0.0 }
 0x975   :  { %v340_v11 = vmul.f32 %v336_v5, %v324_v10 }
 0x977   :  { %341 = vadd.xlane.f32.xlu1 %v340_v11  ;;  %v331_v12 = vpop.xlane.xlu0 %330  ;;  %v450_v11 = vsel %vm100_vm0, %v448_v8, 0.0 }
 0x978   :  { %v332_v14 = vsel %vm320_vm6, %v331_v12, %v313_v1 }
 0x979   :  { %v348_v15 = vmul.f32 %v336_v5, %v332_v14 }
 0x97b   :  { %349 = vadd.xlane.f32.xlu1 %v348_v15  ;;  %v346_v17 = vpop.xlane.xlu0 %345 }
 0x97c   :  { %v347_v18 = vsel %vm339_vm7, %v346_v17, %v328_v7 }
 0x97d   :  { %v363_v19 = vmul.f32 %v355_v16, %v347_v18 }
 0x97f   :  { %364 = vadd.xlane.f32.xlu1 %v363_v19 }
 0xa00   :  { %v342_v20 = vpop.xlane.xlu1 %341 }
 0xa01   :  { %v343_v21 = vsel %vm339_vm7, %v342_v20, %v324_v10  ;;  %v471_v20 = vld [vmem:[#allocation0 + $0x19] ss:$0 sm:$0xff] }
 0xa02   :  { %v359_v22 = vmul.f32 %v355_v16, %v343_v21 }
 0xa04   :  { %360 = vadd.xlane.f32.xlu0 %v359_v22  ;;  %v350_v23 = vpop.xlane.xlu1 %349 }
 0xa05   :  { %v351_v25 = vsel %vm339_vm7, %v350_v23, %v332_v14  ;;  %v97_v14 = vsel %vm96_vm13, 1.0, %v939_v41  ;;  %v473_v41 = vsel %vm100_vm0, %v471_v20, 0.0 }
 0xa06   :  { %v367_v26 = vmul.f32 %v355_v16, %v351_v25  ;;  %v466_v4 = vmul.f32 %v450_v11, %v97_v14 }
 0xa08   :  { %368 = vadd.xlane.f32.xlu0 %v367_v26  ;;  %v365_v28 = vpop.xlane.xlu1 %364 }
 0xa09   :  { %v366_v29 = vsel %vm358_vm8, %v365_v28, %v347_v18 }
 0xa0a   :  { %v382_v30 = vmul.f32 %v374_v27, %v366_v29 }
 0xa0c   :  { %383 = vadd.xlane.f32.xlu0 %v382_v30 }
 0xa8d   :  { %v361_v31 = vpop.xlane.xlu0 %360 }
 0xa8e   :  { %v362_v32 = vsel %vm358_vm8, %v361_v31, %v343_v21 }
 0xa8f   :  { %v378_v33 = vmul.f32 %v374_v27, %v362_v32 }
 0xa91   :  { %379 = vadd.xlane.f32.xlu1 %v378_v33  ;;  %v369_v34 = vpop.xlane.xlu0 %368  ;;  %v494_v33 = vld [vmem:[#allocation0 + $0x1a] ss:$0 sm:$0xff] }
 0xa92   :  { %v370_v36 = vsel %vm358_vm8, %v369_v34, %v351_v25 }
 0xa93   :  { %v386_v37 = vmul.f32 %v374_v27, %v370_v36 }
 0xa95   :  { %387 = vadd.xlane.f32.xlu1 %v386_v37  ;;  %v384_v39 = vpop.xlane.xlu0 %383 }
 0xa96   :  { %v385_v40 = vsel %vm377_vm9, %v384_v39, %v366_v29 }
 0xa97   :  { %v401_v42 = vmul.f32 %v393_v38, %v385_v40 }
 0xa99   :  { %402 = vadd.xlane.f32.xlu1 %v401_v42 }
 0xb1a   :  { %v380_v43 = vpop.xlane.xlu1 %379 }
 0xb1b   :  { %v381_v44 = vsel %vm377_vm9, %v380_v43, %v362_v32 }
 0xb1c   :  { %v397_v45 = vmul.f32 %v393_v38, %v381_v44 }
 0xb1e   :  { %398 = vadd.xlane.f32.xlu0 %v397_v45  ;;  %v388_v46 = vpop.xlane.xlu1 %387 }
 0xb1f   :  { %v389_v48 = vsel %vm377_vm9, %v388_v46, %v370_v36  ;;  %v496_v36 = vsel %vm100_vm0, %v494_v33, 0.0 }
 0xb20   :  { %v405_v49 = vmul.f32 %v393_v38, %v389_v48 }
 0xb22   :  { %406 = vadd.xlane.f32.xlu0 %v405_v49  ;;  %v403_v51 = vpop.xlane.xlu1 %402 }
 0xb23   :  { %v404_v52 = vsel %vm396_vm10, %v403_v51, %v385_v40 }
 0xb24   :  { %v420_v53 = vmul.f32 %v412_v50, %v404_v52 }
 0xb26   :  { %421 = vadd.xlane.f32.xlu0 %v420_v53 }
 0xba7   :  { %v399_v54 = vpop.xlane.xlu0 %398 }
 0xba8   :  { %v400_v55 = vsel %vm396_vm10, %v399_v54, %v381_v44 }
 0xba9   :  { %v416_v56 = vmul.f32 %v412_v50, %v400_v55 }
 0xbab   :  { %417 = vadd.xlane.f32.xlu1 %v416_v56  ;;  %v407_v57 = vpop.xlane.xlu0 %406 }
 0xbac   :  { %v408_v59 = vsel %vm396_vm10, %v407_v57, %v389_v48  ;;  %v517_v48 = vld [vmem:[#allocation0 + $0x1b] ss:$0 sm:$0xff] }
 0xbad   :  { %v424_v60 = vmul.f32 %v412_v50, %v408_v59  ;;  %v519_v51 = vsel %vm100_vm0, %v517_v48, 0.0 }
 0xbaf   :  { %425 = vadd.xlane.f32.xlu1 %v424_v60  ;;  %v422_v62 = vpop.xlane.xlu0 %421 }
 0xbb0   :  { %v423_v63 = vsel %vm415_vm11, %v422_v62, %v404_v52  ;;  %v540_v62 = vld [vmem:[#allocation0 + $0x1c] ss:$0 sm:$0xff] }
 0xbb1   :  { %v439_v0 = vmul.f32 %v431_v61, %v423_v63 }
 0xbb3   :  { %440 = vadd.xlane.f32.xlu1 %v439_v0 }
 0xc34   :  { %v418_v1 = vpop.xlane.xlu1 %417 }
 0xc35   :  { %v419_v2 = vsel %vm415_vm11, %v418_v1, %v400_v55  ;;  %v542_v1 = vsel %vm100_vm0, %v540_v62, 0.0 }
 0xc36   :  { %v435_v5 = vmul.f32 %v431_v61, %v419_v2 }
 0xc38   :  { %436 = vadd.xlane.f32.xlu0 %v435_v5  ;;  %v426_v7 = vpop.xlane.xlu1 %425 }
 0xc39   :  { %v427_v9 = vsel %vm415_vm11, %v426_v7, %v408_v59 }
 0xc3a   :  { %v443_v10 = vmul.f32 %v431_v61, %v427_v9 }
 0xc3c   :  { %444 = vadd.xlane.f32.xlu0 %v443_v10  ;;  %v441_v12 = vpop.xlane.xlu1 %440 }
 0xc3d   :  { %v442_v13 = vsel %vm434_vm12, %v441_v12, %v423_v63 }
 0xc3e   :  { %v458_v15 = vmul.f32 %v450_v11, %v442_v13 }
 0xc40   :  { %459 = vadd.xlane.f32.xlu0 %v458_v15 }
 0xc44   :  { %467 = vadd.xlane.f32.xlu0 %v466_v4 }
 0xcc1   :  { %v437_v16 = vpop.xlane.xlu0 %436 }
 0xcc2   :  { %v438_v17 = vsel %vm434_vm12, %v437_v16, %v419_v2 }
 0xcc3   :  { %v454_v18 = vmul.f32 %v450_v11, %v438_v17 }
 0xcc5   :  { %455 = vadd.xlane.f32.xlu1 %v454_v18  ;;  %v445_v19 = vpop.xlane.xlu0 %444 }
 0xcc6   :  { %v446_v21 = vsel %vm434_vm12, %v445_v19, %v427_v9 }
 0xcc7   :  { %v462_v22 = vmul.f32 %v450_v11, %v446_v21 }
 0xcc9   :  { %463 = vadd.xlane.f32.xlu1 %v462_v22  ;;  %v460_v23 = vpop.xlane.xlu0 %459 }
 0xcca   :  { %v461_v24 = vsel %vm453_vm14, %v460_v23, %v442_v13 }
 0xccb   :  { %v481_v25 = vmul.f32 %v473_v41, %v461_v24 }
 0xccd   :  { %482 = vadd.xlane.f32.xlu0 %v481_v25  ;;  %v468_v26 = vpop.xlane.xlu0 %467 }
 0xcce   :  { %v469_v27 = vsel %vm453_vm14, %v468_v26, %v97_v14  ;;  %v563_v14 = vld [vmem:[#allocation0 + $0x1d] ss:$0 sm:$0xff]  ;;  %v586_v26 = vld [vmem:[#allocation0 + $0x1e] ss:$0 sm:$0xff] }
 0xccf   :  { %v489_v28 = vmul.f32 %v473_v41, %v469_v27  ;;  %v565_v16 = vsel %vm100_vm0, %v563_v14, 0.0 }
 0xcd1   :  { %490 = vadd.xlane.f32.xlu0 %v489_v28 }
 0xd4e   :  { %v456_v29 = vpop.xlane.xlu1 %455 }
 0xd4f   :  { %v457_v30 = vsel %vm453_vm14, %v456_v29, %v438_v17  ;;  %v588_v29 = vsel %vm100_vm0, %v586_v26, 0.0 }
 0xd50   :  { %v477_v31 = vmul.f32 %v473_v41, %v457_v30 }
 0xd52   :  { %478 = vadd.xlane.f32.xlu1 %v477_v31  ;;  %v464_v32 = vpop.xlane.xlu1 %463 }
 0xd53   :  { %v465_v34 = vsel %vm453_vm14, %v464_v32, %v446_v21 }
 0xd54   :  { %v485_v35 = vmul.f32 %v473_v41, %v465_v34 }
 0xd56   :  { %486 = vadd.xlane.f32.xlu1 %v485_v35  ;;  %v483_v37 = vpop.xlane.xlu0 %482 }
 0xd57   :  { %v484_v38 = vsel %vm476_vm15, %v483_v37, %v461_v24 }
 0xd58   :  { %v504_v39 = vmul.f32 %v496_v36, %v484_v38 }
 0xd5a   :  { %505 = vadd.xlane.f32.xlu0 %v504_v39  ;;  %v491_v40 = vpop.xlane.xlu0 %490 }
 0xd5b   :  { %v492_v42 = vsel %vm476_vm15, %v491_v40, %v469_v27  ;;  %v609_v40 = vld [vmem:[#allocation0 + $0x1f] ss:$0 sm:$0xff] }
 0xd5c   :  { %v512_v43 = vmul.f32 %v496_v36, %v492_v42 }
 0xd5e   :  { %513 = vadd.xlane.f32.xlu0 %v512_v43 }
 0xddb   :  { %v479_v44 = vpop.xlane.xlu1 %478 }
 0xddc   :  { %v480_v45 = vsel %vm476_vm15, %v479_v44, %v457_v30  ;;  %v611_v44 = vsel %vm100_vm0, %v609_v40, 0.0  ;;  %vm614_vm0 = vcmp.eq.s32.totalorder %v959_v3, 31 }
 0xddd   :  { %v500_v46 = vmul.f32 %v496_v36, %v480_v45 }
 0xddf   :  { %501 = vadd.xlane.f32.xlu1 %v500_v46  ;;  %v487_v47 = vpop.xlane.xlu1 %486 }
 0xde0   :  { %v488_v49 = vsel %vm476_vm15, %v487_v47, %v465_v34 }
 0xde1   :  { %v508_v50 = vmul.f32 %v496_v36, %v488_v49 }
 0xde3   :  { %509 = vadd.xlane.f32.xlu1 %v508_v50  ;;  %v506_v52 = vpop.xlane.xlu0 %505 }
 0xde4   :  { %v507_v53 = vsel %vm499_vm1, %v506_v52, %v484_v38 }
 0xde5   :  { %v527_v54 = vmul.f32 %v519_v51, %v507_v53 }
 0xde7   :  { %528 = vadd.xlane.f32.xlu0 %v527_v54  ;;  %v514_v55 = vpop.xlane.xlu0 %513 }
 0xde8   :  { %v515_v56 = vsel %vm499_vm1, %v514_v55, %v492_v42 }
 0xde9   :  { %v535_v57 = vmul.f32 %v519_v51, %v515_v56 }
 0xdeb   :  { %536 = vadd.xlane.f32.xlu0 %v535_v57 }
 0xe68   :  { %v502_v58 = vpop.xlane.xlu1 %501 }
 0xe69   :  { %v503_v59 = vsel %vm499_vm1, %v502_v58, %v480_v45 }
 0xe6a   :  { %v523_v60 = vmul.f32 %v519_v51, %v503_v59 }
 0xe6c   :  { %524 = vadd.xlane.f32.xlu1 %v523_v60  ;;  %v510_v61 = vpop.xlane.xlu1 %509 }
 0xe6d   :  { %v511_v63 = vsel %vm499_vm1, %v510_v61, %v488_v49 }
 0xe6e   :  { %v531_v0 = vmul.f32 %v519_v51, %v511_v63 }
 0xe70   :  { %532 = vadd.xlane.f32.xlu1 %v531_v0  ;;  %v529_v2 = vpop.xlane.xlu0 %528 }
 0xe71   :  { %v530_v5 = vsel %vm522_vm2, %v529_v2, %v507_v53 }
 0xe72   :  { %v550_v6 = vmul.f32 %v542_v1, %v530_v5 }
 0xe74   :  { %551 = vadd.xlane.f32.xlu0 %v550_v6  ;;  %v537_v7 = vpop.xlane.xlu0 %536 }
 0xe75   :  { %v538_v8 = vsel %vm522_vm2, %v537_v7, %v515_v56 }
 0xe76   :  { %v558_v9 = vmul.f32 %v542_v1, %v538_v8 }
 0xe78   :  { %559 = vadd.xlane.f32.xlu0 %v558_v9 }
 0xef5   :  { %v525_v10 = vpop.xlane.xlu1 %524 }
 0xef6   :  { %v526_v11 = vsel %vm522_vm2, %v525_v10, %v503_v59 }
 0xef7   :  { %v546_v12 = vmul.f32 %v542_v1, %v526_v11 }
 0xef9   :  { %547 = vadd.xlane.f32.xlu1 %v546_v12  ;;  %v533_v13 = vpop.xlane.xlu1 %532 }
 0xefa   :  { %v534_v15 = vsel %vm522_vm2, %v533_v13, %v511_v63 }
 0xefb   :  { %v554_v4 = vmul.f32 %v542_v1, %v534_v15 }
 0xefd   :  { %555 = vadd.xlane.f32.xlu1 %v554_v4  ;;  %v552_v17 = vpop.xlane.xlu0 %551 }
 0xefe   :  { %v553_v18 = vsel %vm545_vm3, %v552_v17, %v530_v5 }
 0xeff   :  { %v573_v19 = vmul.f32 %v565_v16, %v553_v18 }
 0xf01   :  { %574 = vadd.xlane.f32.xlu0 %v573_v19  ;;  %v560_v20 = vpop.xlane.xlu0 %559 }
 0xf02   :  { %v561_v21 = vsel %vm545_vm3, %v560_v20, %v538_v8 }
 0xf03   :  { %v581_v22 = vmul.f32 %v565_v16, %v561_v21 }
 0xf05   :  { %582 = vadd.xlane.f32.xlu0 %v581_v22 }
 0xf82   :  { %v548_v41 = vpop.xlane.xlu1 %547 }
 0xf83   :  { %v549_v23 = vsel %vm545_vm3, %v548_v41, %v526_v11 }
 0xf84   :  { %v569_v24 = vmul.f32 %v565_v16, %v549_v23 }
 0xf86   :  { %570 = vadd.xlane.f32.xlu1 %v569_v24  ;;  %v556_v25 = vpop.xlane.xlu1 %555 }
 0xf87   :  { %v557_v27 = vsel %vm545_vm3, %v556_v25, %v534_v15 }
 0xf88   :  { %v577_v28 = vmul.f32 %v565_v16, %v557_v27 }
 0xf8a   :  { %578 = vadd.xlane.f32.xlu1 %v577_v28  ;;  %v575_v30 = vpop.xlane.xlu0 %574 }
 0xf8b   :  { %v576_v31 = vsel %vm568_vm4, %v575_v30, %v553_v18 }
 0xf8c   :  { %v596_v32 = vmul.f32 %v588_v29, %v576_v31 }
 0xf8e   :  { %597 = vadd.xlane.f32.xlu0 %v596_v32  ;;  %v583_v33 = vpop.xlane.xlu0 %582 }
 0xf8f   :  { %v584_v34 = vsel %vm568_vm4, %v583_v33, %v561_v21 }
 0xf90   :  { %v604_v35 = vmul.f32 %v588_v29, %v584_v34 }
 0xf92   :  { %605 = vadd.xlane.f32.xlu0 %v604_v35 }
0x100f   :  { %v571_v36 = vpop.xlane.xlu1 %570 }
0x1010   :  { %v572_v37 = vsel %vm568_vm4, %v571_v36, %v549_v23 }
0x1011   :  { %v592_v38 = vmul.f32 %v588_v29, %v572_v37 }
0x1013   :  { %593 = vadd.xlane.f32.xlu1 %v592_v38  ;;  %v579_v39 = vpop.xlane.xlu1 %578 }
0x1014   :  { %v580_v42 = vsel %vm568_vm4, %v579_v39, %v557_v27 }
0x1015   :  { %v600_v43 = vmul.f32 %v588_v29, %v580_v42 }
0x1017   :  { %601 = vadd.xlane.f32.xlu1 %v600_v43  ;;  %v598_v45 = vpop.xlane.xlu0 %597 }
0x1018   :  { %v599_v46 = vsel %vm591_vm5, %v598_v45, %v576_v31 }
0x1019   :  { %v619_v47 = vmul.f32 %v611_v44, %v599_v46 }
0x101b   :  { %620 = vadd.xlane.f32.xlu0 %v619_v47  ;;  %v606_v48 = vpop.xlane.xlu0 %605 }
0x101c   :  { %v607_v49 = vsel %vm591_vm5, %v606_v48, %v584_v34 }
0x101d   :  { %v627_v50 = vmul.f32 %v611_v44, %v607_v49 }
0x101f   :  { %628 = vadd.xlane.f32.xlu0 %v627_v50 }
0x109c   :  { %v594_v51 = vpop.xlane.xlu1 %593 }
0x109d   :  { %v595_v52 = vsel %vm591_vm5, %v594_v51, %v572_v37 }
0x109e   :  { %v615_v53 = vmul.f32 %v611_v44, %v595_v52 }
0x10a0   :  { %616 = vadd.xlane.f32.xlu1 %v615_v53  ;;  %v602_v54 = vpop.xlane.xlu1 %601 }
0x10a1   :  { %v603_v55 = vsel %vm591_vm5, %v602_v54, %v580_v42 }
0x10a2   :  { %v623_v56 = vmul.f32 %v611_v44, %v603_v55 }
0x10a4   :  { %624 = vadd.xlane.f32.xlu1 %v623_v56  ;;  %v621_v57 = vpop.xlane.xlu0 %620 }
0x10a5   :  { %v622_v58 = vsel %vm614_vm0, %v621_v57, %v599_v46 }
0x10a6   :  { %633 = vst [vmem:[#allocation1 + $0x8] sm:$0xff] %v622_v58 }
0x10a8   :  { %v629_v59 = vpop.xlane.xlu0 %628 }
0x10a9   :  { %v630_v60 = vsel %vm614_vm0, %v629_v59, %v607_v49 }
0x10aa   :  { %637 = vst [vmem:[#allocation1 + $0x18] sm:$0xff] %v630_v60 }
0x1129   :  { %v617_v61 = vpop.xlane.xlu1 %616 }
0x112a   :  { %v618_v62 = vsel %vm614_vm0, %v617_v61, %v595_v52  }
0x112b   :  { %631 = vst [vmem:[#allocation1] sm:$0xff] %v618_v62 }
0x112d   :  { %v625_v63 = vpop.xlane.xlu1 %624 }
0x112e   :  { %v626_v0 = vsel %vm614_vm0, %v625_v63, %v603_v55 }
0x112f   :  { %635 = vst [vmem:[#allocation1 + $0x10] sm:$0xff] %v626_v0 }
0x1130 LB:  { %s937_s17 = sphi %s935_s17, %s687_s17   ;;  %s933_s16 = sphi %s931_s16, %s688_s16  }
0x1136   : > { %v685_v3 = vld [vmem:[%s937_s17] sm:$0xff]  ;;  %s687_s17 = scalar_lea.vmem %s937_s17, 8  }
0x1137   : > { %686 = vst [vmem:[%s933_s16] sm:$0xff] %v685_v3  ;;  %s688_s16 = scalar_lea.vmem %s933_s16, 8   ;;  %p682_p2 = scmp.gt.s32.totalorder %s687_s17, [#allocation1 + $0x18] }
0x1139   :  { %684 = sbr.rel (!%p682_p2) target bundleno = 4400 (0x1130), region = 136 }

// kernel: custom-call.68
= control target key start
LH: loop header
LB: loop body
LE: loop exit
PB: predicated region body
PF: predicated region fallthrough
CT: control target
= control target key end

     0   :  { %v1563_v0 = vmov 0.0   ;;  %vm54_vm0 = vcmask 7168   ;;  %vm111_vm1 = vcmask 15368   ;;  %vm128_vm2 = vcmask 1047553   ;;  %s1952_s0 = inlined_call_operand.vmem [shape: f32[32,32], index: 0, kind: input, shape index: {}]   ;;  %s1953_s1 = inlined_call_operand.vmem [shape: f32[32,32], index: 1, kind: output, shape index: {}]  }
   0x1   :  { %47 = vst [vmem:[#allocation1] sm:$0xff] %v1563_v0  ;;  %v1579_v4 = vld [vmem:[%s1952_s0] sm:$0xff]  ;;  %v1597_v16 = vld [vmem:[%s1952_s0 + $0x8] sm:$0xff]  ;;  %vm129_vm3 = vmand %vm111_vm1, %vm128_vm2  ;;  %vm172_vm4 = vcmask 23568   ;;  %vm189_vm5 = vcmask 1047554   ;;  %vm233_vm7 = vcmask 31768  }
   0x2   :  { %37 = vst [vmem:[#allocation0] sm:$0xff] %v1579_v4  ;;  %39 = vst [vmem:[#allocation0 + $0x8] sm:$0xff] %v1597_v16  ;;  %v1619_v34 = vld [vmem:[%s1952_s0 + $0x10] sm:$0xff]  ;;  %v1640_v55 = vld [vmem:[%s1952_s0 + $0x18] sm:$0xff]  ;;  %vm250_vm8 = vcmask 1047555   ;;  %vm294_vm10 = vcmask 39968  }
   0x3   :  { %41 = vst [vmem:[#allocation0 + $0x10] sm:$0xff] %v1619_v34  ;;  %vm190_vm6 = vmand %vm172_vm4, %vm189_vm5  ;;  %vm311_vm11 = vcmask 1047556   ;;  %vm355_vm13 = vcmask 48168   ;;  %vm372_vm14 = vcmask 1047557  }
   0x4   :  { %43 = vst [vmem:[#allocation0 + $0x18] sm:$0xff] %v1640_v55  ;;  %vm251_vm9 = vmand %vm233_vm7, %vm250_vm8 }
   0x5   :  { %vm312_vm12 = vmand %vm294_vm10, %vm311_vm11 }
   0x6   :  { %vm373_vm15 = vmand %vm355_vm13, %vm372_vm14 }
   0x8   :  { %v55_v1 = vld [vmem:[#allocation1] ss:$0 sm:$0xff] }
   0x9   :  { %v57_v2 = vmul.f32 %v55_v1, %v55_v1  ;;  %v1574_v3 = vmul.f32 0.0, %v55_v1  ;;  %v56_v5 = vld [vmem:[#allocation0] ss:$0 sm:$0xff]  ;;  %v115_v17 = vld [vmem:[#allocation0 + $0x1] ss:$0 sm:$0xff] }
   0xa   :  { %v176_v41 = vld [vmem:[#allocation0 + $0x2] ss:$0 sm:$0xff] }
   0xb   :  { %58 = vadd.xlane.f32.xlu0 %v57_v2 }
   0xf   :  { %65 = vadd.xlane.f32.xlu0 %v1574_v3 }
  0x94   :  { %v59_v6 = vpop.xlane.xlu0 %58 }
  0x95   :  { %v60_v7 = vsub.f32 %v56_v5, %v59_v6 }
  0x97   :  { %1498 = vrsqrt.f32 %v60_v7 }
  0x98   :  { %v66_v8 = vpop.xlane.xlu0 %65 }
  0x99   :  { %v67_v9 = vsub.f32 %v1579_v4, %v66_v8  ;;  %v237_v8 = vld [vmem:[#allocation0 + $0x3] ss:$0 sm:$0xff] }
  0xa4   :  { %v1584_v10 = vpop.eup %1498 }
  0xa5   :  { %v68_v11 = vmul.f32 %v1584_v10, %v67_v9 }
  0xa7   :  { %v69_v12 = vsel %vm54_vm0, %v68_v11, 0.0 }
  0xa8   :  { %71 = vst [vmem:[#allocation1] sm:$0xff] %v69_v12 }
  0xaf   :  { %v1588_v13 = vld [vmem:[#allocation1 + $0x1] ss:$0 sm:$0xff] }
  0xb0   :  { %v123_v14 = vmul.f32 %v1588_v13, %v69_v12  ;;  %v116_v15 = vmul.f32 %v1588_v13, %v1588_v13 }
  0xb2   :  { %124 = vadd.xlane.f32.xlu0 %v123_v14  ;;  %117 = vadd.xlane.f32.xlu1 %v116_v15 }
  0xb6   :  { %77 = vadd.xlane.f32.xlu1 %v1574_v3 }
 0x13b   :  { %v118_v18 = vpop.xlane.xlu1 %117  ;;  %v125_v24 = vpop.xlane.xlu0 %124 }
 0x13c   :  { %v119_v19 = vsub.f32 %v115_v17, %v118_v18  ;;  %v126_v26 = vsub.f32 %v1579_v4, %v125_v24 }
 0x13e   :  { %1500 = vrsqrt.f32 %v119_v19 }
 0x13f   :  { %v78_v20 = vpop.xlane.xlu1 %77 }
 0x140   :  { %v79_v21 = vsub.f32 %v1597_v16, %v78_v20 }
 0x142   :  { %v80_v22 = vmul.f32 %v1584_v10, %v79_v21 }
 0x144   :  { %v81_v23 = vsel %vm54_vm0, %v80_v22, 0.0 }
 0x145   :  { %v137_v25 = vmul.f32 %v1588_v13, %v81_v23 }
 0x147   :  { %138 = vadd.xlane.f32.xlu1 %v137_v25 }
 0x14b   :  { %v1605_v27 = vpop.eup %1500 }
 0x14c   :  { %v127_v28 = vmul.f32 %v1605_v27, %v126_v26 }
 0x14e   :  { %v130_v29 = vsel %vm129_vm3, %v127_v28, 0.0 }
 0x14f   :  { %v131_v30 = vadd.f32 %v130_v29, %v69_v12 }
 0x151   :  { %132 = vst [vmem:[#allocation1] sm:$0xff] %v131_v30 }
 0x158   :  { %v1610_v31 = vld [vmem:[#allocation1 + $0x2] ss:$0 sm:$0xff] }
 0x159   :  { %v177_v32 = vmul.f32 %v1610_v31, %v1610_v31  ;;  %v184_v33 = vmul.f32 %v1610_v31, %v131_v30 }
 0x15b   :  { %178 = vadd.xlane.f32.xlu0 %v177_v32  ;;  %185 = vadd.xlane.f32.xlu1 %v184_v33 }
 0x15f   :  { %90 = vadd.xlane.f32.xlu0 %v1574_v3 }
 0x1d0   :  { %v139_v35 = vpop.xlane.xlu1 %138 }
 0x1d1   :  { %v140_v36 = vsub.f32 %v1597_v16, %v139_v35 }
 0x1d3   :  { %v141_v37 = vmul.f32 %v1605_v27, %v140_v36 }
 0x1d5   :  { %v142_v38 = vsel %vm111_vm1, %v141_v37, 0.0 }
 0x1d6   :  { %v143_v39 = vadd.f32 %v142_v38, %v81_v23 }
 0x1d8   :  { %v198_v40 = vmul.f32 %v1610_v31, %v143_v39 }
 0x1da   :  { %199 = vadd.xlane.f32.xlu1 %v198_v40 }
 0x1e4   :  { %v179_v42 = vpop.xlane.xlu0 %178  ;;  %v186_v48 = vpop.xlane.xlu1 %185 }
 0x1e5   :  { %v180_v43 = vsub.f32 %v176_v41, %v179_v42  ;;  %v187_v50 = vsub.f32 %v1579_v4, %v186_v48  ;;  %v298_v41 = vld [vmem:[#allocation0 + $0x4] ss:$0 sm:$0xff] }
 0x1e7   :  { %1502 = vrsqrt.f32 %v180_v43 }
 0x1e8   :  { %v91_v44 = vpop.xlane.xlu0 %90 }
 0x1e9   :  { %v92_v45 = vsub.f32 %v1619_v34, %v91_v44 }
 0x1eb   :  { %v93_v46 = vmul.f32 %v1584_v10, %v92_v45 }
 0x1ed   :  { %v94_v47 = vsel %vm54_vm0, %v93_v46, 0.0 }
 0x1ee   :  { %v150_v49 = vmul.f32 %v1588_v13, %v94_v47 }
 0x1f0   :  { %151 = vadd.xlane.f32.xlu1 %v150_v49 }
 0x1f4   :  { %v1631_v51 = vpop.eup %1502  ;;  %103 = vadd.xlane.f32.xlu1 %v1574_v3 }
 0x1f5   :  { %v188_v52 = vmul.f32 %v1631_v51, %v187_v50 }
 0x1f7   :  { %v191_v53 = vsel %vm190_vm6, %v188_v52, 0.0  ;;  %vm538_vm6 = vcmask 72768  }
 0x1f8   :  { %v192_v54 = vadd.f32 %v191_v53, %v131_v30 }
 0x1fa   :  { %193 = vst [vmem:[#allocation1] sm:$0xff] %v192_v54 }
 0x201   :  { %v1643_v56 = vld [vmem:[#allocation1 + $0x3] ss:$0 sm:$0xff] }
 0x202   :  { %v238_v57 = vmul.f32 %v1643_v56, %v1643_v56  ;;  %v245_v58 = vmul.f32 %v1643_v56, %v192_v54 }
 0x204   :  { %239 = vadd.xlane.f32.xlu0 %v238_v57 }
 0x208   :  { %246 = vadd.xlane.f32.xlu0 %v245_v58 }
 0x263   :  { %v200_v59 = vpop.xlane.xlu1 %199 }
 0x264   :  { %v201_v60 = vsub.f32 %v1597_v16, %v200_v59 }
 0x266   :  { %v202_v61 = vmul.f32 %v1631_v51, %v201_v60 }
 0x268   :  { %v203_v62 = vsel %vm172_vm4, %v202_v61, 0.0 }
 0x269   :  { %v204_v63 = vadd.f32 %v203_v62, %v143_v39 }
 0x26b   :  { %v259_v0 = vmul.f32 %v1643_v56, %v204_v63 }
 0x26d   :  { %260 = vadd.xlane.f32.xlu0 %v259_v0 }
 0x279   :  { %v152_v1 = vpop.xlane.xlu1 %151 }
 0x27a   :  { %v153_v2 = vsub.f32 %v1619_v34, %v152_v1 }
 0x27c   :  { %v154_v3 = vmul.f32 %v1605_v27, %v153_v2 }
 0x27d   :  { %v104_v17 = vpop.xlane.xlu1 %103 }
 0x27e   :  { %v155_v5 = vsel %vm111_vm1, %v154_v3, 0.0  ;;  %v105_v19 = vsub.f32 %v1640_v55, %v104_v17 }
 0x27f   :  { %v156_v6 = vadd.f32 %v155_v5, %v94_v47 }
 0x280   :  { %v106_v22 = vmul.f32 %v1584_v10, %v105_v19  ;;  %v359_v19 = vld [vmem:[#allocation0 + $0x5] ss:$0 sm:$0xff] }
 0x281   :  { %v211_v7 = vmul.f32 %v1610_v31, %v156_v6 }
 0x282   :  { %v107_v23 = vsel %vm54_vm0, %v106_v22, 0.0  ;;  %vm416_vm0 = vcmask 56368  }
 0x283   :  { %212 = vadd.xlane.f32.xlu1 %v211_v7  ;;  %v163_v28 = vmul.f32 %v1588_v13, %v107_v23 }
 0x28d   :  { %v240_v9 = vpop.xlane.xlu0 %239 }
 0x28e   :  { %v241_v11 = vsub.f32 %v237_v8, %v240_v9 }
 0x290   :  { %1504 = vrsqrt.f32 %v241_v11 }
 0x291   :  { %v247_v12 = vpop.xlane.xlu0 %246 }
 0x292   :  { %v248_v14 = vsub.f32 %v1579_v4, %v247_v12 }
 0x29d   :  { %v1657_v15 = vpop.eup %1504 }
 0x29e   :  { %v249_v18 = vmul.f32 %v1657_v15, %v248_v14 }
 0x2a0   :  { %v252_v20 = vsel %vm251_vm9, %v249_v18, 0.0 }
 0x2a1   :  { %v253_v21 = vadd.f32 %v252_v20, %v192_v54 }
 0x2a3   :  { %254 = vst [vmem:[#allocation1] sm:$0xff] %v253_v21 }
 0x2aa   :  { %v1665_v24 = vld [vmem:[#allocation1 + $0x4] ss:$0 sm:$0xff] }
 0x2ab   :  { %v299_v25 = vmul.f32 %v1665_v24, %v1665_v24  ;;  %v306_v26 = vmul.f32 %v1665_v24, %v253_v21 }
 0x2ad   :  { %300 = vadd.xlane.f32.xlu0 %v299_v25  ;;  %307 = vadd.xlane.f32.xlu1 %v306_v26 }
 0x2b1   :  { %164 = vadd.xlane.f32.xlu0 %v163_v28 }
 0x2f6   :  { %v261_v29 = vpop.xlane.xlu0 %260 }
 0x2f7   :  { %v262_v30 = vsub.f32 %v1597_v16, %v261_v29 }
 0x2f9   :  { %v263_v32 = vmul.f32 %v1657_v15, %v262_v30 }
 0x2fb   :  { %v264_v10 = vsel %vm233_vm7, %v263_v32, 0.0 }
 0x2fc   :  { %v265_v33 = vadd.f32 %v264_v10, %v204_v63 }
 0x2fe   :  { %v320_v35 = vmul.f32 %v1665_v24, %v265_v33 }
 0x300   :  { %321 = vadd.xlane.f32.xlu1 %v320_v35 }
 0x30c   :  { %v213_v36 = vpop.xlane.xlu1 %212 }
 0x30d   :  { %v214_v37 = vsub.f32 %v1619_v34, %v213_v36 }
 0x30f   :  { %v215_v38 = vmul.f32 %v1631_v51, %v214_v37 }
 0x311   :  { %v216_v39 = vsel %vm172_vm4, %v215_v38, 0.0 }
 0x312   :  { %v217_v13 = vadd.f32 %v216_v39, %v156_v6 }
 0x314   :  { %v272_v40 = vmul.f32 %v1643_v56, %v217_v13 }
 0x316   :  { %273 = vadd.xlane.f32.xlu0 %v272_v40 }
 0x336   :  { %v301_v42 = vpop.xlane.xlu0 %300  ;;  %v308_v49 = vpop.xlane.xlu1 %307 }
 0x337   :  { %v302_v43 = vsub.f32 %v298_v41, %v301_v42  ;;  %v309_v52 = vsub.f32 %v1579_v4, %v308_v49  ;;  %v420_v49 = vld [vmem:[#allocation0 + $0x6] ss:$0 sm:$0xff] }
 0x339   :  { %1506 = vrsqrt.f32 %v302_v43 }
 0x33a   :  { %v165_v44 = vpop.xlane.xlu0 %164 }
 0x33b   :  { %v166_v45 = vsub.f32 %v1640_v55, %v165_v44 }
 0x33d   :  { %v167_v46 = vmul.f32 %v1605_v27, %v166_v45 }
 0x33f   :  { %v168_v47 = vsel %vm111_vm1, %v167_v46, 0.0  ;;  %vm433_vm1 = vcmask 1047558  }
 0x340   :  { %v169_v48 = vadd.f32 %v168_v47, %v107_v23  ;;  %vm434_vm3 = vmand %vm416_vm0, %vm433_vm1 }
 0x342   :  { %v224_v50 = vmul.f32 %v1610_v31, %v169_v48 }
 0x344   :  { %225 = vadd.xlane.f32.xlu0 %v224_v50 }
 0x346   :  { %v1684_v53 = vpop.eup %1506 }
 0x347   :  { %v310_v54 = vmul.f32 %v1684_v53, %v309_v52 }
 0x349   :  { %v313_v57 = vsel %vm312_vm12, %v310_v54, 0.0 }
 0x34a   :  { %v314_v27 = vadd.f32 %v313_v57, %v253_v21 }
 0x34c   :  { %315 = vst [vmem:[#allocation1] sm:$0xff] %v314_v27 }
 0x353   :  { %v1689_v58 = vld [vmem:[#allocation1 + $0x5] ss:$0 sm:$0xff] }
 0x354   :  { %v360_v31 = vmul.f32 %v1689_v58, %v1689_v58  ;;  %v367_v59 = vmul.f32 %v1689_v58, %v314_v27 }
 0x356   :  { %361 = vadd.xlane.f32.xlu1 %v360_v31 }
 0x35a   :  { %368 = vadd.xlane.f32.xlu1 %v367_v59 }
 0x389   :  { %v322_v60 = vpop.xlane.xlu1 %321 }
 0x38a   :  { %v323_v61 = vsub.f32 %v1597_v16, %v322_v60 }
 0x38c   :  { %v324_v62 = vmul.f32 %v1684_v53, %v323_v61 }
 0x38e   :  { %v325_v63 = vsel %vm294_vm10, %v324_v62, 0.0 }
 0x38f   :  { %v326_v0 = vadd.f32 %v325_v63, %v265_v33 }
 0x391   :  { %v381_v1 = vmul.f32 %v1689_v58, %v326_v0 }
 0x393   :  { %382 = vadd.xlane.f32.xlu0 %v381_v1 }
 0x39f   :  { %v274_v2 = vpop.xlane.xlu0 %273 }
 0x3a0   :  { %v275_v3 = vsub.f32 %v1619_v34, %v274_v2 }
 0x3a2   :  { %v276_v5 = vmul.f32 %v1657_v15, %v275_v3 }
 0x3a4   :  { %v277_v6 = vsel %vm233_vm7, %v276_v5, 0.0 }
 0x3a5   :  { %v278_v7 = vadd.f32 %v277_v6, %v217_v13 }
 0x3a7   :  { %v333_v8 = vmul.f32 %v1665_v24, %v278_v7 }
 0x3a9   :  { %334 = vadd.xlane.f32.xlu1 %v333_v8 }
 0x3cd   :  { %v226_v9 = vpop.xlane.xlu0 %225 }
 0x3ce   :  { %v227_v11 = vsub.f32 %v1640_v55, %v226_v9 }
 0x3d0   :  { %v228_v12 = vmul.f32 %v1631_v51, %v227_v11 }
 0x3d2   :  { %v229_v14 = vsel %vm172_vm4, %v228_v12, 0.0  ;;  %vm477_vm4 = vcmask 64568  }
 0x3d3   :  { %v230_v17 = vadd.f32 %v229_v14, %v169_v48 }
 0x3d5   :  { %v285_v18 = vmul.f32 %v1643_v56, %v230_v17 }
 0x3d7   :  { %286 = vadd.xlane.f32.xlu0 %v285_v18 }
 0x3df   :  { %v362_v20 = vpop.xlane.xlu1 %361 }
 0x3e0   :  { %v363_v21 = vsub.f32 %v359_v19, %v362_v20  ;;  %v481_v19 = vld [vmem:[#allocation0 + $0x7] ss:$0 sm:$0xff] }
 0x3e2   :  { %1508 = vrsqrt.f32 %v363_v21 }
 0x3e3   :  { %v369_v22 = vpop.xlane.xlu1 %368 }
 0x3e4   :  { %v370_v23 = vsub.f32 %v1579_v4, %v369_v22 }
 0x3ef   :  { %v1707_v25 = vpop.eup %1508 }
 0x3f0   :  { %v371_v51 = vmul.f32 %v1707_v25, %v370_v23 }
 0x3f2   :  { %v374_v26 = vsel %vm373_vm15, %v371_v51, 0.0 }
 0x3f3   :  { %v375_v28 = vadd.f32 %v374_v26, %v314_v27 }
 0x3f5   :  { %376 = vst [vmem:[#allocation1] sm:$0xff] %v375_v28 }
 0x3fc   :  { %v1712_v56 = vld [vmem:[#allocation1 + $0x6] ss:$0 sm:$0xff] }
 0x3fd   :  { %v428_v29 = vmul.f32 %v1712_v56, %v375_v28  ;;  %v421_v30 = vmul.f32 %v1712_v56, %v1712_v56 }
 0x3ff   :  { %429 = vadd.xlane.f32.xlu0 %v428_v29  ;;  %422 = vadd.xlane.f32.xlu1 %v421_v30 }
 0x41c   :  { %v383_v32 = vpop.xlane.xlu0 %382 }
 0x41d   :  { %v384_v10 = vsub.f32 %v1597_v16, %v383_v32 }
 0x41f   :  { %v385_v33 = vmul.f32 %v1707_v25, %v384_v10 }
 0x421   :  { %v386_v35 = vsel %vm355_vm13, %v385_v33, 0.0 }
 0x422   :  { %v387_v36 = vadd.f32 %v386_v35, %v326_v0 }
 0x424   :  { %v442_v37 = vmul.f32 %v1712_v56, %v387_v36 }
 0x426   :  { %443 = vadd.xlane.f32.xlu1 %v442_v37 }
 0x432   :  { %v335_v38 = vpop.xlane.xlu1 %334 }
 0x433   :  { %v336_v39 = vsub.f32 %v1619_v34, %v335_v38 }
 0x435   :  { %v337_v13 = vmul.f32 %v1684_v53, %v336_v39 }
 0x437   :  { %v338_v40 = vsel %vm294_vm10, %v337_v13, 0.0 }
 0x438   :  { %v339_v41 = vadd.f32 %v338_v40, %v278_v7 }
 0x43a   :  { %v394_v42 = vmul.f32 %v1689_v58, %v339_v41 }
 0x43c   :  { %395 = vadd.xlane.f32.xlu0 %v394_v42 }
 0x460   :  { %v287_v43 = vpop.xlane.xlu0 %286 }
 0x461   :  { %v288_v44 = vsub.f32 %v1640_v55, %v287_v43  ;;  %v542_v43 = vld [vmem:[#allocation0 + $0x8] ss:$0 sm:$0xff] }
 0x463   :  { %v289_v45 = vmul.f32 %v1657_v15, %v288_v44 }
 0x465   :  { %v290_v46 = vsel %vm233_vm7, %v289_v45, 0.0  ;;  %vm587_vm7 = vcmask 80968  }
 0x466   :  { %v291_v47 = vadd.f32 %v290_v46, %v230_v17  ;;  %vm607_vm9 = vmand %vm587_vm7, %vm128_vm2 }
 0x468   :  { %v346_v48 = vmul.f32 %v1665_v24, %v291_v47 }
 0x46a   :  { %347 = vadd.xlane.f32.xlu1 %v346_v48 }
 0x488   :  { %v423_v50 = vpop.xlane.xlu1 %422  ;;  %v430_v54 = vpop.xlane.xlu0 %429 }
 0x489   :  { %v424_v52 = vsub.f32 %v420_v49, %v423_v50  ;;  %v431_v57 = vsub.f32 %v1579_v4, %v430_v54 }
 0x48b   :  { %1510 = vrsqrt.f32 %v424_v52 }
 0x498   :  { %v1730_v27 = vpop.eup %1510 }
 0x499   :  { %v432_v15 = vmul.f32 %v1730_v27, %v431_v57 }
 0x49b   :  { %v435_v31 = vsel %vm434_vm3, %v432_v15, 0.0 }
 0x49c   :  { %v436_v59 = vadd.f32 %v435_v31, %v375_v28 }
 0x49e   :  { %437 = vst [vmem:[#allocation1] sm:$0xff] %v436_v59 }
 0x4a5   :  { %v1735_v24 = vld [vmem:[#allocation1 + $0x7] ss:$0 sm:$0xff] }
 0x4a6   :  { %v482_v60 = vmul.f32 %v1735_v24, %v1735_v24 }
 0x4a8   :  { %483 = vadd.xlane.f32.xlu0 %v482_v60 }
 0x4af   :  { %v444_v61 = vpop.xlane.xlu1 %443 }
 0x4b0   :  { %v445_v62 = vsub.f32 %v1597_v16, %v444_v61 }
 0x4b2   :  { %v446_v4 = vmul.f32 %v1730_v27, %v445_v62 }
 0x4b4   :  { %v447_v63 = vsel %vm416_vm0, %v446_v4, 0.0 }
 0x4b5   :  { %v448_v0 = vadd.f32 %v447_v63, %v387_v36 }
 0x4b7   :  { %v503_v1 = vmul.f32 %v1735_v24, %v448_v0 }
 0x4b9   :  { %504 = vadd.xlane.f32.xlu1 %v503_v1 }
 0x4c5   :  { %v396_v2 = vpop.xlane.xlu0 %395 }
 0x4c6   :  { %v397_v3 = vsub.f32 %v1619_v34, %v396_v2 }
 0x4c8   :  { %v398_v5 = vmul.f32 %v1707_v25, %v397_v3 }
 0x4ca   :  { %v399_v6 = vsel %vm355_vm13, %v398_v5, 0.0 }
 0x4cb   :  { %v400_v7 = vadd.f32 %v399_v6, %v339_v41 }
 0x4cd   :  { %v455_v8 = vmul.f32 %v1712_v56, %v400_v7 }
 0x4cf   :  { %456 = vadd.xlane.f32.xlu0 %v455_v8  ;;  %v591_v8 = vld [vmem:[#allocation0 + $0x9] ss:$0 sm:$0xff] }
 0x4f3   :  { %v348_v9 = vpop.xlane.xlu1 %347 }
 0x4f4   :  { %v349_v11 = vsub.f32 %v1640_v55, %v348_v9 }
 0x4f6   :  { %v350_v12 = vmul.f32 %v1684_v53, %v349_v11 }
 0x4f8   :  { %v351_v14 = vsel %vm294_vm10, %v350_v12, 0.0  ;;  %vm638_vm10 = vcmask 89168  }
 0x4f9   :  { %v352_v17 = vadd.f32 %v351_v14, %v291_v47  ;;  %vm658_vm12 = vmand %vm638_vm10, %vm189_vm5 }
 0x4fb   :  { %v407_v18 = vmul.f32 %v1689_v58, %v352_v17 }
 0x4fd   :  { %408 = vadd.xlane.f32.xlu1 %v407_v18 }
 0x531   :  { %v484_v20 = vpop.xlane.xlu0 %483 }
 0x532   :  { %v485_v21 = vsub.f32 %v481_v19, %v484_v20 }
 0x534   :  { %1512 = vrsqrt.f32 %v485_v21 }
 0x541   :  { %v1752_v51 = vpop.eup %1512 }
 0x542   :  { %v505_v22 = vpop.xlane.xlu1 %504 }
 0x543   :  { %v506_v23 = vsub.f32 %v1597_v16, %v505_v22 }
 0x545   :  { %v507_v26 = vmul.f32 %v1752_v51, %v506_v23 }
 0x547   :  { %v508_v53 = vsel %vm477_vm4, %v507_v26, 0.0 }
 0x548   :  { %v509_v28 = vadd.f32 %v508_v53, %v448_v0 }
 0x54a   :  { %511 = vst [vmem:[#allocation1 + $0x8] sm:$0xff] %v509_v28 }
 0x551   :  { %v1756_v29 = vld [vmem:[#allocation1 + $0x8] ss:$0 sm:$0xff] }
 0x552   :  { %v552_v58 = vmul.f32 %v1756_v29, %v509_v28  ;;  %v543_v30 = vmul.f32 %v1756_v29, %v1756_v29 }
 0x554   :  { %553 = vadd.xlane.f32.xlu1 %v552_v58  ;;  %544 = vadd.xlane.f32.xlu0 %v543_v30 }
 0x558   :  { %v457_v32 = vpop.xlane.xlu0 %456 }
 0x559   :  { %v458_v10 = vsub.f32 %v1619_v34, %v457_v32 }
 0x55b   :  { %v459_v33 = vmul.f32 %v1730_v27, %v458_v10 }
 0x55d   :  { %v460_v35 = vsel %vm416_vm0, %v459_v33, 0.0 }
 0x55e   :  { %v461_v36 = vadd.f32 %v460_v35, %v400_v7 }
 0x560   :  { %v516_v37 = vmul.f32 %v1735_v24, %v461_v36 }
 0x562   :  { %517 = vadd.xlane.f32.xlu0 %v516_v37 }
 0x586   :  { %v409_v38 = vpop.xlane.xlu1 %408 }
 0x587   :  { %v410_v39 = vsub.f32 %v1640_v55, %v409_v38 }
 0x589   :  { %v411_v13 = vmul.f32 %v1707_v25, %v410_v39  ;;  %v642_v39 = vld [vmem:[#allocation0 + $0xa] ss:$0 sm:$0xff] }
 0x58b   :  { %v412_v40 = vsel %vm355_vm13, %v411_v13, 0.0  ;;  %vm689_vm13 = vcmask 97368  }
 0x58c   :  { %v413_v41 = vadd.f32 %v412_v40, %v352_v17  ;;  %vm709_vm15 = vmand %vm689_vm13, %vm250_vm8 }
 0x58e   :  { %v468_v42 = vmul.f32 %v1712_v56, %v413_v41 }
 0x590   :  { %469 = vadd.xlane.f32.xlu1 %v468_v42 }
 0x5dd   :  { %v545_v44 = vpop.xlane.xlu0 %544  ;;  %v554_v46 = vpop.xlane.xlu1 %553 }
 0x5de   :  { %v546_v45 = vsub.f32 %v542_v43, %v545_v44  ;;  %v555_v48 = vsub.f32 %v1597_v16, %v554_v46 }
 0x5e0   :  { %1514 = vrsqrt.f32 %v546_v45 }
 0x5eb   :  { %v518_v47 = vpop.xlane.xlu0 %517 }
 0x5ec   :  { %v519_v49 = vsub.f32 %v1619_v34, %v518_v47 }
 0x5ed   :  { %v1771_v50 = vpop.eup %1514 }
 0x5ee   :  { %v556_v25 = vmul.f32 %v1771_v50, %v555_v48  ;;  %v520_v52 = vmul.f32 %v1752_v51, %v519_v49 }
 0x5f0   :  { %v557_v56 = vsel %vm538_vm6, %v556_v25, 0.0  ;;  %v521_v54 = vsel %vm477_vm4, %v520_v52, 0.0 }
 0x5f1   :  { %v558_v57 = vadd.f32 %v557_v56, %v509_v28  ;;  %v522_v15 = vadd.f32 %v521_v54, %v461_v36 }
 0x5f3   :  { %560 = vst [vmem:[#allocation1 + $0x8] sm:$0xff] %v558_v57  ;;  %v565_v31 = vmul.f32 %v1756_v29, %v522_v15 }
 0x5f5   :  { %566 = vadd.xlane.f32.xlu1 %v565_v31 }
 0x5fa   :  { %v1778_v59 = vld [vmem:[#allocation1 + $0x9] ss:$0 sm:$0xff] }
 0x5fb   :  { %v592_v60 = vmul.f32 %v1778_v59, %v1778_v59  ;;  %v601_v61 = vmul.f32 %v1778_v59, %v558_v57 }
 0x5fd   :  { %593 = vadd.xlane.f32.xlu0 %v592_v60 }
 0x601   :  { %602 = vadd.xlane.f32.xlu0 %v601_v61 }
 0x619   :  { %v470_v62 = vpop.xlane.xlu1 %469 }
 0x61a   :  { %v471_v4 = vsub.f32 %v1640_v55, %v470_v62 }
 0x61c   :  { %v472_v63 = vmul.f32 %v1730_v27, %v471_v4 }
 0x61e   :  { %v473_v0 = vsel %vm416_vm0, %v472_v63, 0.0  ;;  %vm740_vm0 = vcmask 105568  }
 0x61f   :  { %v474_v1 = vadd.f32 %v473_v0, %v413_v41  ;;  %vm760_vm3 = vmand %vm740_vm0, %vm311_vm11 }
 0x621   :  { %v529_v2 = vmul.f32 %v1735_v24, %v474_v1 }
 0x623   :  { %530 = vadd.xlane.f32.xlu1 %v529_v2  ;;  %v693_v2 = vld [vmem:[#allocation0 + $0xb] ss:$0 sm:$0xff] }
 0x67e   :  { %v567_v3 = vpop.xlane.xlu1 %566 }
 0x67f   :  { %v568_v5 = vsub.f32 %v1619_v34, %v567_v3 }
 0x681   :  { %v569_v6 = vmul.f32 %v1771_v50, %v568_v5 }
 0x683   :  { %v570_v7 = vsel %vm538_vm6, %v569_v6, 0.0 }
 0x684   :  { %v571_v9 = vadd.f32 %v570_v7, %v522_v15 }
 0x686   :  { %v594_v11 = vpop.xlane.xlu0 %593  ;;  %v616_v12 = vmul.f32 %v1778_v59, %v571_v9 }
 0x687   :  { %v595_v14 = vsub.f32 %v591_v8, %v594_v11 }
 0x688   :  { %617 = vadd.xlane.f32.xlu0 %v616_v12 }
 0x689   :  { %1516 = vrsqrt.f32 %v595_v14 }
 0x68a   :  { %v603_v27 = vpop.xlane.xlu0 %602 }
 0x68b   :  { %v604_v24 = vsub.f32 %v1597_v16, %v603_v27 }
 0x696   :  { %v1517_v17 = vpop.eup %1516 }
 0x697   :  { %v605_v18 = vmul.f32 %v1517_v17, %v604_v24 }
 0x699   :  { %v608_v19 = vsel %vm607_vm9, %v605_v18, 0.0  ;;  %vm842_vm9 = vcmask 121968  }
 0x69a   :  { %v609_v20 = vadd.f32 %v608_v19, %v558_v57 }
 0x69c   :  { %611 = vst [vmem:[#allocation1 + $0x8] sm:$0xff] %v609_v20 }
 0x6a3   :  { %v640_v21 = vld [vmem:[#allocation1 + $0xa] ss:$0 sm:$0xff] }
 0x6a4   :  { %v643_v22 = vmul.f32 %v640_v21, %v640_v21  ;;  %v652_v23 = vmul.f32 %v640_v21, %v609_v20 }
 0x6a6   :  { %644 = vadd.xlane.f32.xlu1 %v643_v22  ;;  %653 = vadd.xlane.f32.xlu0 %v652_v23 }
 0x6ac   :  { %v531_v26 = vpop.xlane.xlu1 %530 }
 0x6ad   :  { %v532_v53 = vsub.f32 %v1640_v55, %v531_v26 }
 0x6af   :  { %v533_v28 = vmul.f32 %v1752_v51, %v532_v53 }
 0x6b1   :  { %v534_v58 = vsel %vm477_vm4, %v533_v28, 0.0 }
 0x6b2   :  { %v535_v30 = vadd.f32 %v534_v58, %v474_v1 }
 0x6b4   :  { %v578_v32 = vmul.f32 %v1756_v29, %v535_v30 }
 0x6b6   :  { %579 = vadd.xlane.f32.xlu1 %v578_v32  ;;  %v744_v32 = vld [vmem:[#allocation0 + $0xc] ss:$0 sm:$0xff] }
 0x711   :  { %v618_v10 = vpop.xlane.xlu0 %617 }
 0x712   :  { %v619_v33 = vsub.f32 %v1619_v34, %v618_v10 }
 0x714   :  { %v620_v35 = vmul.f32 %v1517_v17, %v619_v33 }
 0x716   :  { %v621_v36 = vsel %vm587_vm7, %v620_v35, 0.0  ;;  %v1818_v35 = vld [vmem:[#allocation0 + $0x8] sm:$0xff] }
 0x717   :  { %v622_v37 = vadd.f32 %v621_v36, %v571_v9 }
 0x719   :  { %v667_v38 = vmul.f32 %v640_v21, %v622_v37 }
 0x71b   :  { %668 = vadd.xlane.f32.xlu0 %v667_v38 }
 0x72f   :  { %v645_v13 = vpop.xlane.xlu1 %644  ;;  %v654_v41 = vpop.xlane.xlu0 %653 }
 0x730   :  { %v646_v40 = vsub.f32 %v642_v39, %v645_v13  ;;  %v655_v43 = vsub.f32 %v1597_v16, %v654_v41 }
 0x732   :  { %1518 = vrsqrt.f32 %v646_v40 }
 0x73f   :  { %v580_v42 = vpop.xlane.xlu1 %579  ;;  %v1519_v44 = vpop.eup %1518 }
 0x740   :  { %v581_v29 = vsub.f32 %v1640_v55, %v580_v42  ;;  %v656_v45 = vmul.f32 %v1519_v44, %v655_v43 }
 0x742   :  { %v582_v46 = vmul.f32 %v1771_v50, %v581_v29  ;;  %v659_v47 = vsel %vm658_vm12, %v656_v45, 0.0  ;;  %vm893_vm12 = vcmask 130168  }
 0x743   :  { %v660_v49 = vadd.f32 %v659_v47, %v609_v20 }
 0x744   :  { %v583_v48 = vsel %vm538_vm6, %v582_v46, 0.0  ;;  %vm791_vm6 = vcmask 113768  }
 0x745   :  { %v584_v25 = vadd.f32 %v583_v48, %v535_v30  ;;  %662 = vst [vmem:[#allocation1 + $0x8] sm:$0xff] %v660_v49 }
 0x747   :  { %v629_v52 = vmul.f32 %v1778_v59, %v584_v25 }
 0x749   :  { %630 = vadd.xlane.f32.xlu0 %v629_v52 }
 0x74c   :  { %v691_v56 = vld [vmem:[#allocation1 + $0xb] ss:$0 sm:$0xff] }
 0x74d   :  { %v694_v54 = vmul.f32 %v691_v56, %v691_v56  ;;  %v703_v57 = vmul.f32 %v691_v56, %v660_v49 }
 0x74f   :  { %695 = vadd.xlane.f32.xlu1 %v694_v54 }
 0x753   :  { %704 = vadd.xlane.f32.xlu1 %v703_v57 }
 0x7a4   :  { %v669_v15 = vpop.xlane.xlu0 %668 }
 0x7a5   :  { %v670_v31 = vsub.f32 %v1619_v34, %v669_v15  ;;  %v795_v15 = vld [vmem:[#allocation0 + $0xd] ss:$0 sm:$0xff] }
 0x7a7   :  { %v671_v60 = vmul.f32 %v1519_v44, %v670_v31 }
 0x7a9   :  { %v672_v50 = vsel %vm638_vm10, %v671_v60, 0.0 }
 0x7aa   :  { %v673_v61 = vadd.f32 %v672_v50, %v622_v37 }
 0x7ac   :  { %v718_v62 = vmul.f32 %v691_v56, %v673_v61 }
 0x7ae   :  { %719 = vadd.xlane.f32.xlu0 %v718_v62 }
 0x7d2   :  { %v631_v4 = vpop.xlane.xlu0 %630 }
 0x7d3   :  { %v632_v63 = vsub.f32 %v1640_v55, %v631_v4 }
 0x7d5   :  { %v633_v0 = vmul.f32 %v1517_v17, %v632_v63 }
 0x7d7   :  { %v634_v59 = vsel %vm587_vm7, %v633_v0, 0.0  ;;  %vm811_vm7 = vmand %vm791_vm6, %vm372_vm14 }
 0x7d8   :  { %v635_v1 = vadd.f32 %v634_v59, %v584_v25  ;;  %v696_v3 = vpop.xlane.xlu1 %695 }
 0x7d9   :  { %v697_v6 = vsub.f32 %v693_v2, %v696_v3  ;;  %v1830_v2 = vld [vmem:[#allocation0 + $0x10] sm:$0xff] }
 0x7da   :  { %v680_v5 = vmul.f32 %v640_v21, %v635_v1 }
 0x7db   :  { %1520 = vrsqrt.f32 %v697_v6 }
 0x7dc   :  { %681 = vadd.xlane.f32.xlu1 %v680_v5  ;;  %v705_v7 = vpop.xlane.xlu1 %704 }
 0x7dd   :  { %v706_v8 = vsub.f32 %v1597_v16, %v705_v7 }
 0x7e8   :  { %v1521_v9 = vpop.eup %1520 }
 0x7e9   :  { %v707_v11 = vmul.f32 %v1521_v9, %v706_v8 }
 0x7eb   :  { %v710_v12 = vsel %vm709_vm15, %v707_v11, 0.0  ;;  %vm980_vm15 = vcmask 146568  }
 0x7ec   :  { %v711_v14 = vadd.f32 %v710_v12, %v660_v49 }
 0x7ee   :  { %713 = vst [vmem:[#allocation1 + $0x8] sm:$0xff] %v711_v14 }
 0x7f5   :  { %v742_v27 = vld [vmem:[#allocation1 + $0xc] ss:$0 sm:$0xff] }
 0x7f6   :  { %v754_v24 = vmul.f32 %v742_v27, %v711_v14  ;;  %v745_v17 = vmul.f32 %v742_v27, %v742_v27 }
 0x7f8   :  { %755 = vadd.xlane.f32.xlu1 %v754_v24  ;;  %746 = vadd.xlane.f32.xlu0 %v745_v17 }
 0x837   :  { %v720_v18 = vpop.xlane.xlu0 %719 }
 0x838   :  { %v721_v19 = vsub.f32 %v1619_v34, %v720_v18  ;;  %v846_v18 = vld [vmem:[#allocation0 + $0xe] ss:$0 sm:$0xff] }
 0x83a   :  { %v722_v20 = vmul.f32 %v1521_v9, %v721_v19 }
 0x83c   :  { %v723_v21 = vsel %vm689_vm13, %v722_v20, 0.0 }
 0x83d   :  { %v724_v16 = vadd.f32 %v723_v21, %v673_v61 }
 0x83f   :  { %v769_v22 = vmul.f32 %v742_v27, %v724_v16 }
 0x841   :  { %770 = vadd.xlane.f32.xlu0 %v769_v22 }
 0x865   :  { %v682_v23 = vpop.xlane.xlu1 %681 }
 0x866   :  { %v683_v26 = vsub.f32 %v1640_v55, %v682_v23 }
 0x868   :  { %v684_v53 = vmul.f32 %v1519_v44, %v683_v26 }
 0x86a   :  { %v685_v28 = vsel %vm638_vm10, %v684_v53, 0.0  ;;  %vm862_vm10 = vmand %vm842_vm9, %vm433_vm1 }
 0x86b   :  { %v686_v58 = vadd.f32 %v685_v28, %v635_v1 }
 0x86d   :  { %v731_v30 = vmul.f32 %v691_v56, %v686_v58 }
 0x86f   :  { %732 = vadd.xlane.f32.xlu1 %v731_v30 }
 0x881   :  { %v747_v10 = vpop.xlane.xlu0 %746  ;;  %v756_v36 = vpop.xlane.xlu1 %755 }
 0x882   :  { %v748_v33 = vsub.f32 %v744_v32, %v747_v10  ;;  %v757_v37 = vsub.f32 %v1818_v35, %v756_v36  ;;  %v1849_v36 = vld [vmem:[#allocation0 + $0x18] sm:$0xff] }
 0x884   :  { %1522 = vrsqrt.f32 %v748_v33 }
 0x891   :  { %v1523_v38 = vpop.eup %1522 }
 0x892   :  { %v758_v39 = vmul.f32 %v1523_v38, %v757_v37 }
 0x894   :  { %v761_v13 = vsel %vm760_vm3, %v758_v39, 0.0  ;;  %vm1018_vm3 = vcmask 154768  }
 0x895   :  { %v762_v40 = vadd.f32 %v761_v13, %v711_v14 }
 0x897   :  { %764 = vst [vmem:[#allocation1 + $0x8] sm:$0xff] %v762_v40 }
 0x89e   :  { %v793_v41 = vld [vmem:[#allocation1 + $0xd] ss:$0 sm:$0xff] }
 0x89f   :  { %v805_v42 = vmul.f32 %v793_v41, %v762_v40  ;;  %v796_v43 = vmul.f32 %v793_v41, %v793_v41 }
 0x8a1   :  { %806 = vadd.xlane.f32.xlu1 %v805_v42  ;;  %797 = vadd.xlane.f32.xlu0 %v796_v43  ;;  %v897_v42 = vld [vmem:[#allocation0 + $0xf] ss:$0 sm:$0xff] }
 0x8ca   :  { %v771_v29 = vpop.xlane.xlu0 %770 }
 0x8cb   :  { %v772_v44 = vsub.f32 %v1619_v34, %v771_v29 }
 0x8cd   :  { %v773_v45 = vmul.f32 %v1523_v38, %v772_v44 }
 0x8cf   :  { %v774_v46 = vsel %vm740_vm0, %v773_v45, 0.0 }
 0x8d0   :  { %v775_v47 = vadd.f32 %v774_v46, %v724_v16 }
 0x8d2   :  { %v820_v48 = vmul.f32 %v793_v41, %v775_v47 }
 0x8d4   :  { %821 = vadd.xlane.f32.xlu0 %v820_v48 }
 0x8f8   :  { %v733_v49 = vpop.xlane.xlu1 %732 }
 0x8f9   :  { %v734_v25 = vsub.f32 %v1640_v55, %v733_v49 }
 0x8fb   :  { %v735_v52 = vmul.f32 %v1521_v9, %v734_v25 }
 0x8fd   :  { %v736_v56 = vsel %vm689_vm13, %v735_v52, 0.0  ;;  %vm944_vm13 = vcmask 138368  }
 0x8fe   :  { %v737_v54 = vadd.f32 %v736_v56, %v686_v58 }
 0x900   :  { %v782_v57 = vmul.f32 %v742_v27, %v737_v54 }
 0x902   :  { %783 = vadd.xlane.f32.xlu1 %v782_v57 }
 0x92a   :  { %v798_v31 = vpop.xlane.xlu0 %797  ;;  %v807_v34 = vpop.xlane.xlu1 %806 }
 0x92b   :  { %v799_v60 = vsub.f32 %v795_v15, %v798_v31  ;;  %v808_v50 = vsub.f32 %v1818_v35, %v807_v34 }
 0x92d   :  { %1524 = vrsqrt.f32 %v799_v60 }
 0x93a   :  { %v1525_v61 = vpop.eup %1524 }
 0x93b   :  { %v809_v62 = vmul.f32 %v1525_v61, %v808_v50  ;;  %v948_v50 = vld [vmem:[#allocation0 + $0x10] ss:$0 sm:$0xff] }
 0x93d   :  { %v812_v4 = vsel %vm811_vm7, %v809_v62, 0.0  ;;  %vm1056_vm7 = vcmask 162968  }
 0x93e   :  { %v813_v63 = vadd.f32 %v812_v4, %v762_v40 }
 0x940   :  { %815 = vst [vmem:[#allocation1 + $0x8] sm:$0xff] %v813_v63 }
 0x947   :  { %v844_v0 = vld [vmem:[#allocation1 + $0xe] ss:$0 sm:$0xff] }
 0x948   :  { %v856_v59 = vmul.f32 %v844_v0, %v813_v63  ;;  %v847_v1 = vmul.f32 %v844_v0, %v844_v0 }
 0x94a   :  { %857 = vadd.xlane.f32.xlu1 %v856_v59  ;;  %848 = vadd.xlane.f32.xlu0 %v847_v1 }
 0x95d   :  { %v822_v3 = vpop.xlane.xlu0 %821 }
 0x95e   :  { %v823_v5 = vsub.f32 %v1830_v2, %v822_v3 }
 0x960   :  { %v824_v6 = vmul.f32 %v1525_v61, %v823_v5 }
 0x962   :  { %v825_v7 = vsel %vm791_vm6, %v824_v6, 0.0 }
 0x963   :  { %v826_v8 = vadd.f32 %v825_v7, %v775_v47 }
 0x965   :  { %v871_v9 = vmul.f32 %v844_v0, %v826_v8 }
 0x967   :  { %872 = vadd.xlane.f32.xlu0 %v871_v9 }
 0x98b   :  { %v784_v11 = vpop.xlane.xlu1 %783 }
 0x98c   :  { %v785_v12 = vsub.f32 %v1640_v55, %v784_v11 }
 0x98e   :  { %v786_v14 = vmul.f32 %v1523_v38, %v785_v12 }
 0x990   :  { %v787_v27 = vsel %vm740_vm0, %v786_v14, 0.0  ;;  %vm1000_vm0 = vmand %vm980_vm15, %vm128_vm2 }
 0x991   :  { %v788_v24 = vadd.f32 %v787_v27, %v737_v54 }
 0x993   :  { %v833_v17 = vmul.f32 %v793_v41, %v788_v24 }
 0x995   :  { %834 = vadd.xlane.f32.xlu1 %v833_v17 }
 0x9d3   :  { %v849_v19 = vpop.xlane.xlu0 %848  ;;  %v858_v21 = vpop.xlane.xlu1 %857 }
 0x9d4   :  { %v850_v20 = vsub.f32 %v846_v18, %v849_v19  ;;  %v859_v16 = vsub.f32 %v1818_v35, %v858_v21 }
 0x9d6   :  { %1526 = vrsqrt.f32 %v850_v20 }
 0x9e3   :  { %v1527_v22 = vpop.eup %1526 }
 0x9e4   :  { %v860_v23 = vmul.f32 %v1527_v22, %v859_v16 }
 0x9e6   :  { %v863_v55 = vsel %vm862_vm10, %v860_v23, 0.0  ;;  %vm1094_vm10 = vcmask 171168  }
 0x9e7   :  { %v1839_v26 = vadd.f32 %v863_v55, %v813_v63 }
 0x9e9   :  { %866 = vst [vmem:[#allocation1 + $0x8] sm:$0xff] %v1839_v26 }
 0x9f0   :  { %v1842_v53 = vld [vmem:[#allocation1 + $0xf] ss:$0 sm:$0xff]  ;;  %v873_v28 = vpop.xlane.xlu0 %872 }
 0x9f1   :  { %v898_v58 = vmul.f32 %v1842_v53, %v1842_v53  ;;  %v874_v30 = vsub.f32 %v1830_v2, %v873_v28 }
 0x9f3   :  { %899 = vadd.xlane.f32.xlu0 %v898_v58  ;;  %v875_v32 = vmul.f32 %v1527_v22, %v874_v30 }
 0x9f5   :  { %v876_v10 = vsel %vm842_vm9, %v875_v32, 0.0 }
 0x9f6   :  { %v877_v33 = vadd.f32 %v876_v10, %v826_v8 }
 0x9f8   :  { %v922_v35 = vmul.f32 %v1842_v53, %v877_v33 }
 0x9fa   :  { %923 = vadd.xlane.f32.xlu1 %v922_v35 }
 0xa1e   :  { %v835_v37 = vpop.xlane.xlu1 %834 }
 0xa1f   :  { %v836_v38 = vsub.f32 %v1849_v36, %v835_v37 }
 0xa21   :  { %v837_v39 = vmul.f32 %v1525_v61, %v836_v38 }
 0xa23   :  { %v838_v13 = vsel %vm791_vm6, %v837_v39, 0.0  ;;  %vm1038_vm6 = vmand %vm1018_vm3, %vm189_vm5 }
 0xa24   :  { %v839_v40 = vadd.f32 %v838_v13, %v788_v24  ;;  %v984_v24 = vld [vmem:[#allocation0 + $0x11] ss:$0 sm:$0xff] }
 0xa26   :  { %v884_v41 = vmul.f32 %v844_v0, %v839_v40 }
 0xa28   :  { %885 = vadd.xlane.f32.xlu0 %v884_v41 }
 0xa7c   :  { %v900_v43 = vpop.xlane.xlu0 %899 }
 0xa7d   :  { %v901_v29 = vsub.f32 %v897_v42, %v900_v43  ;;  %v1022_v43 = vld [vmem:[#allocation0 + $0x12] ss:$0 sm:$0xff] }
 0xa7f   :  { %1528 = vrsqrt.f32 %v901_v29 }
 0xa83   :  { %v924_v44 = vpop.xlane.xlu1 %923 }
 0xa84   :  { %v925_v45 = vsub.f32 %v1830_v2, %v924_v44 }
 0xa8c   :  { %v1854_v46 = vpop.eup %1528 }
 0xa8d   :  { %v926_v47 = vmul.f32 %v1854_v46, %v925_v45 }
 0xa8f   :  { %v927_v48 = vsel %vm893_vm12, %v926_v47, 0.0 }
 0xa90   :  { %v928_v49 = vadd.f32 %v927_v48, %v877_v33 }
 0xa92   :  { %930 = vst [vmem:[#allocation1 + $0x10] sm:$0xff] %v928_v49 }
 0xa99   :  { %v946_v25 = vld [vmem:[#allocation1 + $0x10] ss:$0 sm:$0xff] }
 0xa9a   :  { %v958_v52 = vmul.f32 %v946_v25, %v928_v49  ;;  %v949_v56 = vmul.f32 %v946_v25, %v946_v25 }
 0xa9c   :  { %959 = vadd.xlane.f32.xlu0 %v958_v52  ;;  %950 = vadd.xlane.f32.xlu1 %v949_v56 }
 0xab1   :  { %v886_v54 = vpop.xlane.xlu0 %885 }
 0xab2   :  { %v887_v57 = vsub.f32 %v1849_v36, %v886_v54 }
 0xab4   :  { %v888_v15 = vmul.f32 %v1527_v22, %v887_v57 }
 0xab6   :  { %v889_v31 = vsel %vm842_vm9, %v888_v15, 0.0  ;;  %vm1076_vm9 = vmand %vm1056_vm7, %vm250_vm8 }
 0xab7   :  { %v890_v60 = vadd.f32 %v889_v31, %v839_v40 }
 0xab9   :  { %v935_v34 = vmul.f32 %v1842_v53, %v890_v60 }
 0xabb   :  { %936 = vadd.xlane.f32.xlu1 %v935_v34 }
 0xb25   :  { %v951_v61 = vpop.xlane.xlu1 %950  ;;  %v960_v4 = vpop.xlane.xlu0 %959 }
 0xb26   :  { %v952_v62 = vsub.f32 %v948_v50, %v951_v61  ;;  %v961_v63 = vsub.f32 %v1830_v2, %v960_v4 }
 0xb28   :  { %1530 = vrsqrt.f32 %v952_v62  ;;  %v1060_v62 = vld [vmem:[#allocation0 + $0x13] ss:$0 sm:$0xff] }
 0xb35   :  { %v1531_v0 = vpop.eup %1530 }
 0xb36   :  { %v962_v59 = vmul.f32 %v1531_v0, %v961_v63 }
 0xb38   :  { %v963_v1 = vsel %vm944_vm13, %v962_v59, 0.0 }
 0xb39   :  { %v964_v3 = vadd.f32 %v963_v1, %v928_v49 }
 0xb3b   :  { %966 = vst [vmem:[#allocation1 + $0x10] sm:$0xff] %v964_v3 }
 0xb42   :  { %v982_v6 = vld [vmem:[#allocation1 + $0x11] ss:$0 sm:$0xff] }
 0xb43   :  { %v985_v8 = vmul.f32 %v982_v6, %v982_v6  ;;  %v994_v12 = vmul.f32 %v982_v6, %v964_v3 }
 0xb44   :  { %v937_v5 = vpop.xlane.xlu1 %936 }
 0xb45   :  { %v938_v7 = vsub.f32 %v1849_v36, %v937_v5  ;;  %986 = vadd.xlane.f32.xlu0 %v985_v8 }
 0xb47   :  { %v939_v9 = vmul.f32 %v1854_v46, %v938_v7 }
 0xb49   :  { %v940_v11 = vsel %vm893_vm12, %v939_v9, 0.0  ;;  %995 = vadd.xlane.f32.xlu0 %v994_v12 }
 0xb4a   :  { %v941_v14 = vadd.f32 %v940_v11, %v890_v60 }
 0xb4c   :  { %v971_v27 = vmul.f32 %v946_v25, %v941_v14 }
 0xb4e   :  { %972 = vadd.xlane.f32.xlu1 %v971_v27 }
 0xbce   :  { %v987_v17 = vpop.xlane.xlu0 %986 }
 0xbcf   :  { %v988_v18 = vsub.f32 %v984_v24, %v987_v17 }
 0xbd1   :  { %1532 = vrsqrt.f32 %v988_v18  ;;  %v1098_v18 = vld [vmem:[#allocation0 + $0x14] ss:$0 sm:$0xff] }
 0xbd2   :  { %v996_v16 = vpop.xlane.xlu0 %995 }
 0xbd3   :  { %v997_v55 = vsub.f32 %v1830_v2, %v996_v16 }
 0xbd7   :  { %v973_v19 = vpop.xlane.xlu1 %972 }
 0xbd8   :  { %v974_v20 = vsub.f32 %v1849_v36, %v973_v19 }
 0xbda   :  { %v975_v21 = vmul.f32 %v1531_v0, %v974_v20 }
 0xbdc   :  { %v976_v22 = vsel %vm944_vm13, %v975_v21, 0.0  ;;  %vm1114_vm13 = vmand %vm1094_vm10, %vm311_vm11 }
 0xbdd   :  { %v977_v23 = vadd.f32 %v976_v22, %v941_v14 }
 0xbde   :  { %v1533_v58 = vpop.eup %1532 }
 0xbdf   :  { %v1009_v28 = vmul.f32 %v982_v6, %v977_v23  ;;  %v998_v30 = vmul.f32 %v1533_v58, %v997_v55 }
 0xbe1   :  { %1010 = vadd.xlane.f32.xlu1 %v1009_v28  ;;  %v1001_v32 = vsel %vm1000_vm0, %v998_v30, 0.0 }
 0xbe2   :  { %v1002_v10 = vadd.f32 %v1001_v32, %v964_v3 }
 0xbe4   :  { %1004 = vst [vmem:[#allocation1 + $0x10] sm:$0xff] %v1002_v10 }
 0xbeb   :  { %v1020_v33 = vld [vmem:[#allocation1 + $0x12] ss:$0 sm:$0xff] }
 0xbec   :  { %v1023_v35 = vmul.f32 %v1020_v33, %v1020_v33  ;;  %v1032_v37 = vmul.f32 %v1020_v33, %v1002_v10 }
 0xbee   :  { %1024 = vadd.xlane.f32.xlu0 %v1023_v35  ;;  %1033 = vadd.xlane.f32.xlu1 %v1032_v37 }
 0xc6a   :  { %v1011_v38 = vpop.xlane.xlu1 %1010 }
 0xc6b   :  { %v1012_v39 = vsub.f32 %v1849_v36, %v1011_v38 }
 0xc6d   :  { %v1013_v13 = vmul.f32 %v1533_v58, %v1012_v39 }
 0xc6f   :  { %v1014_v40 = vsel %vm980_vm15, %v1013_v13, 0.0  ;;  %v1136_v13 = vld [vmem:[#allocation0 + $0x15] ss:$0 sm:$0xff]  ;;  %vm1132_vm15 = vcmask 179368  }
 0xc70   :  { %v1015_v41 = vadd.f32 %v1014_v40, %v977_v23  ;;  %vm1152_vm0 = vmand %vm1132_vm15, %vm372_vm14 }
 0xc72   :  { %v1047_v42 = vmul.f32 %v1020_v33, %v1015_v41 }
 0xc74   :  { %1048 = vadd.xlane.f32.xlu0 %v1047_v42 }
 0xc77   :  { %v1025_v29 = vpop.xlane.xlu0 %1024  ;;  %v1034_v45 = vpop.xlane.xlu1 %1033 }
 0xc78   :  { %v1026_v44 = vsub.f32 %v1022_v43, %v1025_v29  ;;  %v1035_v47 = vsub.f32 %v1830_v2, %v1034_v45 }
 0xc7a   :  { %1534 = vrsqrt.f32 %v1026_v44 }
 0xc87   :  { %v1535_v48 = vpop.eup %1534 }
 0xc88   :  { %v1036_v49 = vmul.f32 %v1535_v48, %v1035_v47 }
 0xc8a   :  { %v1039_v25 = vsel %vm1038_vm6, %v1036_v49, 0.0 }
 0xc8b   :  { %v1040_v52 = vadd.f32 %v1039_v25, %v1002_v10 }
 0xc8d   :  { %1042 = vst [vmem:[#allocation1 + $0x10] sm:$0xff] %v1040_v52 }
 0xc94   :  { %v1058_v56 = vld [vmem:[#allocation1 + $0x13] ss:$0 sm:$0xff] }
 0xc95   :  { %v1070_v54 = vmul.f32 %v1058_v56, %v1040_v52  ;;  %v1061_v57 = vmul.f32 %v1058_v56, %v1058_v56 }
 0xc97   :  { %1071 = vadd.xlane.f32.xlu0 %v1070_v54  ;;  %1062 = vadd.xlane.f32.xlu1 %v1061_v57 }
 0xcfd   :  { %v1049_v15 = vpop.xlane.xlu0 %1048 }
 0xcfe   :  { %v1050_v31 = vsub.f32 %v1849_v36, %v1049_v15 }
 0xd00   :  { %v1051_v60 = vmul.f32 %v1535_v48, %v1050_v31 }
 0xd02   :  { %v1052_v34 = vsel %vm1018_vm3, %v1051_v60, 0.0  ;;  %v1174_v60 = vld [vmem:[#allocation0 + $0x16] ss:$0 sm:$0xff]  ;;  %vm1170_vm3 = vcmask 187568  }
 0xd03   :  { %v1053_v50 = vadd.f32 %v1052_v34, %v1015_v41  ;;  %vm1190_vm6 = vmand %vm1170_vm3, %vm433_vm1 }
 0xd05   :  { %v1085_v61 = vmul.f32 %v1058_v56, %v1053_v50 }
 0xd07   :  { %1086 = vadd.xlane.f32.xlu1 %v1085_v61 }
 0xd20   :  { %v1063_v4 = vpop.xlane.xlu1 %1062  ;;  %v1072_v0 = vpop.xlane.xlu0 %1071 }
 0xd21   :  { %v1064_v63 = vsub.f32 %v1060_v62, %v1063_v4  ;;  %v1073_v59 = vsub.f32 %v1830_v2, %v1072_v0 }
 0xd23   :  { %1536 = vrsqrt.f32 %v1064_v63 }
 0xd30   :  { %v1537_v1 = vpop.eup %1536 }
 0xd31   :  { %v1074_v3 = vmul.f32 %v1537_v1, %v1073_v59 }
 0xd33   :  { %v1077_v5 = vsel %vm1076_vm9, %v1074_v3, 0.0  ;;  %vm1246_vm9 = vcmask 203968  }
 0xd34   :  { %v1078_v6 = vadd.f32 %v1077_v5, %v1040_v52 }
 0xd36   :  { %1080 = vst [vmem:[#allocation1 + $0x10] sm:$0xff] %v1078_v6 }
 0xd3d   :  { %v1096_v7 = vld [vmem:[#allocation1 + $0x14] ss:$0 sm:$0xff] }
 0xd3e   :  { %v1108_v8 = vmul.f32 %v1096_v7, %v1078_v6  ;;  %v1099_v9 = vmul.f32 %v1096_v7, %v1096_v7 }
 0xd40   :  { %1109 = vadd.xlane.f32.xlu1 %v1108_v8  ;;  %1100 = vadd.xlane.f32.xlu0 %v1099_v9 }
 0xd90   :  { %v1087_v11 = vpop.xlane.xlu1 %1086 }
 0xd91   :  { %v1088_v12 = vsub.f32 %v1849_v36, %v1087_v11 }
 0xd93   :  { %v1089_v14 = vmul.f32 %v1537_v1, %v1088_v12  ;;  %v1212_v12 = vld [vmem:[#allocation0 + $0x17] ss:$0 sm:$0xff] }
 0xd95   :  { %v1090_v27 = vsel %vm1056_vm7, %v1089_v14, 0.0  ;;  %vm1208_vm7 = vcmask 195768  }
 0xd96   :  { %v1091_v24 = vadd.f32 %v1090_v27, %v1053_v50 }
 0xd98   :  { %v1123_v17 = vmul.f32 %v1096_v7, %v1091_v24 }
 0xd9a   :  { %1124 = vadd.xlane.f32.xlu0 %v1123_v17 }
 0xdc9   :  { %v1101_v19 = vpop.xlane.xlu0 %1100  ;;  %v1110_v21 = vpop.xlane.xlu1 %1109 }
 0xdca   :  { %v1102_v20 = vsub.f32 %v1098_v18, %v1101_v19  ;;  %v1111_v16 = vsub.f32 %v1830_v2, %v1110_v21 }
 0xdcc   :  { %1538 = vrsqrt.f32 %v1102_v20 }
 0xdd9   :  { %v1539_v22 = vpop.eup %1538 }
 0xdda   :  { %v1112_v23 = vmul.f32 %v1539_v22, %v1111_v16 }
 0xddc   :  { %v1115_v55 = vsel %vm1114_vm13, %v1112_v23, 0.0 }
 0xddd   :  { %v1116_v28 = vadd.f32 %v1115_v55, %v1078_v6  ;;  %v1250_v55 = vld [vmem:[#allocation0 + $0x18] ss:$0 sm:$0xff] }
 0xddf   :  { %1118 = vst [vmem:[#allocation1 + $0x10] sm:$0xff] %v1116_v28 }
 0xde6   :  { %v1134_v58 = vld [vmem:[#allocation1 + $0x15] ss:$0 sm:$0xff] }
 0xde7   :  { %v1146_v30 = vmul.f32 %v1134_v58, %v1116_v28  ;;  %v1137_v32 = vmul.f32 %v1134_v58, %v1134_v58 }
 0xde9   :  { %1147 = vadd.xlane.f32.xlu0 %v1146_v30  ;;  %1138 = vadd.xlane.f32.xlu1 %v1137_v32 }
 0xe23   :  { %v1125_v10 = vpop.xlane.xlu0 %1124 }
 0xe24   :  { %v1126_v33 = vsub.f32 %v1849_v36, %v1125_v10 }
 0xe26   :  { %v1127_v35 = vmul.f32 %v1539_v22, %v1126_v33 }
 0xe28   :  { %v1128_v37 = vsel %vm1094_vm10, %v1127_v35, 0.0  ;;  %vm1269_vm10 = vcmask 212168  }
 0xe29   :  { %v1129_v38 = vadd.f32 %v1128_v37, %v1091_v24  ;;  %vm1289_vm13 = vmand %vm1269_vm10, %vm128_vm2 }
 0xe2b   :  { %v1161_v39 = vmul.f32 %v1134_v58, %v1129_v38 }
 0xe2d   :  { %1162 = vadd.xlane.f32.xlu1 %v1161_v39 }
 0xe72   :  { %v1139_v40 = vpop.xlane.xlu1 %1138  ;;  %v1148_v42 = vpop.xlane.xlu0 %1147 }
 0xe73   :  { %v1140_v41 = vsub.f32 %v1136_v13, %v1139_v40  ;;  %v1149_v43 = vsub.f32 %v1830_v2, %v1148_v42  ;;  %v1273_v40 = vld [vmem:[#allocation0 + $0x19] ss:$0 sm:$0xff] }
 0xe75   :  { %1540 = vrsqrt.f32 %v1140_v41 }
 0xe82   :  { %v1541_v29 = vpop.eup %1540 }
 0xe83   :  { %v1150_v44 = vmul.f32 %v1541_v29, %v1149_v43 }
 0xe85   :  { %v1153_v45 = vsel %vm1152_vm0, %v1150_v44, 0.0  ;;  %vm1319_vm0 = vcmask 228568  }
 0xe86   :  { %v1154_v47 = vadd.f32 %v1153_v45, %v1116_v28 }
 0xe88   :  { %1156 = vst [vmem:[#allocation1 + $0x10] sm:$0xff] %v1154_v47 }
 0xe8f   :  { %v1172_v48 = vld [vmem:[#allocation1 + $0x16] ss:$0 sm:$0xff] }
 0xe90   :  { %v1184_v49 = vmul.f32 %v1172_v48, %v1154_v47  ;;  %v1175_v25 = vmul.f32 %v1172_v48, %v1172_v48 }
 0xe92   :  { %1185 = vadd.xlane.f32.xlu1 %v1184_v49  ;;  %1176 = vadd.xlane.f32.xlu0 %v1175_v25 }
 0xeb6   :  { %v1163_v52 = vpop.xlane.xlu1 %1162 }
 0xeb7   :  { %v1164_v56 = vsub.f32 %v1849_v36, %v1163_v52 }
 0xeb9   :  { %v1165_v54 = vmul.f32 %v1541_v29, %v1164_v56  ;;  %v1298_v56 = vld [vmem:[#allocation0 + $0x1a] ss:$0 sm:$0xff] }
 0xebb   :  { %v1166_v57 = vsel %vm1132_vm15, %v1165_v54, 0.0  ;;  %vm1294_vm15 = vcmask 220368  }
 0xebc   :  { %v1167_v15 = vadd.f32 %v1166_v57, %v1129_v38  ;;  %vm1314_vm2 = vmand %vm1294_vm15, %vm189_vm5 }
 0xebd   :  { %vm1339_vm5 = vmand %vm1319_vm0, %vm250_vm8 }
 0xebe   :  { %v1199_v31 = vmul.f32 %v1172_v48, %v1167_v15 }
 0xec0   :  { %1200 = vadd.xlane.f32.xlu0 %v1199_v31 }
 0xf1b   :  { %v1177_v34 = vpop.xlane.xlu0 %1176  ;;  %v1186_v61 = vpop.xlane.xlu1 %1185 }
 0xf1c   :  { %v1178_v50 = vsub.f32 %v1174_v60, %v1177_v34  ;;  %v1187_v62 = vsub.f32 %v1830_v2, %v1186_v61 }
 0xf1e   :  { %1542 = vrsqrt.f32 %v1178_v50 }
 0xf2b   :  { %v1543_v4 = vpop.eup %1542 }
 0xf2c   :  { %v1188_v63 = vmul.f32 %v1543_v4, %v1187_v62 }
 0xf2e   :  { %v1191_v0 = vsel %vm1190_vm6, %v1188_v63, 0.0  ;;  %vm1369_vm6 = vcmask 244968  }
 0xf2f   :  { %v1895_v59 = vadd.f32 %v1191_v0, %v1154_v47  ;;  %v1323_v0 = vld [vmem:[#allocation0 + $0x1b] ss:$0 sm:$0xff] }
 0xf31   :  { %1194 = vst [vmem:[#allocation1 + $0x10] sm:$0xff] %v1895_v59 }
 0xf38   :  { %v1898_v1 = vld [vmem:[#allocation1 + $0x17] ss:$0 sm:$0xff] }
 0xf39   :  { %v1213_v3 = vmul.f32 %v1898_v1, %v1898_v1 }
 0xf3b   :  { %1214 = vadd.xlane.f32.xlu1 %v1213_v3 }
 0xf49   :  { %v1201_v5 = vpop.xlane.xlu0 %1200 }
 0xf4a   :  { %v1202_v6 = vsub.f32 %v1849_v36, %v1201_v5 }
 0xf4c   :  { %v1203_v7 = vmul.f32 %v1543_v4, %v1202_v6 }
 0xf4e   :  { %v1204_v8 = vsel %vm1170_vm3, %v1203_v7, 0.0  ;;  %vm1344_vm3 = vcmask 236768  }
 0xf4f   :  { %v1205_v9 = vadd.f32 %v1204_v8, %v1167_v15  ;;  %vm1364_vm8 = vmand %vm1344_vm3, %vm311_vm11 }
 0xf50   :  { %vm1389_vm11 = vmand %vm1369_vm6, %vm372_vm14  ;;  %vm494_vm14 = vcmask 1047559  }
 0xf51   :  { %v1237_v11 = vmul.f32 %v1898_v1, %v1205_v9  ;;  %vm1228_vm10 = vmand %vm1208_vm7, %vm494_vm14 }
 0xf53   :  { %1238 = vadd.xlane.f32.xlu0 %v1237_v11 }
 0xfc4   :  { %v1215_v14 = vpop.xlane.xlu1 %1214 }
 0xfc5   :  { %v1216_v27 = vsub.f32 %v1212_v12, %v1215_v14 }
 0xfc7   :  { %1544 = vrsqrt.f32 %v1216_v27 }
 0xfd4   :  { %v1905_v18 = vpop.eup %1544 }
 0xfdc   :  { %v1239_v24 = vpop.xlane.xlu0 %1238 }
 0xfdd   :  { %v1240_v17 = vsub.f32 %v1849_v36, %v1239_v24 }
 0xfdf   :  { %v1241_v19 = vmul.f32 %v1905_v18, %v1240_v17  ;;  %v1348_v17 = vld [vmem:[#allocation0 + $0x1c] ss:$0 sm:$0xff] }
 0xfe1   :  { %v1242_v20 = vsel %vm1208_vm7, %v1241_v19, 0.0  ;;  %vm1419_vm7 = vcmask 261368  }
 0xfe2   :  { %v1243_v21 = vadd.f32 %v1242_v20, %v1205_v9  ;;  %vm1439_vm15 = vmand %vm1419_vm7, %vm494_vm14 }
 0xfe4   :  { %1245 = vst [vmem:[#allocation1 + $0x18] sm:$0xff] %v1243_v21 }
 0xfeb   :  { %v1248_v16 = vld [vmem:[#allocation1 + $0x18] ss:$0 sm:$0xff] }
 0xfec   :  { %v1260_v22 = vmul.f32 %v1248_v16, %v1243_v21  ;;  %v1251_v23 = vmul.f32 %v1248_v16, %v1248_v16 }
 0xfee   :  { %1261 = vadd.xlane.f32.xlu0 %v1260_v22  ;;  %1252 = vadd.xlane.f32.xlu1 %v1251_v23 }
0x1077   :  { %v1253_v28 = vpop.xlane.xlu1 %1252  ;;  %v1262_v30 = vpop.xlane.xlu0 %1261 }
0x1078   :  { %v1254_v58 = vsub.f32 %v1250_v55, %v1253_v28  ;;  %v1263_v32 = vsub.f32 %v1849_v36, %v1262_v30 }
0x107a   :  { %1546 = vrsqrt.f32 %v1254_v58 }
0x1087   :  { %v1547_v10 = vpop.eup %1546 }
0x1088   :  { %v1264_v33 = vmul.f32 %v1547_v10, %v1263_v32  ;;  %v1373_v10 = vld [vmem:[#allocation0 + $0x1d] ss:$0 sm:$0xff] }
0x108a   :  { %v1265_v35 = vsel %vm1246_vm9, %v1264_v33, 0.0  ;;  %vm495_vm9 = vmand %vm477_vm4, %vm494_vm14 }
0x108b   :  { %v1266_v37 = vadd.f32 %v1265_v35, %v1243_v21 }
0x108d   :  { %1268 = vst [vmem:[#allocation1 + $0x18] sm:$0xff] %v1266_v37 }
0x1094   :  { %v1271_v38 = vld [vmem:[#allocation1 + $0x19] ss:$0 sm:$0xff] }
0x1095   :  { %v1283_v39 = vmul.f32 %v1271_v38, %v1266_v37  ;;  %v1274_v13 = vmul.f32 %v1271_v38, %v1271_v38 }
0x1097   :  { %1284 = vadd.xlane.f32.xlu0 %v1283_v39  ;;  %1275 = vadd.xlane.f32.xlu1 %v1274_v13 }
0x1120   :  { %v1276_v41 = vpop.xlane.xlu1 %1275  ;;  %v1285_v43 = vpop.xlane.xlu0 %1284 }
0x1121   :  { %v1277_v42 = vsub.f32 %v1273_v40, %v1276_v41  ;;  %v1286_v29 = vsub.f32 %v1849_v36, %v1285_v43 }
0x1123   :  { %1548 = vrsqrt.f32 %v1277_v42 }
0x1130   :  { %v1549_v44 = vpop.eup %1548 }
0x1131   :  { %v1287_v45 = vmul.f32 %v1549_v44, %v1286_v29  ;;  %v488_v44 = vld [vmem:[#allocation1] sm:$0xff] }
0x1133   :  { %v1290_v47 = vsel %vm1289_vm13, %v1287_v45, 0.0  ;;  %v1562_v45 = vld [vmem:[#allocation1 + $0x7] ss:$0 sm:$0xff]  ;;  %vm1394_vm13 = vcmask 253168  }
0x1134   :  { %v1291_v48 = vadd.f32 %v1290_v47, %v1266_v37  ;;  %v489_v47 = vmul.f32 %v1562_v45, %v488_v44  ;;  %vm1414_vm4 = vmand %vm1394_vm13, %vm433_vm1 }
0x1135   :  { %vm913_vm1 = vmand %vm893_vm12, %vm494_vm14 }
0x1136   :  { %1293 = vst [vmem:[#allocation1 + $0x18] sm:$0xff] %v1291_v48 }
0x113d   :  { %v1296_v49 = vld [vmem:[#allocation1 + $0x1a] ss:$0 sm:$0xff] }
0x113e   :  { %v1308_v25 = vmul.f32 %v1296_v49, %v1291_v48  ;;  %v1299_v52 = vmul.f32 %v1296_v49, %v1296_v49  ;;  %v1398_v49 = vld [vmem:[#allocation0 + $0x1e] ss:$0 sm:$0xff] }
0x1140   :  { %1309 = vadd.xlane.f32.xlu0 %v1308_v25  ;;  %1300 = vadd.xlane.f32.xlu1 %v1299_v52 }
0x11c9   :  { %v1301_v54 = vpop.xlane.xlu1 %1300  ;;  %v1310_v15 = vpop.xlane.xlu0 %1309 }
0x11ca   :  { %v1302_v57 = vsub.f32 %v1298_v56, %v1301_v54  ;;  %v1311_v31 = vsub.f32 %v1849_v36, %v1310_v15  ;;  %v487_v54 = vld [vmem:[#allocation0] sm:$0xff] }
0x11cc   :  { %1550 = vrsqrt.f32 %v1302_v57 }
0x11d9   :  { %v1551_v60 = vpop.eup %1550 }
0x11da   :  { %v1312_v34 = vmul.f32 %v1551_v60, %v1311_v31 }
0x11dc   :  { %v1315_v50 = vsel %vm1314_vm2, %v1312_v34, 0.0 }
0x11dd   :  { %v1316_v61 = vadd.f32 %v1315_v50, %v1291_v48  ;;  %v1222_v48 = vmul.f32 %v1898_v1, %v1895_v59 }
0x11df   :  { %1318 = vst [vmem:[#allocation1 + $0x18] sm:$0xff] %v1316_v61 }
0x11e6   :  { %v1321_v62 = vld [vmem:[#allocation1 + $0x1b] ss:$0 sm:$0xff] }
0x11e7   :  { %v1333_v4 = vmul.f32 %v1321_v62, %v1316_v61  ;;  %v1324_v63 = vmul.f32 %v1321_v62, %v1321_v62 }
0x11e9   :  { %1334 = vadd.xlane.f32.xlu0 %v1333_v4  ;;  %1325 = vadd.xlane.f32.xlu1 %v1324_v63 }
0x1272   :  { %v1326_v3 = vpop.xlane.xlu1 %1325  ;;  %v1335_v6 = vpop.xlane.xlu0 %1334 }
0x1273   :  { %v1327_v5 = vsub.f32 %v1323_v0, %v1326_v3  ;;  %v1336_v7 = vsub.f32 %v1849_v36, %v1335_v6 }
0x1275   :  { %1552 = vrsqrt.f32 %v1327_v5 }
0x1282   :  { %v1553_v8 = vpop.eup %1552 }
0x1283   :  { %v1337_v9 = vmul.f32 %v1553_v8, %v1336_v7  ;;  %v1423_v7 = vld [vmem:[#allocation0 + $0x1f] ss:$0 sm:$0xff] }
0x1285   :  { %v1340_v11 = vsel %vm1339_vm5, %v1337_v9, 0.0 }
0x1286   :  { %v1341_v12 = vadd.f32 %v1340_v11, %v1316_v61  ;;  %v904_v11 = vld [vmem:[#allocation0 + $0x8] sm:$0xff] }
0x1288   :  { %1343 = vst [vmem:[#allocation1 + $0x18] sm:$0xff] %v1341_v12 }
0x128f   :  { %v1346_v14 = vld [vmem:[#allocation1 + $0x1c] ss:$0 sm:$0xff] }
0x1290   :  { %v1358_v27 = vmul.f32 %v1346_v14, %v1341_v12  ;;  %v1349_v24 = vmul.f32 %v1346_v14, %v1346_v14 }
0x1292   :  { %1359 = vadd.xlane.f32.xlu0 %v1358_v27  ;;  %1350 = vadd.xlane.f32.xlu1 %v1349_v24 }
0x131b   :  { %v1351_v19 = vpop.xlane.xlu1 %1350  ;;  %v1360_v21 = vpop.xlane.xlu0 %1359 }
0x131c   :  { %v1352_v20 = vsub.f32 %v1348_v17, %v1351_v19  ;;  %v1361_v16 = vsub.f32 %v1849_v36, %v1360_v21 }
0x131e   :  { %1554 = vrsqrt.f32 %v1352_v20 }
0x132b   :  { %v1555_v22 = vpop.eup %1554 }
0x132c   :  { %v1362_v23 = vmul.f32 %v1555_v22, %v1361_v16 }
0x132e   :  { %v1365_v55 = vsel %vm1364_vm8, %v1362_v23, 0.0 }
0x132f   :  { %v1366_v28 = vadd.f32 %v1365_v55, %v1341_v12 }
0x1331   :  { %1368 = vst [vmem:[#allocation1 + $0x18] sm:$0xff] %v1366_v28 }
0x1338   :  { %v1371_v58 = vld [vmem:[#allocation1 + $0x1d] ss:$0 sm:$0xff] }
0x1339   :  { %v1383_v30 = vmul.f32 %v1371_v58, %v1366_v28  ;;  %v1374_v32 = vmul.f32 %v1371_v58, %v1371_v58 }
0x133b   :  { %1384 = vadd.xlane.f32.xlu0 %v1383_v30  ;;  %1375 = vadd.xlane.f32.xlu1 %v1374_v32 }
0x13c4   :  { %v1376_v33 = vpop.xlane.xlu1 %1375  ;;  %v1385_v37 = vpop.xlane.xlu0 %1384 }
0x13c5   :  { %v1377_v35 = vsub.f32 %v1373_v10, %v1376_v33  ;;  %v1386_v38 = vsub.f32 %v1849_v36, %v1385_v37 }
0x13c7   :  { %1556 = vrsqrt.f32 %v1377_v35 }
0x13d4   :  { %v1557_v39 = vpop.eup %1556 }
0x13d5   :  { %v1387_v13 = vmul.f32 %v1557_v39, %v1386_v38 }
0x13d7   :  { %v1390_v40 = vsel %vm1389_vm11, %v1387_v13, 0.0 }
0x13d8   :  { %v1391_v41 = vadd.f32 %v1390_v40, %v1366_v28 }
0x13da   :  { %1393 = vst [vmem:[#allocation1 + $0x18] sm:$0xff] %v1391_v41 }
0x13e1   :  { %v1396_v42 = vld [vmem:[#allocation1 + $0x1e] ss:$0 sm:$0xff] }
0x13e2   :  { %v1408_v43 = vmul.f32 %v1396_v42, %v1391_v41  ;;  %v1399_v29 = vmul.f32 %v1396_v42, %v1396_v42 }
0x13e4   :  { %1409 = vadd.xlane.f32.xlu0 %v1408_v43  ;;  %1400 = vadd.xlane.f32.xlu1 %v1399_v29 }
0x13e8   :  { %490 = vadd.xlane.f32.xlu0 %v489_v47 }
0x13ec   :  { %1223 = vadd.xlane.f32.xlu0 %v1222_v48 }
0x146d   :  { %v1410_v25 = vpop.xlane.xlu0 %1409  ;;  %v1401_v52 = vpop.xlane.xlu1 %1400 }
0x146e   :  { %v1402_v56 = vsub.f32 %v1398_v49, %v1401_v52 }
0x1470   :  { %1558 = vrsqrt.f32 %v1402_v56 }
0x1471   :  { %v491_v57 = vpop.xlane.xlu0 %490 }
0x1472   :  { %v492_v15 = vsub.f32 %v487_v54, %v491_v57 }
0x1474   :  { %v493_v31 = vmul.f32 %v1752_v51, %v492_v15  ;;  %v1411_v51 = vsub.f32 %v1849_v36, %v1410_v25 }
0x1475   :  { %v1224_v60 = vpop.xlane.xlu0 %1223 }
0x1476   :  { %v496_v34 = vsel %vm495_vm9, %v493_v31, 0.0  ;;  %v1225_v50 = vsub.f32 %v1830_v2, %v1224_v60 }
0x1477   :  { %v497_v1 = vadd.f32 %v496_v34, %v488_v44 }
0x1478   :  { %v1226_v61 = vmul.f32 %v1905_v18, %v1225_v50 }
0x1479   :  { %498 = vst [vmem:[#allocation1] sm:$0xff] %v497_v1  ;;  %1479 = vst [vmem:[%s1953_s1] sm:$0xff] %v497_v1 }
0x147a   :  { %v1229_v62 = vsel %vm1228_vm10, %v1226_v61, 0.0 }
0x147b   :  { %v1230_v4 = vadd.f32 %v1229_v62, %v1895_v59  ;;  %v907_v59 = vmul.f32 %v1842_v53, %v1839_v26 }
0x147d   :  { %v1559_v63 = vpop.eup %1558  ;;  %1232 = vst [vmem:[#allocation1 + $0x10] sm:$0xff] %v1230_v4  ;;  %1483 = vst [vmem:[%s1953_s1 + $0x10] sm:$0xff] %v1230_v4 }
0x147e   :  { %v1412_v2 = vmul.f32 %v1559_v63, %v1411_v51 }
0x1480   :  { %v1415_v18 = vsel %vm1414_vm4, %v1412_v2, 0.0 }
0x1481   :  { %v1416_v0 = vadd.f32 %v1415_v18, %v1391_v41 }
0x1483   :  { %1418 = vst [vmem:[#allocation1 + $0x18] sm:$0xff] %v1416_v0 }
0x148a   :  { %v1421_v3 = vld [vmem:[#allocation1 + $0x1f] ss:$0 sm:$0xff] }
0x148b   :  { %v1424_v5 = vmul.f32 %v1421_v3, %v1421_v3  ;;  %v1433_v6 = vmul.f32 %v1421_v3, %v1416_v0 }
0x148d   :  { %1425 = vadd.xlane.f32.xlu1 %v1424_v5 }
0x1491   :  { %908 = vadd.xlane.f32.xlu1 %v907_v59 }
0x1495   :  { %1434 = vadd.xlane.f32.xlu1 %v1433_v6 }
0x1516   :  { %v1426_v8 = vpop.xlane.xlu1 %1425 }
0x1517   :  { %v1427_v9 = vsub.f32 %v1423_v7, %v1426_v8 }
0x1519   :  { %1560 = vrsqrt.f32 %v1427_v9 }
0x151a   :  { %v909_v12 = vpop.xlane.xlu1 %908 }
0x151b   :  { %v910_v14 = vsub.f32 %v904_v11, %v909_v12 }
0x151d   :  { %v911_v27 = vmul.f32 %v1854_v46, %v910_v14 }
0x151e   :  { %v1435_v53 = vpop.xlane.xlu1 %1434 }
0x151f   :  { %v914_v24 = vsel %vm913_vm1, %v911_v27, 0.0  ;;  %v1436_v19 = vsub.f32 %v1849_v36, %v1435_v53 }
0x1520   :  { %v915_v17 = vadd.f32 %v914_v24, %v1839_v26 }
0x1522   :  { %917 = vst [vmem:[#allocation1 + $0x8] sm:$0xff] %v915_v17  ;;  %1481 = vst [vmem:[%s1953_s1 + $0x8] sm:$0xff] %v915_v17 }
0x1526   :  { %v1561_v20 = vpop.eup %1560 }
0x1527   :  { %v1437_v21 = vmul.f32 %v1561_v20, %v1436_v19 }
0x1529   :  { %v1440_v16 = vsel %vm1439_vm15, %v1437_v21, 0.0 }
0x152a   :  { %v1441_v22 = vadd.f32 %v1440_v16, %v1416_v0 }
0x152c   :  { %1443 = vst [vmem:[#allocation1 + $0x18] sm:$0xff] %v1441_v22  ;;  %1485 = vst [vmem:[%s1953_s1 + $0x18] sm:$0xff] %v1441_v22 }

// kernel: custom-call.69
= control target key start
LH: loop header
LB: loop body
LE: loop exit
PB: predicated region body
PF: predicated region fallthrough
CT: control target
= control target key end

     0   :  { %v47_v0 = vlaneseq  ;;  %v732_v9 = vmov -1.0   ;;  %v733_v53 = vmov 0.0   ;;  %s886_s0 = inlined_call_operand.vmem [shape: f32[1,32,32], index: 0, kind: input, shape index: {}]   ;;  %s887_s1 = inlined_call_operand.vmem [shape: f32[1,32,32], index: 1, kind: output, shape index: {}]  }
   0x1   :  { %v36_v1 = vld [vmem:[%s886_s0] sm:$0xff]  ;;  %v38_v36 = vld [vmem:[%s886_s0 + $0x8] sm:$0xff] }
   0x2   :  { %v747_v2 = vand.u32 127, %v47_v0  ;;  %v749_v3 = vshrl.u32 %v47_v0, 7 }
   0x4   :  { %vm53_vm0 = vcmp.eq.s32.totalorder %v749_v3, %v747_v2  ;;  %vm49_vm1 = vcmp.lt.s32.totalorder %v747_v2, 32  ;;  %vm58_vm2 = vcmp.ge.s32.totalorder %v749_v3, %v747_v2  ;;  %vm120_vm4 = vcmp.eq.s32.totalorder %v747_v2, 0 }
   0x5   :  { %v55_v4 = vsel %vm53_vm0, %v36_v1, 0.0  ;;  %vm59_vm3 = vmand %vm58_vm2, %vm49_vm1  ;;  %vm117_vm5 = vcmp.eq.s32.totalorder %v747_v2, %v749_v3  ;;  %v121_v10 = vsel %vm120_vm4, 1.0, %v732_v9  ;;  %vm149_vm6 = vcmp.eq.s32.totalorder %v747_v2, 1 }
   0x6   :  { %56 = vadd.xlane.f32.xlu0 %v55_v4  ;;  %v60_v6 = vsel %vm59_vm3, %v36_v1, 0.0  ;;  %v122_v11 = vsel %vm117_vm5, %v121_v10, 0.0  ;;  %vm159_vm7 = vcmp.eq.s32.totalorder %v747_v2, 2  ;;  %vm169_vm8 = vcmp.eq.s32.totalorder %v747_v2, 3 }
   0x7   :  { %vm179_vm9 = vcmp.eq.s32.totalorder %v747_v2, 4  ;;  %v68_v31 = vadd.s32 8, %v749_v3  ;;  %vm189_vm11 = vcmp.eq.s32.totalorder %v747_v2, 5  ;;  %vm199_vm14 = vcmp.eq.s32.totalorder %v747_v2, 6 }
   0x8   :  { %vm209_vm0 = vcmp.eq.s32.totalorder %v747_v2, 7  ;;  %vm219_vm2 = vcmp.eq.s32.totalorder %v747_v2, 8  ;;  %vm233_vm3 = vcmp.eq.s32.totalorder %v747_v2, 9  ;;  %vm247_vm4 = vcmp.eq.s32.totalorder %v747_v2, 10 }
   0x9   :  { %vm69_vm10 = vcmp.eq.s32.totalorder %v68_v31, %v747_v2  ;;  %vm74_vm12 = vcmp.ge.s32.totalorder %v68_v31, %v747_v2  ;;  %vm128_vm15 = vcmp.eq.s32.totalorder %v747_v2, %v68_v31  ;;  %vm261_vm5 = vcmp.eq.s32.totalorder %v747_v2, 11 }
   0xa   :  { %v71_v37 = vsel %vm69_vm10, %v38_v36, 0.0  ;;  %vm75_vm13 = vmand %vm74_vm12, %vm49_vm1  ;;  %v129_v54 = vsel %vm128_vm15, -1.0, %v733_v53  ;;  %vm317_vm12 = vcmp.eq.s32.totalorder %v747_v2, 15  ;;  %vm349_vm15 = vcmp.eq.s32.totalorder %v747_v2, 17 }
   0xb   :  { %v76_v44 = vsel %vm75_vm13, %v38_v36, 0.0 }
  0x8f   :  { %v753_v5 = vpop.xlane.xlu0 %56 }
  0x90   :  { %724 = vrcp.f32 %v753_v5 }
  0x9d   :  { %v761_v7 = vpop.eup %724 }
  0x9e   :  { %v62_v8 = vmul.f32 %v761_v7, %v60_v6 }
  0xa0   :  { %63 = vst [vmem:[#allocation2] sm:$0xff] %v62_v8 }
  0xa7   :  { %v145_v12 = vld [vmem:[#allocation2 + $0x1] ss:$0 sm:$0xff]  ;;  %v155_v15 = vld [vmem:[#allocation2 + $0x2] ss:$0 sm:$0xff]  ;;  %v165_v20 = vld [vmem:[#allocation2 + $0x3] ss:$0 sm:$0xff] }
  0xa8   :  { %v146_v13 = vxor.u32 2147483648, %v145_v12  ;;  %v156_v17 = vxor.u32 2147483648, %v155_v15  ;;  %v166_v22 = vxor.u32 2147483648, %v165_v20  ;;  %v175_v25 = vld [vmem:[#allocation2 + $0x4] ss:$0 sm:$0xff] }
  0xa9   :  { %v176_v27 = vxor.u32 2147483648, %v175_v25  ;;  %v185_v30 = vld [vmem:[#allocation2 + $0x5] ss:$0 sm:$0xff]  ;;  %v195_v38 = vld [vmem:[#allocation2 + $0x6] ss:$0 sm:$0xff] }
  0xaa   :  { %v150_v14 = vmul.f32 %v146_v13, %v122_v11  ;;  %v186_v33 = vxor.u32 2147483648, %v185_v30  ;;  %v196_v40 = vxor.u32 2147483648, %v195_v38  ;;  %v205_v47 = vld [vmem:[#allocation2 + $0x7] ss:$0 sm:$0xff] }
  0xab   :  { %v206_v50 = vxor.u32 2147483648, %v205_v47  ;;  %v84_v47 = vadd.s32 16, %v749_v3 }
  0xac   :  { %151 = vadd.xlane.f32.xlu0 %v150_v14 }
  0xad   :  { %vm90_vm10 = vcmp.ge.s32.totalorder %v84_v47, %v747_v2  ;;  %vm135_vm13 = vcmp.eq.s32.totalorder %v747_v2, %v84_v47 }
 0x135   :  { %v152_v16 = vpop.xlane.xlu0 %151 }
 0x136   :  { %v153_v18 = vsel %vm149_vm6, %v152_v16, %v122_v11  ;;  %vm275_vm6 = vcmp.eq.s32.totalorder %v747_v2, 12 }
 0x137   :  { %v160_v19 = vmul.f32 %v156_v17, %v153_v18 }
 0x139   :  { %161 = vadd.xlane.f32.xlu1 %v160_v19 }
 0x1c2   :  { %v162_v21 = vpop.xlane.xlu1 %161 }
 0x1c3   :  { %v163_v23 = vsel %vm159_vm7, %v162_v21, %v153_v18  ;;  %vm289_vm7 = vcmp.eq.s32.totalorder %v747_v2, 13 }
 0x1c4   :  { %v170_v24 = vmul.f32 %v166_v22, %v163_v23 }
 0x1c6   :  { %171 = vadd.xlane.f32.xlu1 %v170_v24 }
 0x24f   :  { %v172_v26 = vpop.xlane.xlu1 %171 }
 0x250   :  { %v173_v28 = vsel %vm169_vm8, %v172_v26, %v163_v23  ;;  %vm85_vm8 = vcmp.eq.s32.totalorder %v84_v47, %v747_v2 }
 0x251   :  { %v180_v29 = vmul.f32 %v176_v27, %v173_v28 }
 0x253   :  { %181 = vadd.xlane.f32.xlu0 %v180_v29 }
 0x2dc   :  { %v182_v32 = vpop.xlane.xlu0 %181 }
 0x2dd   :  { %v183_v34 = vsel %vm179_vm9, %v182_v32, %v173_v28  ;;  %vm303_vm9 = vcmp.eq.s32.totalorder %v747_v2, 14 }
 0x2de   :  { %v190_v35 = vmul.f32 %v186_v33, %v183_v34 }
 0x2e0   :  { %191 = vadd.xlane.f32.xlu1 %v190_v35 }
 0x2e4   :  { %72 = vadd.xlane.f32.xlu1 %v71_v37 }
 0x369   :  { %v192_v39 = vpop.xlane.xlu1 %191 }
 0x36a   :  { %v193_v41 = vsel %vm189_vm11, %v192_v39, %v183_v34  ;;  %vm91_vm11 = vmand %vm90_vm10, %vm49_vm1  ;;  %vm475_vm10 = vcmp.eq.s32.totalorder %v747_v2, 24 }
 0x36b   :  { %v200_v42 = vmul.f32 %v196_v40, %v193_v41 }
 0x36d   :  { %201 = vadd.xlane.f32.xlu0 %v200_v42  ;;  %v777_v43 = vpop.xlane.xlu1 %72 }
 0x36e   :  { %726 = vrcp.f32 %v777_v43 }
 0x37b   :  { %v783_v45 = vpop.eup %726 }
 0x37c   :  { %v78_v46 = vmul.f32 %v783_v45, %v76_v44 }
 0x37e   :  { %79 = vst [vmem:[#allocation2 + $0x8] sm:$0xff] %v78_v46 }
 0x385   :  { %v215_v48 = vld [vmem:[#allocation2 + $0x8] ss:$0 sm:$0xff]  ;;  %v229_v59 = vld [vmem:[#allocation2 + $0x9] ss:$0 sm:$0xff]  ;;  %v243_v6 = vld [vmem:[#allocation2 + $0xa] ss:$0 sm:$0xff] }
 0x386   :  { %v216_v51 = vxor.u32 2147483648, %v215_v48  ;;  %v230_v62 = vxor.u32 2147483648, %v229_v59  ;;  %v244_v10 = vxor.u32 2147483648, %v243_v6  ;;  %v257_v15 = vld [vmem:[#allocation2 + $0xb] ss:$0 sm:$0xff] }
 0x387   :  { %v258_v18 = vxor.u32 2147483648, %v257_v15  ;;  %v271_v23 = vld [vmem:[#allocation2 + $0xc] ss:$0 sm:$0xff]  ;;  %v285_v31 = vld [vmem:[#allocation2 + $0xd] ss:$0 sm:$0xff] }
 0x388   :  { %v224_v56 = vmul.f32 %v216_v51, %v129_v54  ;;  %v272_v26 = vxor.u32 2147483648, %v271_v23  ;;  %v286_v34 = vxor.u32 2147483648, %v285_v31  ;;  %v299_v39 = vld [vmem:[#allocation2 + $0xe] ss:$0 sm:$0xff] }
 0x389   :  { %v300_v42 = vxor.u32 2147483648, %v299_v39 }
 0x3f6   :  { %v202_v49 = vpop.xlane.xlu0 %201 }
 0x3f7   :  { %v203_v52 = vsel %vm199_vm14, %v202_v49, %v193_v41  ;;  %vm331_vm14 = vcmp.eq.s32.totalorder %v747_v2, 16 }
 0x3f8   :  { %v210_v55 = vmul.f32 %v206_v50, %v203_v52 }
 0x3fa   :  { %211 = vadd.xlane.f32.xlu0 %v210_v55  ;;  %v313_v55 = vld [vmem:[#allocation2 + $0xf] ss:$0 sm:$0xff] }
 0x3fe   :  { %225 = vadd.xlane.f32.xlu0 %v224_v56 }
 0x483   :  { %v212_v57 = vpop.xlane.xlu0 %211 }
 0x484   :  { %v213_v58 = vsel %vm209_vm0, %v212_v57, %v203_v52  ;;  %v314_v57 = vxor.u32 2147483648, %v313_v55  ;;  %vm367_vm0 = vcmp.eq.s32.totalorder %v747_v2, 18 }
 0x485   :  { %v220_v60 = vmul.f32 %v216_v51, %v213_v58  ;;  %v40_v51 = vld [vmem:[%s886_s0 + $0x10] sm:$0xff] }
 0x487   :  { %v226_v61 = vpop.xlane.xlu0 %225  ;;  %221 = vadd.xlane.f32.xlu1 %v220_v60 }
 0x488   :  { %v227_v63 = vsel %vm219_vm2, %v226_v61, %v129_v54  ;;  %v87_v54 = vsel %vm85_vm8, %v40_v51, 0.0 }
 0x489   :  { %v238_v0 = vmul.f32 %v230_v62, %v227_v63 }
 0x48b   :  { %239 = vadd.xlane.f32.xlu0 %v238_v0 }
 0x510   :  { %v222_v1 = vpop.xlane.xlu1 %221 }
 0x511   :  { %v223_v4 = vsel %vm219_vm2, %v222_v1, %v213_v58  ;;  %vm385_vm2 = vcmp.eq.s32.totalorder %v747_v2, 19 }
 0x512   :  { %v234_v8 = vmul.f32 %v230_v62, %v223_v4 }
 0x514   :  { %v240_v9 = vpop.xlane.xlu0 %239  ;;  %235 = vadd.xlane.f32.xlu1 %v234_v8 }
 0x515   :  { %v241_v11 = vsel %vm233_vm3, %v240_v9, %v227_v63  ;;  %v92_v63 = vsel %vm91_vm11, %v40_v51, 0.0  ;;  %vm497_vm11 = vcmp.eq.s32.totalorder %v747_v2, 25 }
 0x516   :  { %v252_v12 = vmul.f32 %v244_v10, %v241_v11 }
 0x518   :  { %253 = vadd.xlane.f32.xlu0 %v252_v12 }
 0x59d   :  { %v236_v13 = vpop.xlane.xlu1 %235 }
 0x59e   :  { %v237_v14 = vsel %vm233_vm3, %v236_v13, %v223_v4  ;;  %vm403_vm3 = vcmp.eq.s32.totalorder %v747_v2, 20 }
 0x59f   :  { %v248_v16 = vmul.f32 %v244_v10, %v237_v14 }
 0x5a1   :  { %v254_v17 = vpop.xlane.xlu0 %253  ;;  %249 = vadd.xlane.f32.xlu1 %v248_v16 }
 0x5a2   :  { %v255_v19 = vsel %vm247_vm4, %v254_v17, %v241_v11 }
 0x5a3   :  { %v266_v20 = vmul.f32 %v258_v18, %v255_v19 }
 0x5a5   :  { %267 = vadd.xlane.f32.xlu0 %v266_v20 }
 0x62a   :  { %v250_v21 = vpop.xlane.xlu1 %249 }
 0x62b   :  { %v251_v22 = vsel %vm247_vm4, %v250_v21, %v237_v14  ;;  %v136_v14 = vsel %vm135_vm13, -1.0, %v733_v53  ;;  %vm421_vm4 = vcmp.eq.s32.totalorder %v747_v2, 21  ;;  %vm541_vm13 = vcmp.eq.s32.totalorder %v747_v2, 27 }
 0x62c   :  { %v262_v24 = vmul.f32 %v258_v18, %v251_v22 }
 0x62e   :  { %v268_v25 = vpop.xlane.xlu0 %267  ;;  %263 = vadd.xlane.f32.xlu1 %v262_v24 }
 0x62f   :  { %v269_v27 = vsel %vm261_vm5, %v268_v25, %v255_v19 }
 0x630   :  { %v280_v28 = vmul.f32 %v272_v26, %v269_v27 }
 0x632   :  { %281 = vadd.xlane.f32.xlu0 %v280_v28 }
 0x6b7   :  { %v264_v29 = vpop.xlane.xlu1 %263 }
 0x6b8   :  { %v265_v30 = vsel %vm261_vm5, %v264_v29, %v251_v22 }
 0x6b9   :  { %v276_v32 = vmul.f32 %v272_v26, %v265_v30 }
 0x6bb   :  { %v282_v33 = vpop.xlane.xlu0 %281  ;;  %277 = vadd.xlane.f32.xlu1 %v276_v32 }
 0x6bc   :  { %v283_v35 = vsel %vm275_vm6, %v282_v33, %v269_v27 }
 0x6bd   :  { %v294_v36 = vmul.f32 %v286_v34, %v283_v35 }
 0x6bf   :  { %295 = vadd.xlane.f32.xlu0 %v294_v36 }
 0x744   :  { %v278_v37 = vpop.xlane.xlu1 %277 }
 0x745   :  { %v279_v38 = vsel %vm275_vm6, %v278_v37, %v265_v30  ;;  %vm439_vm6 = vcmp.eq.s32.totalorder %v747_v2, 22 }
 0x746   :  { %v290_v40 = vmul.f32 %v286_v34, %v279_v38 }
 0x748   :  { %v296_v41 = vpop.xlane.xlu0 %295  ;;  %291 = vadd.xlane.f32.xlu1 %v290_v40 }
 0x749   :  { %v297_v44 = vsel %vm289_vm7, %v296_v41, %v283_v35 }
 0x74a   :  { %v308_v46 = vmul.f32 %v300_v42, %v297_v44 }
 0x74c   :  { %309 = vadd.xlane.f32.xlu0 %v308_v46 }
 0x7d1   :  { %v292_v48 = vpop.xlane.xlu1 %291 }
 0x7d2   :  { %v293_v49 = vsel %vm289_vm7, %v292_v48, %v279_v38 }
 0x7d3   :  { %v304_v50 = vmul.f32 %v300_v42, %v293_v49 }
 0x7d5   :  { %v310_v52 = vpop.xlane.xlu0 %309  ;;  %305 = vadd.xlane.f32.xlu1 %v304_v50 }
 0x7d6   :  { %v311_v56 = vsel %vm303_vm9, %v310_v52, %v297_v44 }
 0x7d7   :  { %v322_v58 = vmul.f32 %v314_v57, %v311_v56 }
 0x7d9   :  { %88 = vadd.xlane.f32.xlu1 %v87_v54 }
 0x7dd   :  { %323 = vadd.xlane.f32.xlu1 %v322_v58 }
 0x85e   :  { %v306_v59 = vpop.xlane.xlu1 %305 }
 0x85f   :  { %v307_v60 = vsel %vm303_vm9, %v306_v59, %v293_v49 }
 0x860   :  { %v318_v61 = vmul.f32 %v314_v57, %v307_v60 }
 0x862   :  { %319 = vadd.xlane.f32.xlu0 %v318_v61  ;;  %v802_v62 = vpop.xlane.xlu1 %88 }
 0x863   :  { %728 = vrcp.f32 %v802_v62 }
 0x866   :  { %v324_v4 = vpop.xlane.xlu1 %323 }
 0x867   :  { %v325_v9 = vsel %vm317_vm12, %v324_v4, %v311_v56 }
 0x870   :  { %v808_v0 = vpop.eup %728 }
 0x871   :  { %v94_v1 = vmul.f32 %v808_v0, %v92_v63 }
 0x873   :  { %95 = vst [vmem:[#allocation2 + $0x10] sm:$0xff] %v94_v1 }
 0x87a   :  { %v327_v6 = vld [vmem:[#allocation2 + $0x10] ss:$0 sm:$0xff]  ;;  %v345_v16 = vld [vmem:[#allocation2 + $0x11] ss:$0 sm:$0xff]  ;;  %v363_v27 = vld [vmem:[#allocation2 + $0x12] ss:$0 sm:$0xff] }
 0x87b   :  { %v328_v8 = vxor.u32 2147483648, %v327_v6  ;;  %v346_v18 = vxor.u32 2147483648, %v345_v16  ;;  %v364_v29 = vxor.u32 2147483648, %v363_v27  ;;  %v381_v38 = vld [vmem:[#allocation2 + $0x13] ss:$0 sm:$0xff] }
 0x87c   :  { %v382_v40 = vxor.u32 2147483648, %v381_v38  ;;  %v399_v51 = vld [vmem:[#allocation2 + $0x14] ss:$0 sm:$0xff]  ;;  %v417_v1 = vld [vmem:[#allocation2 + $0x15] ss:$0 sm:$0xff] }
 0x87d   :  { %v336_v10 = vmul.f32 %v328_v8, %v325_v9  ;;  %v340_v15 = vmul.f32 %v328_v8, %v136_v14  ;;  %v400_v54 = vxor.u32 2147483648, %v399_v51  ;;  %v418_v6 = vxor.u32 2147483648, %v417_v1  ;;  %v435_v16 = vld [vmem:[#allocation2 + $0x16] ss:$0 sm:$0xff] }
 0x87f   :  { %337 = vadd.xlane.f32.xlu1 %v336_v10 }
 0x8eb   :  { %v320_v11 = vpop.xlane.xlu0 %319 }
 0x8ec   :  { %v321_v12 = vsel %vm317_vm12, %v320_v11, %v307_v60  ;;  %vm519_vm12 = vcmp.eq.s32.totalorder %v747_v2, 26 }
 0x8ed   :  { %v332_v13 = vmul.f32 %v328_v8, %v321_v12 }
 0x8ef   :  { %333 = vadd.xlane.f32.xlu0 %v332_v13 }
 0x8f3   :  { %341 = vadd.xlane.f32.xlu0 %v340_v15 }
 0x908   :  { %v338_v17 = vpop.xlane.xlu1 %337 }
 0x909   :  { %v339_v19 = vsel %vm331_vm14, %v338_v17, %v325_v9  ;;  %v100_v17 = vadd.s32 24, %v749_v3 }
 0x90a   :  { %v354_v20 = vmul.f32 %v346_v18, %v339_v19 }
 0x90b   :  { %vm101_vm5 = vcmp.eq.s32.totalorder %v100_v17, %v747_v2  ;;  %vm106_vm7 = vcmp.ge.s32.totalorder %v100_v17, %v747_v2  ;;  %vm142_vm9 = vcmp.eq.s32.totalorder %v747_v2, %v100_v17 }
 0x90c   :  { %355 = vadd.xlane.f32.xlu0 %v354_v20  ;;  %vm107_vm8 = vmand %vm106_vm7, %vm49_vm1  ;;  %vm457_vm1 = vcmp.eq.s32.totalorder %v747_v2, 23 }
 0x978   :  { %v334_v21 = vpop.xlane.xlu0 %333 }
 0x979   :  { %v335_v22 = vsel %vm331_vm14, %v334_v21, %v321_v12 }
 0x97a   :  { %v350_v23 = vmul.f32 %v346_v18, %v335_v22 }
 0x97c   :  { %v342_v24 = vpop.xlane.xlu0 %341  ;;  %351 = vadd.xlane.f32.xlu1 %v350_v23 }
 0x97d   :  { %v343_v25 = vsel %vm331_vm14, %v342_v24, %v136_v14  ;;  %vm563_vm14 = vcmp.eq.s32.totalorder %v747_v2, 28 }
 0x97e   :  { %v358_v26 = vmul.f32 %v346_v18, %v343_v25 }
 0x980   :  { %359 = vadd.xlane.f32.xlu1 %v358_v26 }
 0x995   :  { %v356_v28 = vpop.xlane.xlu0 %355 }
 0x996   :  { %v357_v30 = vsel %vm349_vm15, %v356_v28, %v339_v19  ;;  %v436_v19 = vxor.u32 2147483648, %v435_v16 }
 0x997   :  { %v372_v31 = vmul.f32 %v364_v29, %v357_v30 }
 0x999   :  { %373 = vadd.xlane.f32.xlu1 %v372_v31 }
 0xa05   :  { %v352_v32 = vpop.xlane.xlu1 %351 }
 0xa06   :  { %v353_v33 = vsel %vm349_vm15, %v352_v32, %v335_v22  ;;  %v42_v22 = vld [vmem:[%s886_s0 + $0x18] sm:$0xff] }
 0xa07   :  { %v368_v34 = vmul.f32 %v364_v29, %v353_v33  ;;  %v103_v23 = vsel %vm101_vm5, %v42_v22, 0.0  ;;  %vm648_vm5 = vweird.f32 %v753_v5 }
 0xa09   :  { %369 = vadd.xlane.f32.xlu0 %v368_v34  ;;  %v360_v35 = vpop.xlane.xlu1 %359 }
 0xa0a   :  { %v361_v36 = vsel %vm349_vm15, %v360_v35, %v343_v25  ;;  %v108_v35 = vsel %vm107_vm8, %v42_v22, 0.0  ;;  %vm585_vm15 = vcmp.eq.s32.totalorder %v747_v2, 29 }
 0xa0b   :  { %v376_v37 = vmul.f32 %v364_v29, %v361_v36  ;;  %v453_v29 = vld [vmem:[#allocation2 + $0x17] ss:$0 sm:$0xff] }
 0xa0c   :  { %v454_v31 = vxor.u32 2147483648, %v453_v29 }
 0xa0d   :  { %377 = vadd.xlane.f32.xlu0 %v376_v37 }
 0xa22   :  { %v374_v39 = vpop.xlane.xlu1 %373 }
 0xa23   :  { %v375_v41 = vsel %vm367_vm0, %v374_v39, %v357_v30 }
 0xa24   :  { %v390_v42 = vmul.f32 %v382_v40, %v375_v41 }
 0xa26   :  { %391 = vadd.xlane.f32.xlu0 %v390_v42 }
 0xa92   :  { %v370_v44 = vpop.xlane.xlu0 %369 }
 0xa93   :  { %v371_v46 = vsel %vm367_vm0, %v370_v44, %v353_v33 }
 0xa94   :  { %v386_v47 = vmul.f32 %v382_v40, %v371_v46 }
 0xa96   :  { %387 = vadd.xlane.f32.xlu1 %v386_v47  ;;  %v378_v48 = vpop.xlane.xlu0 %377 }
 0xa97   :  { %v379_v49 = vsel %vm367_vm0, %v378_v48, %v361_v36  ;;  %vm607_vm0 = vcmp.eq.s32.totalorder %v747_v2, 30 }
 0xa98   :  { %v394_v50 = vmul.f32 %v382_v40, %v379_v49 }
 0xa9a   :  { %395 = vadd.xlane.f32.xlu1 %v394_v50  ;;  %v143_v50 = vsel %vm142_vm9, -1.0, %v733_v53 }
 0xaaf   :  { %v392_v52 = vpop.xlane.xlu0 %391 }
 0xab0   :  { %v393_v55 = vsel %vm385_vm2, %v392_v52, %v375_v41 }
 0xab1   :  { %v408_v56 = vmul.f32 %v400_v54, %v393_v55 }
 0xab3   :  { %409 = vadd.xlane.f32.xlu1 %v408_v56 }
 0xb1f   :  { %v388_v57 = vpop.xlane.xlu1 %387 }
 0xb20   :  { %v389_v58 = vsel %vm385_vm2, %v388_v57, %v371_v46 }
 0xb21   :  { %v404_v59 = vmul.f32 %v400_v54, %v389_v58 }
 0xb23   :  { %405 = vadd.xlane.f32.xlu0 %v404_v59  ;;  %v396_v60 = vpop.xlane.xlu1 %395 }
 0xb24   :  { %v397_v61 = vsel %vm385_vm2, %v396_v60, %v379_v49  ;;  %vm629_vm2 = vcmp.eq.s32.totalorder %v747_v2, 31 }
 0xb25   :  { %v412_v63 = vmul.f32 %v400_v54, %v397_v61 }
 0xb27   :  { %413 = vadd.xlane.f32.xlu0 %v412_v63 }
 0xb3c   :  { %v410_v4 = vpop.xlane.xlu1 %409 }
 0xb3d   :  { %v411_v8 = vsel %vm403_vm3, %v410_v4, %v393_v55 }
 0xb3e   :  { %v426_v9 = vmul.f32 %v418_v6, %v411_v8 }
 0xb40   :  { %427 = vadd.xlane.f32.xlu0 %v426_v9 }
 0xbac   :  { %v406_v10 = vpop.xlane.xlu0 %405 }
 0xbad   :  { %v407_v11 = vsel %vm403_vm3, %v406_v10, %v389_v58 }
 0xbae   :  { %v422_v12 = vmul.f32 %v418_v6, %v407_v11 }
 0xbb0   :  { %423 = vadd.xlane.f32.xlu1 %v422_v12  ;;  %v414_v13 = vpop.xlane.xlu0 %413 }
 0xbb1   :  { %v415_v14 = vsel %vm403_vm3, %v414_v13, %v397_v61  ;;  %vm653_vm3 = vweird.f32 %v777_v43 }
 0xbb2   :  { %v430_v15 = vmul.f32 %v418_v6, %v415_v14 }
 0xbb4   :  { %431 = vadd.xlane.f32.xlu1 %v430_v15 }
 0xbc9   :  { %v428_v18 = vpop.xlane.xlu0 %427 }
 0xbca   :  { %v429_v20 = vsel %vm421_vm4, %v428_v18, %v411_v8 }
 0xbcb   :  { %v444_v21 = vmul.f32 %v436_v19, %v429_v20 }
 0xbcd   :  { %445 = vadd.xlane.f32.xlu1 %v444_v21 }
 0xbd1   :  { %104 = vadd.xlane.f32.xlu1 %v103_v23 }
 0xc39   :  { %v424_v24 = vpop.xlane.xlu1 %423 }
 0xc3a   :  { %v425_v25 = vsel %vm421_vm4, %v424_v24, %v407_v11 }
 0xc3b   :  { %v440_v3 = vmul.f32 %v436_v19, %v425_v25 }
 0xc3d   :  { %441 = vadd.xlane.f32.xlu0 %v440_v3  ;;  %v432_v26 = vpop.xlane.xlu1 %431 }
 0xc3e   :  { %v433_v27 = vsel %vm421_vm4, %v432_v26, %v415_v14 }
 0xc3f   :  { %v448_v28 = vmul.f32 %v436_v19, %v433_v27 }
 0xc41   :  { %449 = vadd.xlane.f32.xlu0 %v448_v28 }
 0xc56   :  { %v446_v30 = vpop.xlane.xlu1 %445 }
 0xc57   :  { %v447_v32 = vsel %vm439_vm6, %v446_v30, %v429_v20 }
 0xc58   :  { %v462_v33 = vmul.f32 %v454_v31, %v447_v32 }
 0xc5a   :  { %463 = vadd.xlane.f32.xlu1 %v462_v33  ;;  %v834_v34 = vpop.xlane.xlu1 %104 }
 0xc5b   :  { %730 = vrcp.f32 %v834_v34  ;;  %vm665_vm4 = vweird.f32 %v834_v34 }
 0xc68   :  { %v840_v36 = vpop.eup %730 }
 0xc69   :  { %v110_v37 = vmul.f32 %v840_v36, %v108_v35 }
 0xc6b   :  { %111 = vst [vmem:[#allocation2 + $0x18] sm:$0xff] %v110_v37 }
 0xc72   :  { %v471_v46 = vld [vmem:[#allocation2 + $0x18] ss:$0 sm:$0xff]  ;;  %v493_v60 = vld [vmem:[#allocation2 + $0x19] ss:$0 sm:$0xff]  ;;  %v515_v15 = vld [vmem:[#allocation2 + $0x1a] ss:$0 sm:$0xff] }
 0xc73   :  { %v472_v47 = vxor.u32 2147483648, %v471_v46  ;;  %v494_v63 = vxor.u32 2147483648, %v493_v60  ;;  %v516_v17 = vxor.u32 2147483648, %v515_v15  ;;  %v537_v28 = vld [vmem:[#allocation2 + $0x1b] ss:$0 sm:$0xff] }
 0xc74   :  { %v538_v30 = vxor.u32 2147483648, %v537_v28  ;;  %v559_v46 = vld [vmem:[#allocation2 + $0x1c] ss:$0 sm:$0xff] }
 0xc75   :  { %v488_v52 = vmul.f32 %v472_v47, %v143_v50 }
 0xcc6   :  { %v442_v38 = vpop.xlane.xlu0 %441 }
 0xcc7   :  { %v443_v39 = vsel %vm439_vm6, %v442_v38, %v425_v25 }
 0xcc8   :  { %v458_v40 = vmul.f32 %v454_v31, %v443_v39 }
 0xcca   :  { %459 = vadd.xlane.f32.xlu0 %v458_v40  ;;  %v450_v41 = vpop.xlane.xlu0 %449 }
 0xccb   :  { %v451_v42 = vsel %vm439_vm6, %v450_v41, %v433_v27  ;;  %vm659_vm6 = vweird.f32 %v802_v62 }
 0xccc   :  { %v466_v44 = vmul.f32 %v454_v31, %v451_v42 }
 0xcce   :  { %467 = vadd.xlane.f32.xlu0 %v466_v44 }
 0xce3   :  { %v464_v48 = vpop.xlane.xlu1 %463 }
 0xce4   :  { %v465_v49 = vsel %vm457_vm1, %v464_v48, %v447_v32  ;;  %v560_v48 = vxor.u32 2147483648, %v559_v46 }
 0xce5   :  { %v480_v51 = vmul.f32 %v472_v47, %v465_v49 }
 0xce7   :  { %481 = vadd.xlane.f32.xlu0 %v480_v51 }
 0xceb   :  { %489 = vadd.xlane.f32.xlu0 %v488_v52 }
 0xd53   :  { %v460_v54 = vpop.xlane.xlu0 %459 }
 0xd54   :  { %v461_v55 = vsel %vm457_vm1, %v460_v54, %v443_v39 }
 0xd55   :  { %v476_v56 = vmul.f32 %v472_v47, %v461_v55 }
 0xd57   :  { %v468_v57 = vpop.xlane.xlu0 %467  ;;  %477 = vadd.xlane.f32.xlu1 %v476_v56 }
 0xd58   :  { %v469_v58 = vsel %vm457_vm1, %v468_v57, %v451_v42 }
 0xd59   :  { %v484_v59 = vmul.f32 %v472_v47, %v469_v58 }
 0xd5b   :  { %485 = vadd.xlane.f32.xlu1 %v484_v59 }
 0xd70   :  { %v482_v61 = vpop.xlane.xlu0 %481 }
 0xd71   :  { %v483_v1 = vsel %vm475_vm10, %v482_v61, %v465_v49  ;;  %v581_v61 = vld [vmem:[#allocation2 + $0x1d] ss:$0 sm:$0xff] }
 0xd72   :  { %v502_v4 = vmul.f32 %v494_v63, %v483_v1 }
 0xd74   :  { %503 = vadd.xlane.f32.xlu0 %v502_v4  ;;  %v490_v53 = vpop.xlane.xlu0 %489 }
 0xd75   :  { %v491_v6 = vsel %vm475_vm10, %v490_v53, %v143_v50 }
 0xd76   :  { %v510_v8 = vmul.f32 %v494_v63, %v491_v6 }
 0xd78   :  { %511 = vadd.xlane.f32.xlu0 %v510_v8 }
 0xde0   :  { %v478_v9 = vpop.xlane.xlu1 %477 }
 0xde1   :  { %v479_v10 = vsel %vm475_vm10, %v478_v9, %v461_v55 }
 0xde2   :  { %v498_v11 = vmul.f32 %v494_v63, %v479_v10 }
 0xde4   :  { %499 = vadd.xlane.f32.xlu1 %v498_v11  ;;  %v486_v12 = vpop.xlane.xlu1 %485 }
 0xde5   :  { %v487_v13 = vsel %vm475_vm10, %v486_v12, %v469_v58 }
 0xde6   :  { %v506_v14 = vmul.f32 %v494_v63, %v487_v13 }
 0xde8   :  { %507 = vadd.xlane.f32.xlu1 %v506_v14 }
 0xdfd   :  { %v504_v16 = vpop.xlane.xlu0 %503 }
 0xdfe   :  { %v505_v18 = vsel %vm497_vm11, %v504_v16, %v483_v1  ;;  %v582_v1 = vxor.u32 2147483648, %v581_v61  ;;  %v603_v16 = vld [vmem:[#allocation2 + $0x1e] ss:$0 sm:$0xff] }
 0xdff   :  { %v524_v19 = vmul.f32 %v516_v17, %v505_v18 }
 0xe01   :  { %525 = vadd.xlane.f32.xlu0 %v524_v19  ;;  %v512_v20 = vpop.xlane.xlu0 %511 }
 0xe02   :  { %v513_v21 = vsel %vm497_vm11, %v512_v20, %v491_v6 }
 0xe03   :  { %v532_v22 = vmul.f32 %v516_v17, %v513_v21 }
 0xe05   :  { %533 = vadd.xlane.f32.xlu0 %v532_v22 }
 0xe6d   :  { %v500_v23 = vpop.xlane.xlu1 %499 }
 0xe6e   :  { %v501_v24 = vsel %vm497_vm11, %v500_v23, %v479_v10 }
 0xe6f   :  { %v520_v25 = vmul.f32 %v516_v17, %v501_v24 }
 0xe71   :  { %521 = vadd.xlane.f32.xlu1 %v520_v25  ;;  %v508_v3 = vpop.xlane.xlu1 %507 }
 0xe72   :  { %v509_v26 = vsel %vm497_vm11, %v508_v3, %v487_v13 }
 0xe73   :  { %v528_v27 = vmul.f32 %v516_v17, %v509_v26 }
 0xe75   :  { %529 = vadd.xlane.f32.xlu1 %v528_v27 }
 0xe8a   :  { %v526_v29 = vpop.xlane.xlu0 %525 }
 0xe8b   :  { %v527_v31 = vsel %vm519_vm12, %v526_v29, %v505_v18  ;;  %v604_v18 = vxor.u32 2147483648, %v603_v16  ;;  %v625_v29 = vld [vmem:[#allocation2 + $0x1f] ss:$0 sm:$0xff] }
 0xe8c   :  { %v546_v32 = vmul.f32 %v538_v30, %v527_v31 }
 0xe8e   :  { %547 = vadd.xlane.f32.xlu0 %v546_v32  ;;  %v534_v33 = vpop.xlane.xlu0 %533 }
 0xe8f   :  { %v535_v35 = vsel %vm519_vm12, %v534_v33, %v513_v21 }
 0xe90   :  { %v554_v37 = vmul.f32 %v538_v30, %v535_v35 }
 0xe92   :  { %555 = vadd.xlane.f32.xlu0 %v554_v37 }
 0xefa   :  { %v522_v38 = vpop.xlane.xlu1 %521 }
 0xefb   :  { %v523_v39 = vsel %vm519_vm12, %v522_v38, %v501_v24 }
 0xefc   :  { %v542_v40 = vmul.f32 %v538_v30, %v523_v39 }
 0xefe   :  { %543 = vadd.xlane.f32.xlu1 %v542_v40  ;;  %v530_v41 = vpop.xlane.xlu1 %529 }
 0xeff   :  { %v531_v42 = vsel %vm519_vm12, %v530_v41, %v509_v26 }
 0xf00   :  { %v550_v44 = vmul.f32 %v538_v30, %v531_v42 }
 0xf02   :  { %551 = vadd.xlane.f32.xlu1 %v550_v44 }
 0xf17   :  { %v548_v47 = vpop.xlane.xlu0 %547 }
 0xf18   :  { %v549_v49 = vsel %vm541_vm13, %v548_v47, %v527_v31  ;;  %v626_v31 = vxor.u32 2147483648, %v625_v29 }
 0xf19   :  { %v568_v50 = vmul.f32 %v560_v48, %v549_v49 }
 0xf1b   :  { %569 = vadd.xlane.f32.xlu0 %v568_v50  ;;  %v556_v51 = vpop.xlane.xlu0 %555 }
 0xf1c   :  { %v557_v52 = vsel %vm541_vm13, %v556_v51, %v535_v35 }
 0xf1d   :  { %v576_v54 = vmul.f32 %v560_v48, %v557_v52 }
 0xf1f   :  { %577 = vadd.xlane.f32.xlu0 %v576_v54 }
 0xf87   :  { %v544_v55 = vpop.xlane.xlu1 %543 }
 0xf88   :  { %v545_v56 = vsel %vm541_vm13, %v544_v55, %v523_v39 }
 0xf89   :  { %v564_v57 = vmul.f32 %v560_v48, %v545_v56 }
 0xf8b   :  { %565 = vadd.xlane.f32.xlu1 %v564_v57  ;;  %v552_v58 = vpop.xlane.xlu1 %551 }
 0xf8c   :  { %v553_v59 = vsel %vm541_vm13, %v552_v58, %v531_v42 }
 0xf8d   :  { %v572_v60 = vmul.f32 %v560_v48, %v553_v59 }
 0xf8f   :  { %573 = vadd.xlane.f32.xlu1 %v572_v60 }
 0xfa4   :  { %v570_v63 = vpop.xlane.xlu0 %569 }
 0xfa5   :  { %v571_v4 = vsel %vm563_vm14, %v570_v63, %v549_v49 }
 0xfa6   :  { %v590_v53 = vmul.f32 %v582_v1, %v571_v4 }
 0xfa8   :  { %591 = vadd.xlane.f32.xlu0 %v590_v53  ;;  %v578_v6 = vpop.xlane.xlu0 %577 }
 0xfa9   :  { %v579_v8 = vsel %vm563_vm14, %v578_v6, %v557_v52 }
 0xfaa   :  { %v598_v9 = vmul.f32 %v582_v1, %v579_v8 }
 0xfac   :  { %599 = vadd.xlane.f32.xlu0 %v598_v9 }
0x1014   :  { %v566_v10 = vpop.xlane.xlu1 %565 }
0x1015   :  { %v567_v11 = vsel %vm563_vm14, %v566_v10, %v545_v56 }
0x1016   :  { %v586_v12 = vmul.f32 %v582_v1, %v567_v11 }
0x1018   :  { %587 = vadd.xlane.f32.xlu1 %v586_v12  ;;  %v574_v13 = vpop.xlane.xlu1 %573 }
0x1019   :  { %v575_v14 = vsel %vm563_vm14, %v574_v13, %v553_v59 }
0x101a   :  { %v594_v15 = vmul.f32 %v582_v1, %v575_v14 }
0x101c   :  { %595 = vadd.xlane.f32.xlu1 %v594_v15 }
0x1031   :  { %v592_v17 = vpop.xlane.xlu0 %591 }
0x1032   :  { %v593_v19 = vsel %vm585_vm15, %v592_v17, %v571_v4 }
0x1033   :  { %v612_v20 = vmul.f32 %v604_v18, %v593_v19 }
0x1035   :  { %613 = vadd.xlane.f32.xlu0 %v612_v20  ;;  %v600_v21 = vpop.xlane.xlu0 %599 }
0x1036   :  { %v601_v22 = vsel %vm585_vm15, %v600_v21, %v579_v8 }
0x1037   :  { %v620_v23 = vmul.f32 %v604_v18, %v601_v22 }
0x1039   :  { %621 = vadd.xlane.f32.xlu0 %v620_v23 }
0x10a1   :  { %v588_v24 = vpop.xlane.xlu1 %587 }
0x10a2   :  { %v589_v25 = vsel %vm585_vm15, %v588_v24, %v567_v11 }
0x10a3   :  { %v608_v3 = vmul.f32 %v604_v18, %v589_v25 }
0x10a5   :  { %609 = vadd.xlane.f32.xlu1 %v608_v3  ;;  %v596_v26 = vpop.xlane.xlu1 %595 }
0x10a6   :  { %v597_v27 = vsel %vm585_vm15, %v596_v26, %v575_v14 }
0x10a7   :  { %v616_v28 = vmul.f32 %v604_v18, %v597_v27 }
0x10a9   :  { %617 = vadd.xlane.f32.xlu1 %v616_v28 }
0x10be   :  { %v614_v30 = vpop.xlane.xlu0 %613 }
0x10bf   :  { %v615_v32 = vsel %vm607_vm0, %v614_v30, %v593_v19 }
0x10c0   :  { %v634_v33 = vmul.f32 %v626_v31, %v615_v32 }
0x10c2   :  { %635 = vadd.xlane.f32.xlu0 %v634_v33  ;;  %v622_v35 = vpop.xlane.xlu0 %621 }
0x10c3   :  { %v623_v37 = vsel %vm607_vm0, %v622_v35, %v601_v22 }
0x10c4   :  { %v642_v38 = vmul.f32 %v626_v31, %v623_v37 }
0x10c6   :  { %643 = vadd.xlane.f32.xlu0 %v642_v38 }
0x112e   :  { %v610_v39 = vpop.xlane.xlu1 %609 }
0x112f   :  { %v611_v40 = vsel %vm607_vm0, %v610_v39, %v589_v25 }
0x1130   :  { %v630_v41 = vmul.f32 %v626_v31, %v611_v40 }
0x1132   :  { %631 = vadd.xlane.f32.xlu1 %v630_v41  ;;  %v618_v42 = vpop.xlane.xlu1 %617 }
0x1133   :  { %v619_v44 = vsel %vm607_vm0, %v618_v42, %v597_v27 }
0x1134   :  { %v638_v46 = vmul.f32 %v626_v31, %v619_v44 }
0x1136   :  { %639 = vadd.xlane.f32.xlu1 %v638_v46 }
0x114b   :  { %v636_v47 = vpop.xlane.xlu0 %635 }
0x114c   :  { %v637_v48 = vsel %vm629_vm2, %v636_v47, %v615_v32 }
0x114d   :  { %v652_v49 = vmul.f32 %v783_v45, %v637_v48 }
0x114f   :  { %v654_v50 = vsel %vm653_vm3, %v637_v48, %v652_v49  ;;  %v644_v51 = vpop.xlane.xlu0 %643 }
0x1150   :  { %706 = vst [vmem:[%s887_s1 + $0x8] sm:$0xff] %v654_v50  ;;  %v645_v52 = vsel %vm629_vm2, %v644_v51, %v623_v37 }
0x1151   :  { %v664_v54 = vmul.f32 %v840_v36, %v645_v52 }
0x1153   :  { %v666_v55 = vsel %vm665_vm4, %v645_v52, %v664_v54 }
0x1154   :  { %710 = vst [vmem:[%s887_s1 + $0x18] sm:$0xff] %v666_v55 }
0x11bb   :  { %v632_v45 = vpop.xlane.xlu1 %631 }
0x11bc   :  { %v633_v43 = vsel %vm629_vm2, %v632_v45, %v611_v40 }
0x11bd   :  { %v647_v56 = vmul.f32 %v761_v7, %v633_v43 }
0x11bf   :  { %v649_v57 = vsel %vm648_vm5, %v633_v43, %v647_v56  ;;  %v640_v58 = vpop.xlane.xlu1 %639 }
0x11c0   :  { %704 = vst [vmem:[%s887_s1] sm:$0xff] %v649_v57  ;;  %v641_v34 = vsel %vm629_vm2, %v640_v58, %v619_v44 }
0x11c1   :  { %v658_v36 = vmul.f32 %v808_v0, %v641_v34 }
0x11c3   :  { %v660_v59 = vsel %vm659_vm6, %v641_v34, %v658_v36 }
0x11c4   :  { %708 = vst [vmem:[%s887_s1 + $0x10] sm:$0xff] %v660_v59 }

// kernel: custom-call.34
= control target key start
LH: loop header
LB: loop body
LE: loop exit
PB: predicated region body
PF: predicated region fallthrough
CT: control target
= control target key end

     0   :  { %s3492_s0 = inlined_call_operand.vmem [shape: f32[16,16], index: 0, kind: input, shape index: {}]   ;;  %s3493_s1 = inlined_call_operand.vmem [shape: f32[16,16], index: 1, kind: input, shape index: {}]   ;;  %s3494_s2 = inlined_call_operand.vmem [shape: f32[16,16], index: 2, kind: input, shape index: {}]   ;;  %s3495_s3 = inlined_call_operand.vmem [shape: f32[16,16], index: 3, kind: input, shape index: {}]   ;;  %s3496_s4 = inlined_call_operand.vmem [shape: f32[16], index: 4, kind: output, shape index: {0}]   ;;  %s3497_s5 = inlined_call_operand.vmem [shape: f32[16], index: 5, kind: output, shape index: {1}]   ;;  %s3498_s6 = inlined_call_operand.vmem [shape: f32[16,16], index: 6, kind: output, shape index: {2}]   ;;  %s3499_s7 = inlined_call_operand.vmem [shape: f32[16,16], index: 7, kind: output, shape index: {3}]   ;;  %s3500_s8 = inlined_call_operand.vmem [shape: f32[16,16], index: 8, kind: output, shape index: {4}]   ;;  %s3501_s9 = inlined_call_operand.vmem [shape: f32[16,16], index: 9, kind: output, shape index: {5}]  }
   0x1   :  { %s24_s11 = scalar_lea.vmem %s3492_s0, 8 }
   0x2   :  { %p1755_p0 = scmp.gt.s32.totalorder %s3492_s0, %s24_s11 }
   0x3   :  { %s2932_s14 = smov (!%p1755_p0), [#allocation0]   ;;  %s2936_s17 = smov (!%p1755_p0), %s3492_s0  }
   0x4   :  { %1756 = sbr.rel (%p1755_p0) target bundleno = 17 (0x11), region = 421 }
   0x9 LB: > { %v58_v0 = vld [vmem:[%s2938_s17] sm:$0xff]  ;;  %s60_s17 = scalar_lea.vmem %s2938_s17, 8   ;;  %s2938_s17 = sphi %s2936_s17, %s60_s17   ;;  %s2934_s14 = sphi %s2932_s14, %s61_s14  }
   0xa   : > { %59 = vst [vmem:[%s2934_s14] sm:$0xff] %v58_v0  ;;  %s61_s14 = scalar_lea.vmem %s2934_s14, 8   ;;  %p55_p1 = scmp.gt.s32.totalorder %s60_s17, %s24_s11 }
   0xc   :  { %57 = sbr.rel (!%p55_p1) target bundleno = 9 (0x9), region = 427 }
  0x11 PF:  { %s87_s20 = scalar_lea.vmem %s3493_s1, 8 }
  0x12   :  { %p1775_p2 = scmp.gt.s32.totalorder %s3493_s1, %s87_s20 }
  0x13   :  { %s2940_s0 = smov (!%p1775_p2), [#allocation1]   ;;  %s2944_s25 = smov (!%p1775_p2), %s3493_s1  }
  0x14   :  { %1776 = sbr.rel (%p1775_p2) target bundleno = 33 (0x21), region = 443 }
  0x19 LB: > { %v121_v1 = vld [vmem:[%s2946_s25] sm:$0xff]  ;;  %s123_s25 = scalar_lea.vmem %s2946_s25, 8   ;;  %s2946_s25 = sphi %s2944_s25, %s123_s25   ;;  %s2942_s0 = sphi %s2940_s0, %s124_s0  }
  0x1a   : > { %122 = vst [vmem:[%s2942_s0] sm:$0xff] %v121_v1  ;;  %s124_s0 = scalar_lea.vmem %s2942_s0, 8   ;;  %p118_p3 = scmp.gt.s32.totalorder %s123_s25, %s87_s20 }
  0x1c   :  { %120 = sbr.rel (!%p118_p3) target bundleno = 25 (0x19), region = 449 }
  0x21 PF:  { %s150_s28 = scalar_lea.vmem %s3494_s2, 8 }
  0x22   :  { %p1795_p4 = scmp.gt.s32.totalorder %s3494_s2, %s150_s28 }
  0x23   :  { %s2948_s1 = smov (!%p1795_p4), [#allocation2]   ;;  %s2952_s12 = smov (!%p1795_p4), %s3494_s2  }
  0x24   :  { %1796 = sbr.rel (%p1795_p4) target bundleno = 49 (0x31), region = 465 }
  0x29 LB: > { %v184_v2 = vld [vmem:[%s2954_s12] sm:$0xff]  ;;  %s186_s12 = scalar_lea.vmem %s2954_s12, 8   ;;  %s2954_s12 = sphi %s2952_s12, %s186_s12   ;;  %s2950_s1 = sphi %s2948_s1, %s187_s1  }
  0x2a   : > { %185 = vst [vmem:[%s2950_s1] sm:$0xff] %v184_v2  ;;  %s187_s1 = scalar_lea.vmem %s2950_s1, 8   ;;  %p181_p5 = scmp.gt.s32.totalorder %s186_s12, %s150_s28 }
  0x2c   :  { %183 = sbr.rel (!%p181_p5) target bundleno = 41 (0x29), region = 471 }
  0x31 PF:  { %s213_s15 = scalar_lea.vmem %s3495_s3, 8 }
  0x32   :  { %p1815_p6 = scmp.gt.s32.totalorder %s3495_s3, %s213_s15 }
  0x33   :  { %s2956_s2 = smov (!%p1815_p6), [#allocation3]   ;;  %s2960_s20 = smov (!%p1815_p6), %s3495_s3  }
  0x34   :  { %1816 = sbr.rel (%p1815_p6) target bundleno = 65 (0x41), region = 487 }
  0x39 LB: > { %v247_v3 = vld [vmem:[%s2962_s20] sm:$0xff]  ;;  %s249_s20 = scalar_lea.vmem %s2962_s20, 8   ;;  %s2962_s20 = sphi %s2960_s20, %s249_s20   ;;  %s2958_s2 = sphi %s2956_s2, %s250_s2  }
  0x3a   : > { %248 = vst [vmem:[%s2958_s2] sm:$0xff] %v247_v3  ;;  %s250_s2 = scalar_lea.vmem %s2958_s2, 8   ;;  %p244_p7 = scmp.gt.s32.totalorder %s249_s20, %s213_s15 }
  0x3c   :  { %246 = sbr.rel (!%p244_p7) target bundleno = 57 (0x39), region = 493 }
  0x41 PF:  { %s263_s21 = smov [#allocation12]  ;;  %v264_v4 = vld [vmem:[#allocation0] sm:$0xff]  ;;  %v268_v5 = vld [vmem:[#allocation0 + $0x8] sm:$0xff]  ;;  %s270_s22 = smov [#allocation13]  ;;  %v271_v6 = vld [vmem:[#allocation1] sm:$0xff]  ;;  %v304_v7 = vlaneseq  ;;  %v3004_v11 = vmov 0.0  }
  0x42   :  { %265 = vst [vmem:[%s263_s21] sm:$0xff] %v264_v4  ;;  %2080 = vst [vmem:[%s263_s21 + $0x8] sm:$0xff] %v268_v5  ;;  %v275_v8 = vld [vmem:[#allocation1 + $0x8] sm:$0xff]  ;;  %s277_s3 = smov [#allocation14]  ;;  %v278_v9 = vld [vmem:[#allocation2] sm:$0xff]  ;;  %s284_s0 = smov [#allocation15] }
  0x43   :  { %272 = vst [vmem:[%s270_s22] sm:$0xff] %v271_v6  ;;  %v282_v10 = vld [vmem:[#allocation2 + $0x8] sm:$0xff]  ;;  %291 = vst [vmem:[#allocation8] sm:$0xff] %v3004_v11  ;;  %v285_v12 = vld [vmem:[#allocation3] sm:$0xff]  ;;  %v3093_v14 = vand.u32 127, %v304_v7  ;;  %v3095_v15 = vshrl.u32 %v304_v7, 7  ;;  %s303_s23 = smov [#allocation8] }
  0x44   :  { %293 = vst [vmem:[#allocation8 + $0x8] sm:$0xff] %v3004_v11  ;;  %294 = vst [vmem:[#allocation9] sm:$0xff] %v3004_v11  ;;  %v289_v13 = vld [vmem:[#allocation3 + $0x8] sm:$0xff]  ;;  %s323_s24 = smov [#allocation11]  ;;  %s1833_s25 = smov [#allocation12] }
  0x45   :  { %296 = vst [vmem:[#allocation9 + $0x8] sm:$0xff] %v3004_v11  ;;  %297 = vst [vmem:[#allocation10] sm:$0xff] %v3004_v11  ;;  %v306_v14 = vmov %v3093_v14  ;;  %v309_v15 = vmov %v3095_v15  ;;  %vm1837_vm4 = vcmp.lt.s32.totalorder %v3093_v14, 16  ;;  %s1859_s26 = smov [#allocation13]  ;;  %s1882_s27 = smov [#allocation14] }
  0x46   :  { %299 = vst [vmem:[#allocation10 + $0x8] sm:$0xff] %v3004_v11  ;;  %300 = vst [vmem:[#allocation11] sm:$0xff] %v3004_v11  ;;  %v326_v14 = vmov %v3093_v14  ;;  %v329_v15 = vmov %v3095_v15  ;;  %v319_v16 = vadd.s32 8, %v309_v15  ;;  %vm313_vm0 = vcmp.eq.s32.totalorder %v309_v15, %v306_v14  ;;  %s1905_s28 = smov [#allocation15] }
  0x47   :  { %302 = vst [vmem:[#allocation11 + $0x8] sm:$0xff] %v3004_v11  ;;  %2081 = vst [vmem:[%s270_s22 + $0x8] sm:$0xff] %v275_v8  ;;  %v339_v17 = vadd.s32 8, %v329_v15  ;;  %vm333_vm1 = vcmp.eq.s32.totalorder %v329_v15, %v326_v14  ;;  %v1832_v15 = vmov %v3095_v15 }
  0x48   :  { %279 = vst [vmem:[%s277_s3] sm:$0xff] %v278_v9  ;;  %2082 = vst [vmem:[%s277_s3 + $0x8] sm:$0xff] %v282_v10  ;;  %vm320_vm2 = vcmp.eq.s32.totalorder %v319_v16, %v306_v14  ;;  %v1848_v34 = vadd.s32 8, %v1832_v15 }
  0x49   :  { %286 = vst [vmem:[%s284_s0] sm:$0xff] %v285_v12  ;;  %2083 = vst [vmem:[%s284_s0 + $0x8] sm:$0xff] %v289_v13  ;;  %vm340_vm3 = vcmp.eq.s32.totalorder %v339_v17, %v326_v14  ;;  %v1829_v14 = vmov %v3093_v14  ;;  %v1839_v26 = vld [vmem:[%s1833_s25] sm:$0xff]  ;;  %v2088_v27 = vld [vmem:[%s1833_s25 + $0x8] sm:$0xff] }
  0x4a   :  { %vm1842_vm5 = vcmp.eq.s32.totalorder %v1832_v15, %v1829_v14  ;;  %v1855_v14 = vmov %v3093_v14  ;;  %v1840_v29 = vsel %vm1837_vm4, %v1839_v26, 0.0  ;;  %v1846_v30 = vsel %vm1837_vm4, %v2088_v27, 0.0 }
  0x4b   :  { %v310_v18 = vld [vmem:[%s303_s23] sm:$0xff]  ;;  %v2084_v19 = vld [vmem:[%s303_s23 + $0x8] sm:$0xff]  ;;  %v1841_v35 = vmul.f32 %v1840_v29, %v1840_v29  ;;  %v1847_v36 = vmul.f32 %v1846_v30, %v1846_v30  ;;  %vm1849_vm6 = vcmp.eq.s32.totalorder %v1848_v34, %v1829_v14  ;;  %v1904_v15 = vmov %v3095_v15 }
  0x4c   :  { %v314_v21 = vsel %vm313_vm0, 1.0, %v310_v18  ;;  %v321_v22 = vsel %vm320_vm2, 1.0, %v2084_v19  ;;  %v1858_v15 = vmov %v3095_v15  ;;  %v1878_v14 = vmov %v3093_v14 }
  0x4d   :  { %315 = vst [vmem:[%s303_s23] sm:$0xff] %v314_v21  ;;  %2085 = vst [vmem:[%s303_s23 + $0x8] sm:$0xff] %v321_v22  ;;  %v1852_v41 = vadd.f32 %v1847_v36, %v1841_v35  ;;  %v1843_v45 = vsel %vm1842_vm5, 0.0, %v1841_v35  ;;  %v1850_v49 = vsel %vm1849_vm6, 0.0, %v1847_v36  ;;  %v1901_v14 = vmov %v3093_v14 }
  0x4e   :  { %v330_v20 = vld [vmem:[%s323_s24] sm:$0xff]  ;;  %v2086_v24 = vld [vmem:[%s323_s24 + $0x8] sm:$0xff]  ;;  %v1851_v51 = vadd.f32 %v1850_v49, %v1843_v45  ;;  %v1881_v15 = vmov %v3095_v15  ;;  %v1922_v56 = vadd.s32 8, %v1904_v15  ;;  %vm1914_vm7 = vcmp.eq.s32.totalorder %v1904_v15, %v1901_v14 }
  0x4f   :  { %v334_v23 = vsel %vm333_vm1, 1.0, %v330_v20  ;;  %v341_v25 = vsel %vm340_vm3, 1.0, %v2086_v24  ;;  %v1865_v28 = vld [vmem:[%s1859_s26] sm:$0xff]  ;;  %v2089_v32 = vld [vmem:[%s1859_s26 + $0x8] sm:$0xff] }
  0x50   :  { %335 = vst [vmem:[%s323_s24] sm:$0xff] %v334_v23  ;;  %2087 = vst [vmem:[%s323_s24 + $0x8] sm:$0xff] %v341_v25  ;;  %v1866_v31 = vsel %vm1837_vm4, %v1865_v28, 0.0  ;;  %v1888_v33 = vld [vmem:[%s1882_s27] sm:$0xff]  ;;  %v1872_v38 = vsel %vm1837_vm4, %v2089_v32, 0.0  ;;  %v2090_v39 = vld [vmem:[%s1882_s27 + $0x8] sm:$0xff]  ;;  %vm1923_vm8 = vcmp.eq.s32.totalorder %v1922_v56, %v1901_v14 }
  0x51   :  { %v1867_v37 = vmul.f32 %v1866_v31, %v1866_v31  ;;  %v1889_v40 = vsel %vm1837_vm4, %v1888_v33, 0.0  ;;  %v1873_v42 = vmul.f32 %v1872_v38, %v1872_v38  ;;  %v1911_v43 = vld [vmem:[%s1905_s28] sm:$0xff]  ;;  %v1895_v44 = vsel %vm1837_vm4, %v2090_v39, 0.0  ;;  %v2091_v48 = vld [vmem:[%s1905_s28 + $0x8] sm:$0xff] }
  0x52   :  { %v1890_v47 = vmul.f32 %v1889_v40, %v1889_v40  ;;  %v1912_v50 = vsel %vm1837_vm4, %v1911_v43, 0.0  ;;  %v1896_v53 = vmul.f32 %v1895_v44, %v1895_v44  ;;  %v1920_v54 = vsel %vm1837_vm4, %v2091_v48, 0.0 }
  0x53   :  { %v1869_v46 = vadd.f32 %v1867_v37, %v1852_v41  ;;  %v1868_v55 = vadd.f32 %v1867_v37, %v1851_v51  ;;  %v1913_v58 = vmul.f32 %v1912_v50, %v1912_v50  ;;  %v1921_v61 = vmul.f32 %v1920_v54, %v1920_v54 }
  0x55   :  { %v1875_v52 = vadd.f32 %v1873_v42, %v1869_v46  ;;  %v1874_v59 = vadd.f32 %v1873_v42, %v1868_v55  ;;  %v1915_v0 = vsel %vm1914_vm7, 0.0, %v1913_v58  ;;  %v1924_v3 = vsel %vm1923_vm8, 0.0, %v1921_v61 }
  0x57   :  { %v1892_v57 = vadd.f32 %v1890_v47, %v1875_v52  ;;  %v1891_v62 = vadd.f32 %v1890_v47, %v1874_v59 }
  0x59   :  { %v1898_v60 = vadd.f32 %v1896_v53, %v1892_v57  ;;  %v1897_v1 = vadd.f32 %v1896_v53, %v1891_v62 }
  0x5b   :  { %v1917_v63 = vadd.f32 %v1913_v58, %v1898_v60  ;;  %v1916_v4 = vadd.f32 %v1915_v0, %v1897_v1 }
  0x5d   :  { %v1926_v2 = vadd.f32 %v1921_v61, %v1917_v63  ;;  %v1925_v5 = vadd.f32 %v1924_v3, %v1916_v4 }
  0x5f   :  { %1927 = vadd.xlane.f32.xlu0 %v1926_v2 }
  0x63   :  { %1935 = vadd.xlane.f32.xlu0 %v1925_v5 }
  0xe8   :  { %v1928_v6 = vpop.xlane.xlu0 %1927 }
  0xe9   :  { %v1929_v7 = vrot.slane %v1928_v6, 4 }
  0xeb   :  { %v1930_v8 = vadd.f32 %v1929_v7, %v1928_v6 }
  0xec   :  { %v1936_v9 = vpop.xlane.xlu0 %1935 }
  0xed   :  { %v1931_v10 = vrot.slane %v1930_v8, 2  ;;  %v1937_v11 = vrot.slane %v1936_v9, 4 }
  0xef   :  { %v1938_v12 = vadd.f32 %v1937_v11, %v1936_v9  ;;  %v1932_v13 = vadd.f32 %v1931_v10, %v1930_v8 }
  0xf1   :  { %v1939_v16 = vrot.slane %v1938_v12, 2  ;;  %v1933_v18 = vrot.slane %v1932_v13, 1 }
  0xf3   :  { %v1940_v17 = vadd.f32 %v1939_v16, %v1938_v12  ;;  %v1934_v21 = vadd.f32 %v1933_v18, %v1932_v13 }
  0xf5   :  { %v1941_v19 = vrot.slane %v1940_v17, 1 }
  0xf7   :  { %v1942_v20 = vadd.f32 %v1941_v19, %v1940_v17 }
  0xf9   :  { %2213 = vpush %v1942_v20 }
  0xfa   :  { %2215 = vpush %v1934_v21 }
 0x12a   :  { %s2214_s29 = spop %2213 }
 0x12b   :  { %s2216_s30 = spop %2215 }
 0x12c   :  { %s1945_s1 = smul.f32 1e-10, %s2216_s30 }
 0x12e   :  { %p1946_p8 = scmp.le.f32.partialorder %s2214_s29, %s1945_s1 }
 0x12f   :  { %s3127_s10 = smov (!%p1946_p8), 0  }
 0x130   :  { %1949 = sbr.rel (%p1946_p8) target bundleno = 1031 (0x407), region = 509 }
 0x135 LB: > { %s3132_s11 = smov 0   ;;  %s2966_s10 = sphi %s3127_s10, %s3502_s10  }
 0x136 LB: >> { %s479_s12 = smov [#allocation12]  ;;  %v483_v14 = vmov %v3093_v14  ;;  %v486_v15 = vmov %v3095_v15  ;;  %s505_s13 = smov [#allocation13]  ;;  %vm1012_vm8 = vcmp.eq.s32.totalorder %v3095_v15, 0  ;;  %s2970_s11 = sphi %s3132_s11, %s478_s11  }
 0x137   : >> { %v509_v14 = vmov %v3093_v14  ;;  %v512_v15 = vmov %v3095_v15  ;;  %v487_v22 = vld [vmem:[%s479_s12] sm:$0xff]  ;;  %vm490_vm9 = vcmp.eq.s32.totalorder %v486_v15, %v483_v14  ;;  %v2092_v23 = vld [vmem:[%s479_s12 + $0x8] sm:$0xff]  ;;  %v495_v24 = vadd.s32 8, %v486_v15  ;;  %s531_s14 = smov [#allocation15]  ;;  %s480_s15 = smov [#allocation16] }
 0x138   : >> { %vm516_vm10 = vcmp.eq.s32.totalorder %v512_v15, %v509_v14  ;;  %v521_v25 = vadd.s32 8, %v512_v15  ;;  %v491_v26 = vsel %vm490_vm9, %v487_v22, 0.0  ;;  %v513_v27 = vld [vmem:[%s505_s13] sm:$0xff]  ;;  %v2093_v28 = vld [vmem:[%s505_s13 + $0x8] sm:$0xff]  ;;  %v535_v14 = vmov %v3093_v14  ;;  %s506_s16 = smov [#allocation17]  ;;  %s532_s17 = smov [#allocation18] }
 0x139   : >> { %v538_v15 = vmov %v3095_v15  ;;  %vm496_vm11 = vcmp.eq.s32.totalorder %v495_v24, %v483_v14  ;;  %v517_v29 = vsel %vm516_vm10, %v513_v27, 0.0  ;;  %v539_v30 = vld [vmem:[%s531_s14] sm:$0xff]  ;;  %v2094_v34 = vld [vmem:[%s531_s14 + $0x8] sm:$0xff]  ;;  %s561_s2 = smov [#allocation17]  ;;  %s559_s18 = smov [#allocation16]  ;;  %vm1036_vm9 = vcmp.eq.s32.totalorder %v3095_v15, 7 }
 0x13a   : >> { %vm522_vm12 = vcmp.eq.s32.totalorder %v521_v25, %v509_v14  ;;  %vm542_vm13 = vcmp.eq.s32.totalorder %v538_v15, %v535_v14  ;;  %v497_v31 = vsel %vm496_vm11, %v2092_v23, %v491_v26  ;;  %v547_v35 = vadd.s32 8, %v538_v15  ;;  %s563_s19 = smov [#allocation18]  ;;  %s598_s20 = smov [#allocation19] }
 0x13b   : >> { %v523_v32 = vsel %vm522_vm12, %v2093_v28, %v517_v29  ;;  %v543_v33 = vsel %vm542_vm13, %v539_v30, 0.0  ;;  %v498_v36 = vrot.slane %v497_v31, 4  ;;  %s600_s21 = smov [#allocation20]  ;;  %s557_s22 = smov [#allocation21]  ;;  %v628_v15 = vmov %v3095_v15 }
 0x13c   : >> { %v524_v37 = vrot.slane %v523_v32, 4  ;;  %vm548_vm14 = vcmp.eq.s32.totalorder %v547_v35, %v535_v14  ;;  %s558_s3 = smov [#allocation22]  ;;  %s602_s22 = smov %s557_s22  ;;  %v659_v15 = vmov %v3095_v15  ;;  %v629_v24 = vadd.s32 8, %v628_v15 }
 0x13d   : >> { %v499_v38 = vadd.f32 %v498_v36, %v497_v31  ;;  %v549_v40 = vsel %vm548_vm14, %v2094_v34, %v543_v33  ;;  %s604_s3 = smov %s558_s3  ;;  %v610_v14 = vmov %v3093_v14  ;;  %v613_v15 = vmov %v3095_v15  ;;  %s606_s0 = smov [#allocation21] }
 0x13e   : >> { %v525_v39 = vadd.f32 %v524_v37, %v523_v32  ;;  %v550_v41 = vrot.slane %v549_v40, 4  ;;  %v625_v14 = vmov %v3093_v14  ;;  %v660_v25 = vadd.s32 8, %v659_v15  ;;  %s621_s23 = smov [#allocation21]  ;;  %s637_s24 = smov [#allocation22] }
 0x13f   : >> { %v500_v42 = vrot.slane %v499_v38, 2  ;;  %v641_v14 = vmov %v3093_v14  ;;  %v644_v15 = vmov %v3095_v15  ;;  %vm615_vm3 = vcmp.eq.s32.totalorder %v613_v15, %v610_v14  ;;  %s652_s25 = smov [#allocation22]  ;;  %s619_s26 = smov [#allocation23] }
 0x140   : >> { %v526_v43 = vrot.slane %v525_v39, 2  ;;  %v551_v44 = vadd.f32 %v550_v41, %v549_v40  ;;  %v656_v14 = vmov %v3093_v14  ;;  %vm630_vm5 = vcmp.eq.s32.totalorder %v629_v24, %v625_v14  ;;  %s634_s27 = smov [#allocation23]  ;;  %s668_s28 = smov [#allocation23] }
 0x141   : >> { %v501_v45 = vadd.f32 %v500_v42, %v499_v38  ;;  %vm646_vm6 = vcmp.eq.s32.totalorder %v644_v15, %v641_v14  ;;  %vm661_vm7 = vcmp.eq.s32.totalorder %v660_v25, %v656_v14  ;;  %s650_s29 = smov [#allocation24]  ;;  %s3151_s30 = smov [#allocation12]  ;;  %v815_v15 = vmov %v3095_v15 }
 0x142   : >> { %v527_v46 = vadd.f32 %v526_v43, %v525_v39  ;;  %v552_v47 = vrot.slane %v551_v44, 2  ;;  %s665_s1 = smov [#allocation24]  ;;  %s3153_s12 = smov [#allocation13]  ;;  %v676_v38 = vld [vmem:[%s3151_s30] sm:$0xff]  ;;  %v793_v15 = vmov %v3095_v15  ;;  %v812_v14 = vmov %v3093_v14 }
 0x143   : >> { %v502_v48 = vrot.slane %v501_v45, 1  ;;  %s3155_s13 = smov [#allocation14]  ;;  %s3157_s14 = smov [#allocation15]  ;;  %v677_v39 = vld [vmem:[%s3153_s12] sm:$0xff]  ;;  %v835_v15 = vmov %v3095_v15  ;;  %v790_v14 = vmov %v3093_v14  ;;  %vm819_vm10 = vcmp.eq.s32.totalorder %v815_v15, %v812_v14 }
 0x144   : >> { %v528_v49 = vrot.slane %v527_v46, 1  ;;  %v553_v50 = vadd.f32 %v552_v47, %v551_v44  ;;  %v678_v40 = vld [vmem:[%s3155_s13] sm:$0xff]  ;;  %v856_v15 = vmov %v3095_v15  ;;  %v832_v14 = vmov %v3093_v14  ;;  %s478_s11 = sadd.s32 1, %s2970_s11  }
 0x145   : >> { %v503_v51 = vadd.f32 %v502_v48, %v501_v45  ;;  %v679_v41 = vld [vmem:[%s3157_s14] sm:$0xff]  ;;  %v853_v14 = vmov %v3093_v14  ;;  %vm798_vm12 = vcmp.eq.s32.totalorder %v793_v15, %v790_v14  ;;  %vm839_vm14 = vcmp.eq.s32.totalorder %v835_v15, %v832_v14  ;;  %p475_p9 = scmp.ge.s32.totalorder %s478_s11, 31  }
 0x146   : >> { %v529_v52 = vadd.f32 %v528_v49, %v527_v46  ;;  %v554_v53 = vrot.slane %v553_v50, 1  ;;  %s426_s11 = smov (%p475_p9), [#allocation15] }
 0x147   : >> { %504 = vst [vmem:[%s480_s15] sm:$0x1] %v503_v51  ;;  %s1092_s15 = smov [#allocation23] }
 0x148   : >> { %530 = vst [vmem:[%s506_s16] sm:$0x1] %v529_v52  ;;  %v555_v54 = vadd.f32 %v554_v53, %v553_v50  ;;  %s3159_s16 = smov [#allocation8] }
 0x149   : >> { %v1100_v42 = vld [vmem:[%s3159_s16] sm:$0xff] }
 0x14a   : >> { %556 = vst [vmem:[%s532_s17] sm:$0x1] %v555_v54  ;;  %s3161_s17 = smov [#allocation9] }
 0x14b   : >> { %v1101_v43 = vld [vmem:[%s3161_s17] sm:$0xff] }
 0x14e   : >> { %v560_v57 = vld [vmem:[%s559_s18] sm:$0xff]  ;;  %s3166_s18 = smov [#allocation11] }
 0x14f   : >> { %v562_v55 = vld [vmem:[%s561_s2] sm:$0xff]  ;;  %v583_v8 = vand.u32 2147483647, %v560_v57  ;;  %s3164_s2 = smov [#allocation10] }
 0x150   : >> { %v566_v56 = vmul.f32 2.0, %v562_v55  ;;  %v584_v11 = vand.u32 2147483647, %v562_v55  ;;  %v1102_v45 = vld [vmem:[%s3164_s2] sm:$0xff] }
 0x151   : >> { %v564_v58 = vld [vmem:[%s563_s19] sm:$0xff]  ;;  %s670_s19 = smov [#allocation24] }
 0x152   : >> { %2692 = vrcp.f32 %v566_v56  ;;  %v565_v59 = vsub.f32 %v564_v58, %v560_v57  ;;  %v585_v9 = vand.u32 2147483647, %v564_v58  ;;  %v1103_v46 = vld [vmem:[%s3166_s18] sm:$0xff] }
 0x154   : >> { %v586_v10 = vmin.f32 %v583_v8, %v585_v9 }
 0x156   : >> { %v587_v12 = vmul.f32 1.1920929e-08, %v586_v10 }
 0x158   : >> { %vm588_vm2 = vcmp.le.f32.partialorder %v584_v11, %v587_v12 }
 0x15f   : >> { %v2693_v60 = vpop.eup %2692 }
 0x160   : >> { %v568_v61 = vmul.f32 %v2693_v60, %v565_v59 }
 0x162   : >> { %v570_v62 = vmul.f32 %v568_v61, %v568_v61  ;;  %vm569_vm1 = vcmp.ge.f32.partialorder %v568_v61, 0.0 }
 0x164   : >> { %v571_v63 = vadd.f32 1.0, %v570_v62 }
 0x166   : >> { %2694 = vrsqrt.f32 %v571_v63  ;;  %vm574_vm15 = vcmp.eq.f32.partialorder %v571_v63, inf  ;;  %v577_v1 = vand.u32 2147483648, %v571_v63  ;;  %vm576_vm0 = vcmp.eq.f32.partialorder %v571_v63, 0.0 }
 0x173   : >> { %v2695_v0 = vpop.eup %2694 }
 0x174   : >> { %v573_v2 = vmul.f32 %v2695_v0, %v571_v63 }
 0x176   : >> { %v575_v3 = vsel %vm574_vm15, %v571_v63, %v573_v2 }
 0x177   : >> { %v578_v4 = vsel %vm576_vm0, %v577_v1, %v575_v3  ;;  %vm861_vm0 = vcmp.eq.s32.totalorder %v856_v15, %v853_v14 }
 0x178   : >> { %v579_v5 = vxor.u32 2147483648, %v578_v4 }
 0x17a   : >> { %v580_v6 = vsel %vm569_vm1, %v578_v4, %v579_v5 }
 0x17b   : >> { %v581_v7 = vadd.f32 %v580_v6, %v568_v61 }
 0x17d   : >> { %2696 = vrcp.f32 %v581_v7 }
 0x18a   : >> { %v2697_v13 = vpop.eup %2696 }
 0x18b   : >> { %v589_v16 = vsel %vm588_vm2, 0.0, %v2697_v13  ;;  %vm883_vm2 = vcmp.eq.s32.totalorder %v3093_v14, 0 }
 0x18c   : >> { %v590_v17 = vmul.f32 %v589_v16, %v589_v16  ;;  %v594_v18 = vmul.f32 %v589_v16, %v562_v55 }
 0x18e   : >> { %v591_v19 = vadd.f32 1.0, %v590_v17  ;;  %v595_v20 = vsub.f32 %v560_v57, %v594_v18  ;;  %v597_v21 = vadd.f32 %v594_v18, %v564_v58 }
 0x190   : >> { %2698 = vrsqrt.f32 %v591_v19  ;;  %599 = vst [vmem:[%s598_s20] sm:$0xff] %v595_v20  ;;  %601 = vst [vmem:[%s600_s21] sm:$0xff] %v597_v21  ;;  %s1094_s20 = smov [#allocation24]  ;;  %s696_s21 = smov [#allocation23] }
 0x19d   : >> { %v2699_v22 = vpop.eup %2698 }
 0x19e   : >> { %603 = vst [vmem:[%s602_s22] sm:$0xff] %v2699_v22  ;;  %v593_v23 = vmul.f32 %v2699_v22, %v589_v16  ;;  %s1120_s22 = smov [#allocation23] }
 0x1a0   : >> { %605 = vst [vmem:[%s604_s3] sm:$0xff] %v593_v23  ;;  %s699_s3 = smov [#allocation24] }
 0x1a5   : >> { %v607_v26 = vld [vmem:[%s606_s0] ss:$0 sm:$0xff]  ;;  %s3183_s0 = smov [#allocation12] }
 0x1a6   : >> { %v622_v27 = vld [vmem:[%s621_s23] ss:$0 sm:$0xff]  ;;  %v616_v28 = vsel %vm615_vm3, %v607_v26, 0.0  ;;  %s3185_s23 = smov [#allocation14]  ;;  %vm887_vm3 = vcmp.eq.s32.totalorder %v3093_v14, 1 }
 0x1a7   : >> { %v631_v29 = vsel %vm630_vm5, %v622_v27, 0.0  ;;  %617 = vadd.xlane.f32.xlu0 %v616_v28  ;;  %v638_v30 = vld [vmem:[%s637_s24] ss:$0 sm:$0xff]  ;;  %s1123_s24 = smov [#allocation24]  ;;  %vm900_vm5 = vcmp.eq.s32.totalorder %v3093_v14, 15 }
 0x1a8   : >> { %632 = vadd.xlane.f32.xlu1 %v631_v29  ;;  %v653_v31 = vld [vmem:[%s652_s25] ss:$0 sm:$0xff]  ;;  %v647_v32 = vsel %vm646_vm6, %v638_v30, 0.0  ;;  %s3187_s25 = smov [#allocation15] }
 0x1a9   : >> { %v662_v33 = vsel %vm661_vm7, %v653_v31, 0.0 }
 0x1ab   : >> { %648 = vadd.xlane.f32.xlu0 %v647_v32 }
 0x1ac   : >> { %663 = vadd.xlane.f32.xlu1 %v662_v33 }
 0x230   : >> { %v618_v34 = vpop.xlane.xlu0 %617 }
 0x231   : >> { %v633_v35 = vpop.xlane.xlu1 %632  ;;  %620 = vst [vmem:[%s619_s26] sm:$0xff] %v618_v34  ;;  %s3189_s26 = smov [#allocation8] }
 0x232   : >> { %2095 = vst [vmem:[%s634_s27 + $0x8] sm:$0xff] %v633_v35  ;;  %s3191_s27 = smov [#allocation9] }
 0x234   : >> { %v649_v36 = vpop.xlane.xlu0 %648 }
 0x235   : >> { %v664_v37 = vpop.xlane.xlu1 %663  ;;  %651 = vst [vmem:[%s650_s29] sm:$0xff] %v649_v36  ;;  %s3195_s29 = smov [#allocation11] }
 0x236   : >> { %2096 = vst [vmem:[%s665_s1 + $0x8] sm:$0xff] %v664_v37  ;;  %s3211_s1 = smov [#allocation8] }
 0x239   : >> { %v669_v44 = vld [vmem:[%s668_s28] sm:$0xff]  ;;  %v2097_v10 = vld [vmem:[%s696_s21 + $0x8] sm:$0xff]  ;;  %s3193_s28 = smov [#allocation10]  ;;  %s760_s21 = smov [#allocation13] }
 0x23a   : >> { %v1093_v47 = vld [vmem:[%s1092_s15] sm:$0xff]  ;;  %v680_v48 = vmul.f32 %v676_v38, %v669_v44  ;;  %v683_v49 = vmul.f32 %v677_v39, %v669_v44  ;;  %v687_v50 = vmul.f32 %v678_v40, %v669_v44  ;;  %v690_v51 = vmul.f32 %v679_v41, %v669_v44  ;;  %v2155_v11 = vld [vmem:[%s1120_s22 + $0x8] sm:$0xff]  ;;  %s732_s15 = smov [#allocation22]  ;;  %s762_s22 = smov [#allocation14] }
 0x23b   : >> { %v1104_v52 = vmul.f32 %v1100_v42, %v1093_v47  ;;  %v1107_v53 = vmul.f32 %v1101_v43, %v1093_v47  ;;  %v1111_v54 = vmul.f32 %v1102_v45, %v1093_v47  ;;  %v1114_v55 = vmul.f32 %v1103_v46, %v1093_v47 }
 0x23d   : >> { %v671_v56 = vld [vmem:[%s670_s19] sm:$0xff]  ;;  %v2098_v12 = vld [vmem:[%s699_s3 + $0x8] sm:$0xff]  ;;  %s3231_s19 = smov [#allocation15]  ;;  %s764_s3 = smov [#allocation15] }
 0x23e   : >> { %v1095_v57 = vld [vmem:[%s1094_s20] sm:$0xff]  ;;  %v681_v58 = vmul.f32 %v678_v40, %v671_v56  ;;  %v684_v59 = vmul.f32 %v679_v41, %v671_v56  ;;  %v686_v60 = vmul.f32 %v676_v38, %v671_v56  ;;  %v689_v61 = vmul.f32 %v677_v39, %v671_v56  ;;  %v2156_v13 = vld [vmem:[%s1123_s24 + $0x8] sm:$0xff]  ;;  %s758_s20 = smov [#allocation12]  ;;  %s809_s24 = smov [#allocation13] }
 0x23f   : >> { %v1105_v62 = vmul.f32 %v1102_v45, %v1095_v57  ;;  %v1108_v63 = vmul.f32 %v1103_v46, %v1095_v57  ;;  %v1110_v0 = vmul.f32 %v1100_v42, %v1095_v57  ;;  %v1113_v1 = vmul.f32 %v1101_v43, %v1095_v57 }
 0x240   : >> { %v682_v2 = vsub.f32 %v680_v48, %v681_v58  ;;  %v685_v3 = vsub.f32 %v683_v49, %v684_v59  ;;  %v688_v4 = vadd.f32 %v687_v50, %v686_v60  ;;  %v691_v5 = vadd.f32 %v690_v51, %v689_v61 }
 0x241   : >> { %v1106_v6 = vsub.f32 %v1104_v52, %v1105_v62  ;;  %v1109_v7 = vsub.f32 %v1107_v53, %v1108_v63  ;;  %v1112_v8 = vadd.f32 %v1111_v54, %v1110_v0  ;;  %v1115_v9 = vadd.f32 %v1114_v55, %v1113_v1  ;;  %v3238_v52 = vld [vmem:[%s732_s15] ss:$0 sm:$0xff]  ;;  %s3339_s15 = smov [#allocation13] }
 0x242   : >> { %692 = vst [vmem:[%s3151_s30] sm:$0xff] %v682_v2  ;;  %694 = vst [vmem:[%s3155_s13] sm:$0xff] %v688_v4  ;;  %s3197_s30 = smov [#allocation13]  ;;  %s3216_s13 = smov [#allocation9] }
 0x243   : >> { %695 = vst [vmem:[%s3157_s14] sm:$0xff] %v691_v5  ;;  %693 = vst [vmem:[%s3153_s12] sm:$0xff] %v685_v3  ;;  %s3213_s12 = smov [#allocation10]  ;;  %s730_s14 = smov [#allocation21] }
 0x244   : >> { %1116 = vst [vmem:[%s3159_s16] sm:$0xff] %v1106_v6  ;;  %1117 = vst [vmem:[%s3161_s17] sm:$0xff] %v1109_v7  ;;  %s3221_s16 = smov [#allocation12]  ;;  %s3224_s17 = smov [#allocation11]  ;;  %v3236_v51 = vld [vmem:[%s730_s14] ss:$0 sm:$0xff] }
 0x245   : >> { %1118 = vst [vmem:[%s3164_s2] sm:$0xff] %v1112_v8  ;;  %1119 = vst [vmem:[%s3166_s18] sm:$0xff] %v1115_v9  ;;  %s3226_s2 = smov [#allocation13]  ;;  %s3229_s18 = smov [#allocation14] }
 0x246   : >> { %s3335_s14 = smov [#allocation15] }
 0x249   : >> { %v2099_v16 = vld [vmem:[%s3183_s0 + $0x8] sm:$0xff] }
 0x24a   : >> { %v2101_v17 = vld [vmem:[%s3185_s23 + $0x8] sm:$0xff]  ;;  %v714_v19 = vmul.f32 %v2099_v16, %v2097_v10  ;;  %v720_v22 = vmul.f32 %v2099_v16, %v2098_v12 }
 0x24b   : >> { %v2102_v18 = vld [vmem:[%s3187_s25 + $0x8] sm:$0xff]  ;;  %v715_v20 = vmul.f32 %v2101_v17, %v2098_v12  ;;  %v721_v26 = vmul.f32 %v2101_v17, %v2097_v10 }
 0x24c   : >> { %v718_v21 = vmul.f32 %v2102_v18, %v2098_v12  ;;  %v2157_v23 = vld [vmem:[%s3189_s26 + $0x8] sm:$0xff]  ;;  %v724_v27 = vmul.f32 %v2102_v18, %v2097_v10 }
 0x24d   : >> { %v2158_v24 = vld [vmem:[%s3191_s27 + $0x8] sm:$0xff]  ;;  %v1138_v29 = vmul.f32 %v2157_v23, %v2155_v11  ;;  %v716_v32 = vsub.f32 %v714_v19, %v715_v20  ;;  %v1144_v35 = vmul.f32 %v2157_v23, %v2156_v13  ;;  %v722_v36 = vadd.f32 %v721_v26, %v720_v22 }
 0x24e   : >> { %v2159_v25 = vld [vmem:[%s3193_s28 + $0x8] sm:$0xff]  ;;  %v1141_v33 = vmul.f32 %v2158_v24, %v2155_v11  ;;  %v1147_v39 = vmul.f32 %v2158_v24, %v2156_v13 }
 0x24f   : >> { %v2160_v28 = vld [vmem:[%s3195_s29 + $0x8] sm:$0xff]  ;;  %v1139_v30 = vmul.f32 %v2159_v25, %v2156_v13  ;;  %v1145_v38 = vmul.f32 %v2159_v25, %v2155_v11  ;;  %2103 = vst [vmem:[%s3183_s0 + $0x8] sm:$0xff] %v716_v32  ;;  %2105 = vst [vmem:[%s3185_s23 + $0x8] sm:$0xff] %v722_v36  ;;  %s787_s0 = smov [#allocation19]  ;;  %s850_s23 = smov [#allocation20] }
 0x250   : >> { %v2100_v31 = vld [vmem:[%s3197_s30 + $0x8] sm:$0xff]  ;;  %v1142_v34 = vmul.f32 %v2160_v28, %v2156_v13  ;;  %v1148_v41 = vmul.f32 %v2160_v28, %v2155_v11 }
 0x251   : >> { %v1140_v37 = vsub.f32 %v1138_v29, %v1139_v30  ;;  %v717_v42 = vmul.f32 %v2100_v31, %v2097_v10  ;;  %v723_v43 = vmul.f32 %v2100_v31, %v2098_v12  ;;  %v1146_v44 = vadd.f32 %v1145_v38, %v1144_v35 }
 0x252   : >> { %v1143_v40 = vsub.f32 %v1141_v33, %v1142_v34  ;;  %v1149_v45 = vadd.f32 %v1148_v41, %v1147_v39 }
 0x253   : >> { %2161 = vst [vmem:[%s3189_s26 + $0x8] sm:$0xff] %v1140_v37  ;;  %v719_v46 = vsub.f32 %v717_v42, %v718_v21  ;;  %v725_v47 = vadd.f32 %v724_v27, %v723_v43  ;;  %2163 = vst [vmem:[%s3193_s28 + $0x8] sm:$0xff] %v1146_v44  ;;  %s829_s26 = smov [#allocation14]  ;;  %s3324_s28 = smov [#allocation13] }
 0x254   : >> { %2162 = vst [vmem:[%s3191_s27 + $0x8] sm:$0xff] %v1143_v40  ;;  %2164 = vst [vmem:[%s3195_s29 + $0x8] sm:$0xff] %v1149_v45  ;;  %s849_s27 = smov [#allocation15]  ;;  %s3326_s29 = smov [#allocation12] }
 0x255   : >> { %2104 = vst [vmem:[%s3197_s30 + $0x8] sm:$0xff] %v719_v46  ;;  %2106 = vst [vmem:[%s3187_s25 + $0x8] sm:$0xff] %v725_v47  ;;  %v825_v46 = vadd.s32 8, %v815_v15  ;;  %v805_v47 = vadd.s32 8, %v793_v15  ;;  %s3312_s25 = smov [#allocation12]  ;;  %s3005_s30 = smov 1  }
 0x256   : >> { %v738_v53 = vld [vmem:[%s3221_s16] sm:$0xff] }
 0x257   : >> { %v742_v11 = vmul.f32 %v738_v53, %v3236_v51  ;;  %v745_v12 = vmul.f32 %v738_v53, %v3238_v52  ;;  %v740_v18 = vld [vmem:[%s3229_s18] sm:$0xff]  ;;  %vm826_vm11 = vcmp.eq.s32.totalorder %v825_v46, %v812_v14  ;;  %vm806_vm13 = vcmp.eq.s32.totalorder %v805_v47, %v790_v14 }
 0x258   : >> { %v748_v22 = vmul.f32 %v740_v18, %v3236_v51  ;;  %v751_v24 = vmul.f32 %v740_v18, %v3238_v52 }
 0x25a   : >> { %v1156_v48 = vld [vmem:[%s3211_s1] ss:$0 sm:$0xff]  ;;  %v2166_v50 = vld [vmem:[%s3211_s1 + $0x7] ss:$0 sm:$0xff]  ;;  %v2167_v55 = vld [vmem:[%s3211_s1 + $0x7] sm:$0xfe] }
 0x25b   : >> { %v2165_v49 = vld [vmem:[%s3211_s1 - $0x1] sm:$0xfe]  ;;  %v2168_v56 = vld [vmem:[%s3211_s1 + $0xf] ss:$0 sm:$0xff]  ;;  %v1174_v58 = vsel %vm1012_vm8, %v2166_v50, %v2167_v55  ;;  %v2172_v61 = vld [vmem:[%s3213_s12 + $0x8] ss:$0 sm:$0xff] }
 0x25c   : >> { %v1163_v54 = vsel %vm1012_vm8, %v1156_v48, %v2165_v49  ;;  %v1200_v57 = vld [vmem:[%s3216_s13] ss:$0 sm:$0xff]  ;;  %v2171_v60 = vld [vmem:[%s3213_s12 + $0x9] sm:$0x7f]  ;;  %2169 = vst [vmem:[%s3211_s1 + $0x8] sm:$0xff] %v1174_v58  ;;  %v845_v48 = vadd.s32 8, %v835_v15 }
 0x25d   : >> { %1166 = vst [vmem:[%s3211_s1] sm:$0xff] %v1163_v54  ;;  %v1178_v59 = vld [vmem:[%s3213_s12] ss:$0 sm:$0xff]  ;;  %v1187_v62 = vsel %vm1036_vm9, %v2168_v56, %v2171_v60  ;;  %v2174_v63 = vld [vmem:[%s3213_s12 + $0x1] sm:$0x7f]  ;;  %v2177_v4 = vld [vmem:[%s3216_s13 + $0x7] sm:$0xfe] }
 0x25e   : >> { %2170 = vst [vmem:[%s3211_s1 + $0x1] sm:$0x1] %v1178_v59  ;;  %v2175_v0 = vld [vmem:[%s3216_s13 - $0x1] sm:$0xfe]  ;;  %v2176_v1 = vld [vmem:[%s3216_s13 + $0x7] ss:$0 sm:$0xff]  ;;  %v1195_v2 = vsel %vm1036_vm9, %v2172_v61, %v2174_v63  ;;  %vm846_vm15 = vcmp.eq.s32.totalorder %v845_v48, %v832_v14 }
 0x25f   : >> { %2173 = vst [vmem:[%s3213_s12 + $0x8] sm:$0xff] %v1187_v62  ;;  %v1207_v3 = vsel %vm1012_vm8, %v1200_v57, %v2175_v0  ;;  %v2178_v5 = vld [vmem:[%s3216_s13 + $0xf] ss:$0 sm:$0xff]  ;;  %v1222_v6 = vld [vmem:[%s3224_s17] ss:$0 sm:$0xff]  ;;  %1197 = vst [vmem:[%s3213_s12] sm:$0xff] %v1195_v2  ;;  %v1218_v7 = vsel %vm1012_vm8, %v2176_v1, %v2177_v4  ;;  %v868_v49 = vadd.s32 8, %v856_v15  ;;  %v350_v15 = vmov (%p475_p9), %v3095_v15 }
 0x260   : >> { %1210 = vst [vmem:[%s3216_s13] sm:$0xff] %v1207_v3  ;;  %v2181_v8 = vld [vmem:[%s3224_s17 + $0x9] sm:$0x7f]  ;;  %v2182_v9 = vld [vmem:[%s3224_s17 + $0x8] ss:$0 sm:$0xff]  ;;  %v2184_v10 = vld [vmem:[%s3224_s17 + $0x1] sm:$0x7f] }
 0x261   : >> { %2179 = vst [vmem:[%s3216_s13 + $0x8] sm:$0xff] %v1218_v7  ;;  %2180 = vst [vmem:[%s3216_s13 + $0x1] sm:$0x1] %v1222_v6  ;;  %v1231_v13 = vsel %vm1036_vm9, %v2178_v5, %v2181_v8  ;;  %v1239_v16 = vsel %vm1036_vm9, %v2182_v9, %v2184_v10  ;;  %v739_v17 = vld [vmem:[%s3226_s2] sm:$0xff]  ;;  %vm869_vm1 = vcmp.eq.s32.totalorder %v868_v49, %v853_v14  ;;  %s3330_s1 = smov [#allocation12]  ;;  %s3333_s12 = smov [#allocation14]  ;;  %v347_v14 = vmov (%p475_p9), %v3093_v14 }
 0x262   : >> { %v741_v19 = vld [vmem:[%s3231_s19] sm:$0xff]  ;;  %2183 = vst [vmem:[%s3224_s17 + $0x8] sm:$0xff] %v1231_v13  ;;  %1241 = vst [vmem:[%s3224_s17] sm:$0xff] %v1239_v16  ;;  %v743_v20 = vmul.f32 %v739_v17, %v3238_v52  ;;  %v746_v21 = vmul.f32 %v739_v17, %v3236_v51  ;;  %s3006_s13 = smov 127   ;;  %s3344_s17 = smov [#allocation15]  ;;  %vm362_vm6 = vcmp.eq.s32.totalorder (%p475_p9), %v350_v15, %v347_v14  ;;  %v376_v14 = vmov (%p475_p9), %v3093_v14 }
 0x263   : >> { %v749_v23 = vmul.f32 %v741_v19, %v3238_v52  ;;  %v752_v25 = vmul.f32 %v741_v19, %v3236_v51  ;;  %v794_v50 = vld [vmem:[%s787_s0] ss:$0 sm:$0xff]  ;;  %s403_s0 = smov (%p475_p9), [#allocation14] }
 0x264   : >> { %v744_v26 = vsub.f32 %v742_v11, %v743_v20  ;;  %v747_v27 = vadd.f32 %v746_v21, %v745_v12 }
 0x265   : >> { %v750_v28 = vsub.f32 %v748_v22, %v749_v23  ;;  %v753_v29 = vadd.f32 %v752_v25, %v751_v24 }
 0x266   : >> { %754 = vst [vmem:[%s3221_s16] sm:$0xff] %v744_v26  ;;  %755 = vst [vmem:[%s3226_s2] sm:$0xff] %v747_v27  ;;  %s3342_s16 = smov [#allocation14]  ;;  %s3382_s2 = smov [#allocation12] }
 0x267   : >> { %756 = vst [vmem:[%s3229_s18] sm:$0xff] %v750_v28  ;;  %757 = vst [vmem:[%s3231_s19] sm:$0xff] %v753_v29  ;;  %s3386_s18 = smov [#allocation13]  ;;  %s3391_s19 = smov [#allocation14] }
 0x26d   : >> { %v2107_v30 = vld [vmem:[%s758_s20 + $0x8] sm:$0xff] }
 0x26e   : >> { %v2108_v31 = vld [vmem:[%s760_s21 + $0x8] sm:$0xff]  ;;  %v773_v34 = vmul.f32 %v2107_v30, %v3238_v52  ;;  %v770_v36 = vmul.f32 %v2107_v30, %v3236_v51 }
 0x26f   : >> { %v2109_v32 = vld [vmem:[%s762_s22 + $0x8] sm:$0xff]  ;;  %v771_v33 = vmul.f32 %v2108_v31, %v3238_v52  ;;  %v774_v35 = vmul.f32 %v2108_v31, %v3236_v51 }
 0x270   : >> { %v2110_v37 = vld [vmem:[%s764_s3 + $0x8] sm:$0xff]  ;;  %v776_v38 = vmul.f32 %v2109_v32, %v3236_v51  ;;  %v779_v40 = vmul.f32 %v2109_v32, %v3238_v52 }
 0x271   : >> { %v777_v39 = vmul.f32 %v2110_v37, %v3238_v52  ;;  %v780_v41 = vmul.f32 %v2110_v37, %v3236_v51  ;;  %v775_v42 = vadd.f32 %v774_v35, %v773_v34  ;;  %v772_v43 = vsub.f32 %v770_v36, %v771_v33  ;;  %v857_v51 = vld [vmem:[%s850_s23] ss:$0 sm:$0xff] }
 0x273   : >> { %v778_v44 = vsub.f32 %v776_v38, %v777_v39  ;;  %v781_v45 = vadd.f32 %v780_v41, %v779_v40  ;;  %2112 = vst [vmem:[%s760_s21 + $0x8] sm:$0xff] %v775_v42  ;;  %2111 = vst [vmem:[%s758_s20 + $0x8] sm:$0xff] %v772_v43  ;;  %s1049_s20 = smov [#allocation15]  ;;  %s1242_s21 = sadd.s32 (%p475_p9), 1, %s2966_s10  }
 0x274   : > { %p471_p10 = scmp.ge.s32.totalorder (%p475_p9), %s1242_s21, 15  ;;  %s3502_s10 = smov (%p475_p9), %s1242_s21 }
 0x275   : >> { %2113 = vst [vmem:[%s762_s22 + $0x8] sm:$0xff] %v778_v44  ;;  %2114 = vst [vmem:[%s764_s3 + $0x8] sm:$0xff] %v781_v45  ;;  %s351_s22 = smov (%p475_p9), [#allocation12]  ;;  %s380_s3 = smov (%p475_p9), [#allocation13] }
 0x27a   : >> { %v816_v52 = vld [vmem:[%s809_s24] sm:$0xff]  ;;  %v2117_v53 = vld [vmem:[%s809_s24 + $0x8] sm:$0xff] }
 0x27b   : >> { %v795_v54 = vld [vmem:[%s3312_s25] sm:$0xff]  ;;  %v820_v55 = vsel %vm819_vm10, 0.0, %v816_v52  ;;  %v827_v56 = vsel %vm826_vm11, 0.0, %v2117_v53  ;;  %v2115_v58 = vld [vmem:[%s3312_s25 + $0x8] sm:$0xff] }
 0x27c   : >> { %v799_v57 = vsel %vm798_vm12, %v794_v50, %v795_v54  ;;  %v836_v59 = vld [vmem:[%s829_s26] sm:$0xff]  ;;  %v2119_v60 = vld [vmem:[%s829_s26 + $0x8] sm:$0xff]  ;;  %821 = vst [vmem:[%s809_s24] sm:$0xff] %v820_v55  ;;  %2118 = vst [vmem:[%s809_s24 + $0x8] sm:$0xff] %v827_v56  ;;  %v807_v61 = vsel %vm806_vm13, %v794_v50, %v2115_v58 }
 0x27d   : >> { %800 = vst [vmem:[%s3312_s25] sm:$0xff] %v799_v57  ;;  %v840_v62 = vsel %vm839_vm14, 0.0, %v836_v59  ;;  %v847_v63 = vsel %vm846_vm15, 0.0, %v2119_v60  ;;  %v858_v0 = vld [vmem:[%s849_s27] sm:$0xff]  ;;  %v2121_v1 = vld [vmem:[%s849_s27 + $0x8] sm:$0xff]  ;;  %2116 = vst [vmem:[%s3312_s25 + $0x8] sm:$0xff] %v807_v61 }
 0x27e   : >> { %841 = vst [vmem:[%s829_s26] sm:$0xff] %v840_v62  ;;  %2120 = vst [vmem:[%s829_s26 + $0x8] sm:$0xff] %v847_v63  ;;  %v862_v2 = vsel %vm861_vm0, %v857_v51, %v858_v0  ;;  %v870_v3 = vsel %vm869_vm1, %v857_v51, %v2121_v1 }
 0x27f   : >> { %863 = vst [vmem:[%s849_s27] sm:$0xff] %v862_v2  ;;  %2122 = vst [vmem:[%s849_s27 + $0x8] sm:$0xff] %v870_v3 }
 0x283   : >> { %v874_v4 = vld [vmem:[%s3324_s28] sm:$0xff]  ;;  %v2123_v9 = vld [vmem:[%s3339_s15 + $0x8] sm:$0xff] }
 0x284   : >> { %875 = vrot.lane.b32.xlu1 %v874_v4, %s3005_s30  ;;  %v878_v5 = vld [vmem:[%s3326_s29] sm:$0xff]  ;;  %v2125_v6 = vld [vmem:[%s3330_s1 + $0x8] sm:$0xff] }
 0x285   : >> { %879 = vrot.lane.b32.xlu0 %v878_v5, %s3005_s30  ;;  %v944_v7 = vld [vmem:[%s3333_s12] sm:$0xff]  ;;  %v2131_v10 = vld [vmem:[%s3342_s16 + $0x8] sm:$0xff] }
 0x286   : >> { %v940_v8 = vld [vmem:[%s3335_s14] sm:$0xff]  ;;  %v2129_v11 = vld [vmem:[%s3344_s17 + $0x8] sm:$0xff] }
 0x288   : >> { %911 = vrot.lane.b32.xlu1 %v2125_v6, %s3005_s30 }
 0x289   : >> { %896 = vrot.lane.b32.xlu0 %v874_v4, %s3006_s13 }
 0x28c   : >> { %945 = vrot.lane.b32.xlu1 %v944_v7, %s3005_s30 }
 0x28d   : >> { %941 = vrot.lane.b32.xlu0 %v940_v8, %s3005_s30 }
 0x290   : >> { %907 = vrot.lane.b32.xlu1 %v2123_v9, %s3005_s30 }
 0x291   : >> { %928 = vrot.lane.b32.xlu0 %v2123_v9, %s3006_s13 }
 0x294   : >> { %977 = vrot.lane.b32.xlu1 %v2131_v10, %s3005_s30 }
 0x295   : >> { %973 = vrot.lane.b32.xlu0 %v2129_v11, %s3005_s30 }
 0x298   : >> { %962 = vrot.lane.b32.xlu1 %v940_v8, %s3006_s13 }
 0x29c   : >> { %994 = vrot.lane.b32.xlu1 %v2129_v11, %s3006_s13 }
 0x2f6   : >> { %v876_v12 = vpop.permute.xlu1 %875 }
 0x2f7   : >> { %v880_v13 = vpop.permute.xlu0 %879 }
 0x2f8   : >> { %v884_v16 = vsel %vm883_vm2, %v878_v5, %v880_v13 }
 0x2f9   : >> { %v888_v17 = vsel %vm887_vm3, %v876_v12, %v884_v16 }
 0x2fa   : >> { %v894_v18 = vsel %vm1837_vm4, %v888_v17, 0.0  ;;  %v912_v19 = vpop.permute.xlu1 %911 }
 0x2fb   : >> { %v897_v20 = vpop.permute.xlu0 %896  ;;  %934 = vst [vmem:[%s3326_s29] sm:$0xff] %v894_v18  ;;  %v916_v27 = vsel %vm883_vm2, %v2125_v6, %v912_v19 }
 0x2fc   : >> { %v901_v21 = vsel %vm900_vm5, %v878_v5, %v897_v20 }
 0x2fd   : >> { %935 = vst [vmem:[%s3324_s28] sm:$0xff] %v901_v21 }
 0x2fe   : >> { %v946_v22 = vpop.permute.xlu1 %945 }
 0x2ff   : >> { %v950_v23 = vsel %vm883_vm2, %v944_v7, %v946_v22  ;;  %v942_v24 = vpop.permute.xlu0 %941 }
 0x300   : >> { %v954_v25 = vsel %vm887_vm3, %v942_v24, %v950_v23 }
 0x301   : >> { %v960_v26 = vsel %vm1837_vm4, %v954_v25, 0.0 }
 0x302   : >> { %v908_v28 = vpop.permute.xlu1 %907  ;;  %1000 = vst [vmem:[%s3333_s12] sm:$0xff] %v960_v26 }
 0x303   : >> { %v920_v29 = vsel %vm887_vm3, %v908_v28, %v916_v27  ;;  %v929_v30 = vpop.permute.xlu0 %928 }
 0x304   : >> { %v926_v31 = vsel %vm1837_vm4, %v920_v29, 0.0  ;;  %v933_v32 = vsel %vm900_vm5, %v2125_v6, %v929_v30 }
 0x305   : >> { %2127 = vst [vmem:[%s3330_s1 + $0x8] sm:$0xff] %v926_v31  ;;  %2128 = vst [vmem:[%s3339_s15 + $0x8] sm:$0xff] %v933_v32 }
 0x306   : >> { %v978_v33 = vpop.permute.xlu1 %977 }
 0x307   : >> { %v982_v34 = vsel %vm883_vm2, %v2131_v10, %v978_v33  ;;  %v974_v35 = vpop.permute.xlu0 %973 }
 0x308   : >> { %v986_v36 = vsel %vm887_vm3, %v974_v35, %v982_v34 }
 0x309   : >> { %v992_v37 = vsel %vm1837_vm4, %v986_v36, 0.0 }
 0x30a   : >> { %v963_v38 = vpop.permute.xlu1 %962  ;;  %2133 = vst [vmem:[%s3342_s16 + $0x8] sm:$0xff] %v992_v37 }
 0x30b   : >> { %v967_v39 = vsel %vm900_vm5, %v944_v7, %v963_v38  ;;  %v369_v7 = vadd.s32 (%p475_p9), 8, %v350_v15  ;;  %v379_v15 = vmov (%p475_p9), %v3095_v15 }
 0x30c   : >> { %v1006_v40 = vld [vmem:[%s3382_s2] ss:$0 sm:$0xff]  ;;  %v2136_v42 = vld [vmem:[%s3382_s2 + $0x7] ss:$0 sm:$0xff]  ;;  %1001 = vst [vmem:[%s3335_s14] sm:$0xff] %v967_v39  ;;  %v2137_v44 = vld [vmem:[%s3382_s2 + $0x7] sm:$0xfe]  ;;  %v425_v15 = vmov (%p475_p9), %v3095_v15 }
 0x30d   : >> { %v2135_v41 = vld [vmem:[%s3382_s2 - $0x1] sm:$0xfe]  ;;  %v1024_v47 = vsel %vm1012_vm8, %v2136_v42, %v2137_v44  ;;  %v2146_v49 = vld [vmem:[%s3386_s18 + $0x7] ss:$0 sm:$0xff]  ;;  %v2147_v50 = vld [vmem:[%s3386_s18 + $0x7] sm:$0xfe]  ;;  %vm370_vm7 = vcmp.eq.s32.totalorder (%p475_p9), %v369_v7, %v347_v14  ;;  %v399_v14 = vmov (%p475_p9), %v3093_v14  ;;  %v402_v15 = vmov (%p475_p9), %v3095_v15 }
 0x30e   : >> { %v1013_v43 = vsel %vm1012_vm8, %v1006_v40, %v2135_v41  ;;  %v1050_v45 = vld [vmem:[%s3386_s18] ss:$0 sm:$0xff]  ;;  %v2148_v51 = vld [vmem:[%s3386_s18 + $0xf] ss:$0 sm:$0xff]  ;;  %v995_v52 = vpop.permute.xlu1 %994  ;;  %v1068_v53 = vsel %vm1012_vm8, %v2146_v49, %v2147_v50  ;;  %v422_v14 = vmov (%p475_p9), %v3093_v14  ;;  %v446_v36 = vadd.s32 (%p475_p9), 8, %v425_v15 }
 0x30f   : >> { %v2145_v46 = vld [vmem:[%s3386_s18 - $0x1] sm:$0xfe]  ;;  %1016 = vst [vmem:[%s3382_s2] sm:$0xff] %v1013_v43  ;;  %v999_v54 = vsel %vm900_vm5, %v2131_v10, %v995_v52  ;;  %v2138_v55 = vld [vmem:[%s3382_s2 + $0xf] ss:$0 sm:$0xff]  ;;  %2149 = vst [vmem:[%s3386_s18 + $0x8] sm:$0xff] %v1068_v53 }
 0x310   : >> { %v1057_v48 = vsel %vm1012_vm8, %v1050_v45, %v2145_v46  ;;  %2134 = vst [vmem:[%s3344_s17 + $0x8] sm:$0xff] %v999_v54  ;;  %2139 = vst [vmem:[%s3382_s2 + $0x8] sm:$0xff] %v1024_v47  ;;  %vm437_vm8 = vcmp.eq.s32.totalorder (%p475_p9), %v425_v15, %v422_v14 }
 0x311   : >> { %1060 = vst [vmem:[%s3386_s18] sm:$0xff] %v1057_v48  ;;  %v1028_v56 = vld [vmem:[%s3391_s19] ss:$0 sm:$0xff]  ;;  %v2141_v57 = vld [vmem:[%s3391_s19 + $0x9] sm:$0x7f]  ;;  %v2142_v58 = vld [vmem:[%s3391_s19 + $0x8] ss:$0 sm:$0xff] }
 0x312   : >> { %2140 = vst [vmem:[%s3382_s2 + $0x1] sm:$0x1] %v1028_v56  ;;  %v1037_v59 = vsel %vm1036_vm9, %v2138_v55, %v2141_v57  ;;  %v2144_v60 = vld [vmem:[%s3391_s19 + $0x1] sm:$0x7f] }
 0x313   : >> { %2143 = vst [vmem:[%s3391_s19 + $0x8] sm:$0xff] %v1037_v59  ;;  %v1045_v61 = vsel %vm1036_vm9, %v2142_v58, %v2144_v60 }
 0x314   : >> { %1047 = vst [vmem:[%s3391_s19] sm:$0xff] %v1045_v61 }
 0x316   : > { %477 = sbr.rel (!%p475_p9) target bundleno = 310 (0x136), region = 504 }
 0x317   : >> { %v1072_v62 = vld [vmem:[%s1049_s20] ss:$0 sm:$0xff]  ;;  %v2151_v63 = vld [vmem:[%s1049_s20 + $0x9] sm:$0x7f]  ;;  %v2152_v0 = vld [vmem:[%s1049_s20 + $0x8] ss:$0 sm:$0xff] }
 0x318   : >> { %2150 = vst [vmem:[%s3386_s18 + $0x1] sm:$0x1] %v1072_v62  ;;  %v1081_v1 = vsel %vm1036_vm9, %v2148_v51, %v2151_v63  ;;  %v2154_v2 = vld [vmem:[%s1049_s20 + $0x1] sm:$0x7f] }
 0x319   : >> { %2153 = vst [vmem:[%s1049_s20 + $0x8] sm:$0xff] %v1081_v1  ;;  %v1089_v3 = vsel %vm1036_vm9, %v2152_v0, %v2154_v2  ;;  %v357_v4 = vld [vmem:[%s351_s22] sm:$0xff] (%p475_p9)  ;;  %v2185_v5 = vld [vmem:[%s351_s22 + $0x8] sm:$0xff] (%p475_p9)  ;;  %vm447_vm9 = vcmp.eq.s32.totalorder (%p475_p9), %v446_v36, %v422_v14 }
 0x31a   : >> { %1091 = vst [vmem:[%s1049_s20] sm:$0xff] %v1089_v3  ;;  %v358_v8 = vsel (%p475_p9), %vm1837_vm4, %v357_v4, 0.0  ;;  %v366_v9 = vsel (%p475_p9), %vm1837_vm4, %v2185_v5, 0.0 }
 0x31b   : > { %v409_v12 = vld [vmem:[%s403_s0] sm:$0xff]  ;;  %v359_v13 = vmul.f32 %v358_v8, %v358_v8  ;;  %v367_v16 = vmul.f32 %v366_v9, %v366_v9  ;;  %v2187_v19 = vld [vmem:[%s403_s0 + $0x8] sm:$0xff] }
 0x31c   : > { %v410_v20 = vsel %vm1837_vm4, %v409_v12, 0.0  ;;  %v416_v24 = vsel %vm1837_vm4, %v2187_v19, 0.0 }
 0x31d   : > { %v373_v21 = vadd.f32 %v367_v16, %v359_v13  ;;  %v363_v25 = vsel %vm362_vm6, 0.0, %v359_v13  ;;  %v411_v27 = vmul.f32 %v410_v20, %v410_v20  ;;  %v371_v29 = vsel %vm370_vm7, 0.0, %v367_v16 }
 0x31e   : > { %v372_v31 = vadd.f32 %v371_v29, %v363_v25  ;;  %v417_v33 = vmul.f32 %v416_v24, %v416_v24 }
 0x31f   : > { %v386_v6 = vld [vmem:[%s380_s3] sm:$0xff]  ;;  %v2186_v11 = vld [vmem:[%s380_s3 + $0x8] sm:$0xff] }
 0x320   : > { %v387_v10 = vsel %vm1837_vm4, %v386_v6, 0.0  ;;  %v393_v18 = vsel %vm1837_vm4, %v2186_v11, 0.0 }
 0x321   : > { %v388_v17 = vmul.f32 %v387_v10, %v387_v10  ;;  %v394_v22 = vmul.f32 %v393_v18, %v393_v18  ;;  %v432_v23 = vld [vmem:[%s426_s11] sm:$0xff]  ;;  %v2188_v28 = vld [vmem:[%s426_s11 + $0x8] sm:$0xff] }
 0x322   : > { %v433_v30 = vsel %vm1837_vm4, %v432_v23, 0.0  ;;  %v443_v34 = vsel %vm1837_vm4, %v2188_v28, 0.0 }
 0x323   : > { %v390_v26 = vadd.f32 %v388_v17, %v373_v21  ;;  %v389_v35 = vadd.f32 %v388_v17, %v372_v31  ;;  %v434_v38 = vmul.f32 %v433_v30, %v433_v30  ;;  %v444_v41 = vmul.f32 %v443_v34, %v443_v34 }
 0x325   : > { %v396_v32 = vadd.f32 %v394_v22, %v390_v26  ;;  %v395_v39 = vadd.f32 %v394_v22, %v389_v35  ;;  %v438_v44 = vsel %vm437_vm8, 0.0, %v434_v38  ;;  %v448_v47 = vsel %vm447_vm9, 0.0, %v444_v41 }
 0x327   : > { %v413_v37 = vadd.f32 %v411_v27, %v396_v32  ;;  %v412_v42 = vadd.f32 %v411_v27, %v395_v39 }
 0x329   : > { %v419_v40 = vadd.f32 %v417_v33, %v413_v37  ;;  %v418_v45 = vadd.f32 %v417_v33, %v412_v42 }
 0x32b   : > { %v440_v43 = vadd.f32 %v434_v38, %v419_v40  ;;  %v439_v48 = vadd.f32 %v438_v44, %v418_v45 }
 0x32d   : > { %v450_v46 = vadd.f32 %v444_v41, %v440_v43  ;;  %v449_v49 = vadd.f32 %v448_v47, %v439_v48 }
 0x32f   : > { %451 = vadd.xlane.f32.xlu0 %v450_v46 }
 0x333   : > { %459 = vadd.xlane.f32.xlu0 %v449_v49 }
 0x3b8   : > { %v452_v50 = vpop.xlane.xlu0 %451 }
 0x3b9   : > { %v453_v51 = vrot.slane %v452_v50, 4 }
 0x3bb   : > { %v454_v52 = vadd.f32 %v453_v51, %v452_v50 }
 0x3bc   : > { %v460_v53 = vpop.xlane.xlu0 %459 }
 0x3bd   : > { %v455_v54 = vrot.slane %v454_v52, 2  ;;  %v461_v55 = vrot.slane %v460_v53, 4 }
 0x3bf   : > { %v462_v56 = vadd.f32 %v461_v55, %v460_v53  ;;  %v456_v57 = vadd.f32 %v455_v54, %v454_v52 }
 0x3c1   : > { %v463_v58 = vrot.slane %v462_v56, 2  ;;  %v457_v60 = vrot.slane %v456_v57, 1 }
 0x3c3   : > { %v464_v59 = vadd.f32 %v463_v58, %v462_v56  ;;  %v458_v63 = vadd.f32 %v457_v60, %v456_v57 }
 0x3c5   : > { %v465_v61 = vrot.slane %v464_v59, 1 }
 0x3c7   : > { %v466_v62 = vadd.f32 %v465_v61, %v464_v59 }
 0x3c9   : > { %2217 = vpush %v466_v62 }
 0x3ca   : > { %2219 = vpush %v458_v63 }
 0x3fa   : > { %s2218_s23 = spop %2217 }
 0x3fb   : > { %s2220_s24 = spop %2219 }
 0x3fc   : > { %s469_s25 = smul.f32 1e-10, %s2220_s24 }
 0x3fe   : > { %p470_p11 = scmp.le.f32.partialorder %s2218_s23, %s469_s25 }
 0x400   : > { %p472_p12 = por %p471_p10, %p470_p11 }
 0x402   :  { %1244 = sbr.rel (!%p472_p12) target bundleno = 309 (0x135), region = 515 }
 0x407 PF:  { %s1245_s26 = smov [#allocation12]  ;;  %v1249_v14 = vmov %v3093_v14  ;;  %v1252_v15 = vmov %v3095_v15  ;;  %s1271_s27 = smov [#allocation15] }
 0x408   :  { %v1275_v14 = vmov %v3093_v14  ;;  %v1278_v15 = vmov %v3095_v15  ;;  %v1253_v0 = vld [vmem:[%s1245_s26] sm:$0xff]  ;;  %vm1256_vm10 = vcmp.eq.s32.totalorder %v1252_v15, %v1249_v14  ;;  %v2189_v1 = vld [vmem:[%s1245_s26 + $0x8] sm:$0xff]  ;;  %v1261_v2 = vadd.s32 8, %v1252_v15  ;;  %s1246_s10 = smov [#allocation4]  ;;  %s1272_s28 = smov [#allocation6] }
 0x409   :  { %vm1282_vm11 = vcmp.eq.s32.totalorder %v1278_v15, %v1275_v14  ;;  %v1287_v3 = vadd.s32 8, %v1278_v15  ;;  %v1257_v4 = vsel %vm1256_vm10, %v1253_v0, 0.0  ;;  %v1279_v5 = vld [vmem:[%s1271_s27] sm:$0xff]  ;;  %v2190_v6 = vld [vmem:[%s1271_s27 + $0x8] sm:$0xff]  ;;  %s2972_s15 = smov %s3498_s6   ;;  %s2976_s16 = smov [#allocation8]  }
 0x40a   :  { %vm1262_vm4 = vcmp.eq.s32.totalorder %v1261_v2, %v1249_v14  ;;  %v1283_v7 = vsel %vm1282_vm11, %v1279_v5, 0.0 }
 0x40b   :  { %vm1288_vm12 = vcmp.eq.s32.totalorder %v1287_v3, %v1275_v14  ;;  %v1263_v8 = vsel %vm1262_vm4, %v2189_v1, %v1257_v4 }
 0x40c   :  { %v1289_v9 = vsel %vm1288_vm12, %v2190_v6, %v1283_v7  ;;  %v1264_v10 = vrot.slane %v1263_v8, 4 }
 0x40d   :  { %v1290_v11 = vrot.slane %v1289_v9, 4 }
 0x40e   :  { %v1265_v12 = vadd.f32 %v1264_v10, %v1263_v8 }
 0x40f   :  { %v1291_v13 = vadd.f32 %v1290_v11, %v1289_v9 }
 0x410   :  { %v1266_v16 = vrot.slane %v1265_v12, 2 }
 0x411   :  { %v1292_v17 = vrot.slane %v1291_v13, 2 }
 0x412   :  { %v1267_v18 = vadd.f32 %v1266_v16, %v1265_v12 }
 0x413   :  { %v1293_v19 = vadd.f32 %v1292_v17, %v1291_v13 }
 0x414   :  { %v1268_v20 = vrot.slane %v1267_v18, 1 }
 0x415   :  { %v1294_v21 = vrot.slane %v1293_v19, 1 }
 0x416   :  { %v1269_v15 = vadd.f32 %v1268_v20, %v1267_v18 }
 0x417   :  { %v1295_v22 = vadd.f32 %v1294_v21, %v1293_v19 }
 0x418   :  { %1270 = vst [vmem:[%s1246_s10] sm:$0x1] %v1269_v15 }
 0x419   :  { %1296 = vst [vmem:[%s1272_s28] sm:$0x1] %v1295_v22 }
 0x41f   :  { %v1301_v23 = vld [vmem:[#allocation4] sm:$0x1] }
 0x420   :  { %v1309_v14 = vld [vmem:[#allocation6] sm:$0x1]  ;;  %1304 = vst [vmem:[#allocation5] sm:$0x1] %v1301_v23 }
 0x421   :  { %1312 = vst [vmem:[#allocation7] sm:$0x1] %v1309_v14 }
 0x427   :  { %v1376_v24 = vld [vmem:[#allocation5] sm:$0x1] }
 0x428   :  { %v1441_v25 = vld [vmem:[#allocation7] sm:$0x1]  ;;  %1377 = vst [vmem:[%s3496_s4] sm:$0x1] %v1376_v24 }
 0x429   :  { %1442 = vst [vmem:[%s3497_s5] sm:$0x1] %v1441_v25 }
 0x42a LB: > { %v1490_v26 = vld [vmem:[%s2978_s16] sm:$0xff]  ;;  %s1492_s16 = scalar_lea.vmem %s2978_s16, 8   ;;  %s2978_s16 = sphi %s2976_s16, %s1492_s16   ;;  %s2974_s15 = sphi %s2972_s15, %s1493_s15  }
 0x42b   : > { %1491 = vst [vmem:[%s2974_s15] sm:$0xff] %v1490_v26  ;;  %s1493_s15 = scalar_lea.vmem %s2974_s15, 8   ;;  %p1487_p13 = scmp.gt.s32.totalorder %s1492_s16, [#allocation8 + $0x8] }
 0x42c   :  { %s2980_s5 = smov (%p1487_p13), %s3499_s7   ;;  %s2984_s2 = smov (%p1487_p13), [#allocation9]  }
 0x42d   :  { %1489 = sbr.rel (!%p1487_p13) target bundleno = 1066 (0x42a), region = 581 }
 0x432 LB: > { %v1553_v27 = vld [vmem:[%s2986_s2] sm:$0xff]  ;;  %s1555_s2 = scalar_lea.vmem %s2986_s2, 8   ;;  %s2986_s2 = sphi %s2984_s2, %s1555_s2   ;;  %s2982_s5 = sphi %s2980_s5, %s1556_s5  }
 0x433   : > { %1554 = vst [vmem:[%s2982_s5] sm:$0xff] %v1553_v27  ;;  %s1556_s5 = scalar_lea.vmem %s2982_s5, 8   ;;  %p1550_p0 = scmp.gt.s32.totalorder %s1555_s2, [#allocation9 + $0x8] }
 0x434   :  { %s2988_s19 = smov (%p1550_p0), %s3500_s8   ;;  %s2992_s20 = smov (%p1550_p0), [#allocation10]  }
 0x435   :  { %1552 = sbr.rel (!%p1550_p0) target bundleno = 1074 (0x432), region = 603 }
 0x43a LB: > { %v1616_v28 = vld [vmem:[%s2994_s20] sm:$0xff]  ;;  %s1618_s20 = scalar_lea.vmem %s2994_s20, 8   ;;  %s2994_s20 = sphi %s2992_s20, %s1618_s20   ;;  %s2990_s19 = sphi %s2988_s19, %s1619_s19  }
 0x43b   : > { %1617 = vst [vmem:[%s2990_s19] sm:$0xff] %v1616_v28  ;;  %s1619_s19 = scalar_lea.vmem %s2990_s19, 8   ;;  %p1613_p1 = scmp.gt.s32.totalorder %s1618_s20, [#allocation10 + $0x8] }
 0x43c   :  { %s2996_s22 = smov (%p1613_p1), %s3501_s9   ;;  %s3000_s3 = smov (%p1613_p1), [#allocation11]  }
 0x43d   :  { %1615 = sbr.rel (!%p1613_p1) target bundleno = 1082 (0x43a), region = 625 }
 0x442 LB: > { %v1679_v29 = vld [vmem:[%s3002_s3] sm:$0xff]  ;;  %s1681_s3 = scalar_lea.vmem %s3002_s3, 8   ;;  %s3002_s3 = sphi %s3000_s3, %s1681_s3   ;;  %s2998_s22 = sphi %s2996_s22, %s1682_s22  }
 0x443   : > { %1680 = vst [vmem:[%s2998_s22] sm:$0xff] %v1679_v29  ;;  %s1682_s22 = scalar_lea.vmem %s2998_s22, 8   ;;  %p1676_p2 = scmp.gt.s32.totalorder %s1681_s3, [#allocation11 + $0x8] }
 0x445   :  { %1678 = sbr.rel (!%p1676_p2) target bundleno = 1090 (0x442), region = 647 }

// kernel: reverse
= control target key start
LH: loop header
LB: loop body
LE: loop exit
PB: predicated region body
PF: predicated region fallthrough
CT: control target
= control target key end

     0   :  { %v2_v0 = vlaneseq  ;;  %s130_s0 = inlined_call_operand.vmem [shape: f32[32], index: 0, kind: input, shape index: {}]   ;;  %s131_s1 = inlined_call_operand.vmem [shape: f32[32], index: 1, kind: output, shape index: {}]  }
   0x2   :  { %v3_v1 = vsub.s32 31, %v2_v0 }
   0x4   :  { %4 = vset.pattern.permute.xlu0 %v3_v1 }
   0x5   :  { %v46_v2 = vld [vmem:[#allocation1] sm:$0x1]  ;;  %v22_v3 = vld [vmem:[%s130_s0] sm:$0x1]  ;;  %v61_v10 = vshrl.u32 %v2_v0, 7 }
   0x6   :  { %47 = vst [vmem:[#allocation0] sm:$0x1] %v46_v2  ;;  %23 = vst [vmem:[#allocation1 + $0x1] sm:$0x1] %v22_v3 }
   0x7   :  { %vm62_vm0 = vcmp.lt.s32.totalorder %v61_v10, 1 }
   0xd   :  { %v49_v4 = vld [vmem:[#allocation0 + $0x7] ss:$-1 sm:$0xff]  ;;  %v43_v5 = vld [vmem:[#allocation1 + $0x1] sm:$0x1] }
   0xe   :  { %v50_v6 = vrot.slane %v49_v4, 7  ;;  %45 = vst [vmem:[#allocation0 + $0x8] sm:$0x1] %v43_v5 }
  0x10   :  { %51 = vperm.xlu0 %4, %v50_v6  }
  0x15   :  { %v56_v7 = vld [vmem:[#allocation0 + $0xf] ss:$-1 sm:$0xff] }
  0x16   :  { %v57_v8 = vrot.slane %v56_v7, 7 }
  0x18   :  { %58 = vperm.xlu0 %4, %v57_v8  }
  0x8b   :  { %v52_v9 = vpop.permute.xlu0 %51 }
  0x8c   :  { %53 = vst [vmem:[#allocation2] sm:$0xff] %v52_v9 }
  0x93   :  { %v59_v11 = vpop.permute.xlu0 %58 }
  0x94   :  { %63 = vst.msk [vmem:[#allocation2] sm:$0xff] %vm62_vm0, %v59_v11 }
  0x9b   :  { %v68_v12 = vld [vmem:[#allocation2] sm:$0x1] }
  0x9c   :  { %71 = vst [vmem:[#allocation3] sm:$0x1] %v68_v12 }
  0xa3   :  { %v88_v13 = vld [vmem:[#allocation3] sm:$0x1] }
  0xa4   :  { %89 = vst [vmem:[%s131_s1] sm:$0x1] %v88_v13 }

// kernel: orthogonal_projector_forward.1
= control target key start
LH: loop header
LB: loop body
LE: loop exit
PB: predicated region body
PF: predicated region fallthrough
CT: control target
= control target key end

     0   :  { %s487_s1 = inlined_call_operand.vmem [shape: f32[128,128], index: 1, kind: input, shape index: {}]   ;;  %s488_s0 = inlined_call_operand.vmem [shape: f32[128,128], index: 0, kind: input, shape index: {}]   ;;  %s489_s2 = inlined_call_operand.vmem [shape: f32[128,128], index: 2, kind: output, shape index: {}]  }
   0x1   :  { %v42_v0 = vld [vmem:[%s487_s1 + $0x78] sm:$0xff]  ;;  %v41_v1 = vld [vmem:[%s487_s1 + $0x70] sm:$0xff]  ;;  %v40_v2 = vld [vmem:[%s487_s1 + $0x68] sm:$0xff] }
   0x2   :  { %240 = vmatprep.subr.mxu0 %v42_v0  ;;  %296 = vmatprep.subr.mxu1 %v42_v0  ;;  %v39_v3 = vld [vmem:[%s487_s1 + $0x60] sm:$0xff]  ;;  %v38_v4 = vld [vmem:[%s487_s1 + $0x58] sm:$0xff]  ;;  %v37_v5 = vld [vmem:[%s487_s1 + $0x50] sm:$0xff] }
   0x3   :  { %241 = vmatpush3.msra.mxu0 %v42_v0  ;;  %312 = vmatpush3.msra.mxu1 %v42_v0  ;;  %v36_v6 = vld [vmem:[%s487_s1 + $0x48] sm:$0xff]  ;;  %v35_v7 = vld [vmem:[%s487_s1 + $0x40] sm:$0xff]  ;;  %v34_v8 = vld [vmem:[%s487_s1 + $0x38] sm:$0xff] }
   0x4   :  { %242 = vmatprep.subr.mxu0 %v41_v1  ;;  %297 = vmatprep.subr.mxu1 %v41_v1  ;;  %v33_v9 = vld [vmem:[%s487_s1 + $0x30] sm:$0xff]  ;;  %v32_v10 = vld [vmem:[%s487_s1 + $0x28] sm:$0xff]  ;;  %v31_v11 = vld [vmem:[%s487_s1 + $0x20] sm:$0xff] }
   0x5   :  { %243 = vmatpush3.msra.mxu0 %v41_v1  ;;  %313 = vmatpush3.msra.mxu1 %v41_v1  ;;  %v30_v12 = vld [vmem:[%s487_s1 + $0x18] sm:$0xff]  ;;  %v29_v13 = vld [vmem:[%s487_s1 + $0x10] sm:$0xff]  ;;  %v28_v14 = vld [vmem:[%s487_s1 + $0x8] sm:$0xff] }
   0x6   :  { %244 = vmatprep.subr.mxu0 %v40_v2  ;;  %298 = vmatprep.subr.mxu1 %v40_v2  ;;  %v27_v15 = vld [vmem:[%s487_s1] sm:$0xff]  ;;  %v12_v18 = vld [vmem:[%s488_s0 + $0x8] sm:$0xff]  ;;  %v13_v20 = vld [vmem:[%s488_s0 + $0x10] sm:$0xff] }
   0x7   :  { %245 = vmatpush3.msra.mxu0 %v40_v2  ;;  %314 = vmatpush3.msra.mxu1 %v40_v2  ;;  %v11_v16 = vld [vmem:[%s488_s0] sm:$0xff]  ;;  %v20_v19 = vld [vmem:[%s488_s0 + $0x48] sm:$0xff]  ;;  %v21_v21 = vld [vmem:[%s488_s0 + $0x50] sm:$0xff] }
   0x8   :  { %246 = vmatprep.subr.mxu0 %v39_v3  ;;  %299 = vmatprep.subr.mxu1 %v39_v3  ;;  %v19_v17 = vld [vmem:[%s488_s0 + $0x40] sm:$0xff]  ;;  %v14_v22 = vld [vmem:[%s488_s0 + $0x18] sm:$0xff]  ;;  %v16_v26 = vld [vmem:[%s488_s0 + $0x28] sm:$0xff] }
   0x9   :  { %247 = vmatpush3.msra.mxu0 %v39_v3  ;;  %315 = vmatpush3.msra.mxu1 %v39_v3  ;;  %v22_v23 = vld [vmem:[%s488_s0 + $0x58] sm:$0xff]  ;;  %v15_v24 = vld [vmem:[%s488_s0 + $0x20] sm:$0xff]  ;;  %v24_v27 = vld [vmem:[%s488_s0 + $0x68] sm:$0xff] }
   0xa   :  { %248 = vmatprep.subr.mxu0 %v38_v4  ;;  %300 = vmatprep.subr.mxu1 %v38_v4  ;;  %v23_v25 = vld [vmem:[%s488_s0 + $0x60] sm:$0xff]  ;;  %v17_v28 = vld [vmem:[%s488_s0 + $0x30] sm:$0xff]  ;;  %v18_v30 = vld [vmem:[%s488_s0 + $0x38] sm:$0xff] }
   0xb   :  { %249 = vmatpush3.msra.mxu0 %v38_v4  ;;  %316 = vmatpush3.msra.mxu1 %v38_v4  ;;  %v25_v29 = vld [vmem:[%s488_s0 + $0x70] sm:$0xff]  ;;  %v26_v31 = vld [vmem:[%s488_s0 + $0x78] sm:$0xff] }
   0xc   :  { %250 = vmatprep.subr.mxu0 %v37_v5  ;;  %301 = vmatprep.subr.mxu1 %v37_v5 }
   0xd   :  { %251 = vmatpush3.msra.mxu0 %v37_v5  ;;  %317 = vmatpush3.msra.mxu1 %v37_v5 }
   0xe   :  { %252 = vmatprep.subr.mxu0 %v36_v6  ;;  %302 = vmatprep.subr.mxu1 %v36_v6 }
   0xf   :  { %253 = vmatpush3.msra.mxu0 %v36_v6  ;;  %318 = vmatpush3.msra.mxu1 %v36_v6 }
  0x10   :  { %254 = vmatprep.subr.mxu0 %v35_v7  ;;  %303 = vmatprep.subr.mxu1 %v35_v7 }
  0x11   :  { %255 = vmatpush3.msra.mxu0 %v35_v7  ;;  %319 = vmatpush3.msra.mxu1 %v35_v7 }
  0x12   :  { %256 = vmatprep.subr.mxu0 %v34_v8  ;;  %304 = vmatprep.subr.mxu1 %v34_v8 }
  0x13   :  { %257 = vmatpush3.msra.mxu0 %v34_v8  ;;  %320 = vmatpush3.msra.mxu1 %v34_v8 }
  0x14   :  { %258 = vmatprep.subr.mxu0 %v33_v9  ;;  %305 = vmatprep.subr.mxu1 %v33_v9 }
  0x15   :  { %259 = vmatpush3.msra.mxu0 %v33_v9  ;;  %321 = vmatpush3.msra.mxu1 %v33_v9 }
  0x16   :  { %260 = vmatprep.subr.mxu0 %v32_v10  ;;  %306 = vmatprep.subr.mxu1 %v32_v10 }
  0x17   :  { %261 = vmatpush3.msra.mxu0 %v32_v10  ;;  %322 = vmatpush3.msra.mxu1 %v32_v10 }
  0x18   :  { %262 = vmatprep.subr.mxu0 %v31_v11  ;;  %307 = vmatprep.subr.mxu1 %v31_v11 }
  0x19   :  { %263 = vmatpush3.msra.mxu0 %v31_v11  ;;  %323 = vmatpush3.msra.mxu1 %v31_v11 }
  0x1a   :  { %264 = vmatprep.subr.mxu0 %v30_v12  ;;  %308 = vmatprep.subr.mxu1 %v30_v12 }
  0x1b   :  { %265 = vmatpush3.msra.mxu0 %v30_v12  ;;  %324 = vmatpush3.msra.mxu1 %v30_v12 }
  0x1c   :  { %266 = vmatprep.subr.mxu0 %v29_v13  ;;  %309 = vmatprep.subr.mxu1 %v29_v13 }
  0x1d   :  { %267 = vmatpush3.msra.mxu0 %v29_v13  ;;  %325 = vmatpush3.msra.mxu1 %v29_v13 }
  0x1e   :  { %268 = vmatprep.subr.mxu0 %v28_v14  ;;  %310 = vmatprep.subr.mxu1 %v28_v14 }
  0x1f   :  { %269 = vmatpush3.msra.mxu0 %v28_v14  ;;  %326 = vmatpush3.msra.mxu1 %v28_v14 }
  0x20   :  { %270 = vmatprep.subr.mxu0 %v27_v15  ;;  %311 = vmatprep.subr.mxu1 %v27_v15 }
  0x21   :  { %271 = vmatpush3.msra.mxu0 %v27_v15  ;;  %327 = vmatpush3.msra.mxu1 %v27_v15 }
  0x22   :  { %272 = vmatprep.mubr.f32.mxu0 %v11_v16  ;;  %284 = vmatprep.mubr.f32.mxu1 %v19_v17 }
  0x23   :  { %273 = vmatmul.mubr.f32.vlgmr.msra.gmra.mxu0 %v12_v18  ;;  %285 = vmatmul.mubr.f32.vlgmr.msra.gmra.mxu1 %v20_v19 }
  0x24   :  { %275 = vmatprep.mubr.f32.mxu0 %v13_v20  ;;  %287 = vmatprep.mubr.f32.mxu1 %v21_v21 }
  0x27   :  { %276 = vmatmul.mubr.f32.gmra.mxu0 %v14_v22  ;;  %288 = vmatmul.mubr.f32.gmra.mxu1 %v22_v23 }
  0x28   :  { %278 = vmatprep.mubr.f32.mxu0 %v15_v24  ;;  %290 = vmatprep.mubr.f32.mxu1 %v23_v25 }
  0x2b   :  { %279 = vmatmul.mubr.f32.gmra.mxu0 %v16_v26  ;;  %291 = vmatmul.mubr.f32.gmra.mxu1 %v24_v27 }
  0x2c   :  { %281 = vmatprep.mubr.f32.mxu0 %v17_v28  ;;  %293 = vmatprep.mubr.f32.mxu1 %v25_v29 }
  0x2f   :  { %282 = vmatmul.mubr.f32.gmra.mxu0 %v18_v30  ;;  %294 = vmatmul.mubr.f32.gmra.mxu1 %v26_v31 }
  0xe3   :  { %v274_v32 = vpop.f32.mrf.mxu0  ;;  %v286_v33 = vpop.f32.mrf.mxu1 }
  0xe4   :  { %189 = vst [vmem:[%s489_s2 + $0x8] sm:$0xff] %v274_v32  ;;  %197 = vst [vmem:[%s489_s2 + $0x48] sm:$0xff] %v286_v33 }
  0xe5   :  { %v109_v34 = vpop.f32.mrf.mxu0  ;;  %v149_v35 = vpop.f32.mrf.mxu1 }
  0xe6   :  { %188 = vst [vmem:[%s489_s2] sm:$0xff] %v109_v34  ;;  %196 = vst [vmem:[%s489_s2 + $0x40] sm:$0xff] %v149_v35 }
  0xe7   :  { %v277_v36 = vpop.f32.mrf.mxu0  ;;  %v289_v37 = vpop.f32.mrf.mxu1 }
  0xe8   :  { %191 = vst [vmem:[%s489_s2 + $0x18] sm:$0xff] %v277_v36  ;;  %199 = vst [vmem:[%s489_s2 + $0x58] sm:$0xff] %v289_v37 }
  0xe9   :  { %v119_v38 = vpop.f32.mrf.mxu0  ;;  %v159_v39 = vpop.f32.mrf.mxu1 }
  0xea   :  { %190 = vst [vmem:[%s489_s2 + $0x10] sm:$0xff] %v119_v38  ;;  %198 = vst [vmem:[%s489_s2 + $0x50] sm:$0xff] %v159_v39 }
  0xeb   :  { %v280_v40 = vpop.f32.mrf.mxu0  ;;  %v292_v41 = vpop.f32.mrf.mxu1 }
  0xec   :  { %193 = vst [vmem:[%s489_s2 + $0x28] sm:$0xff] %v280_v40  ;;  %201 = vst [vmem:[%s489_s2 + $0x68] sm:$0xff] %v292_v41 }
  0xed   :  { %v129_v42 = vpop.f32.mrf.mxu0  ;;  %v169_v43 = vpop.f32.mrf.mxu1 }
  0xee   :  { %192 = vst [vmem:[%s489_s2 + $0x20] sm:$0xff] %v129_v42  ;;  %200 = vst [vmem:[%s489_s2 + $0x60] sm:$0xff] %v169_v43 }
  0xef   :  { %v283_v44 = vpop.f32.mrf.mxu0  ;;  %v295_v45 = vpop.f32.mrf.mxu1 }
  0xf0   :  { %195 = vst [vmem:[%s489_s2 + $0x38] sm:$0xff] %v283_v44  ;;  %203 = vst [vmem:[%s489_s2 + $0x78] sm:$0xff] %v295_v45 }
  0xf1   :  { %v139_v46 = vpop.f32.mrf.mxu0  ;;  %v179_v47 = vpop.f32.mrf.mxu1 }
  0xf2   :  { %194 = vst [vmem:[%s489_s2 + $0x30] sm:$0xff] %v139_v46  ;;  %202 = vst [vmem:[%s489_s2 + $0x70] sm:$0xff] %v179_v47 }

</bundles_post_ra>
